<compile_context>
chip_gen: v7x
topology: tpu7x:2x2x1
jax: 0.10.0
libtpu: 0.0.40
codegen_flags: <defaults>
</compile_context>

<pallas_src>
import functools

import jax
import jax.numpy as jnp
from jax import lax
from jax.experimental import pallas as pl
from jax.experimental.pallas import tpu as pltpu
import numpy as np

MXU_DTYPE = jnp.bfloat16  # matmul-feed dtype; accumulation & gate math in f32


def _round_up(x, m):
    return -(-x // m) * m


# ------------------------- fused GRUNet forward kernel ------------------------
def _fused_grunet_kernel(T, B_pad, Hp, F1p, Lp,
                         x_ref, tmask_ref, wih0_ref, wrec_ref, whead_ref, b_ref,
                         out_ref, gi_ref):
    G3 = 3 * Hp

    # ---- prologue: hoisted layer-0 input projection for ALL timesteps -------
    # ONE (T*B_pad, E) x (E, 3*Hp) matmul; fused r|z|n bias row folded in.
    gi_ref[...] = (jnp.dot(x_ref[...], wih0_ref[...],
                           preferred_element_type=jnp.float32)
                   + b_ref[0:1, 0:G3])

    # ---- loop-invariant bias broadcasts (hoisted: JAX doesn't CSE these) ----
    b1i_b = jnp.broadcast_to(b_ref[1:2, 0:G3], (B_pad, G3))
    b0hn_b = jnp.broadcast_to(b_ref[2:3, 0:Hp], (B_pad, Hp))
    b1hn_b = jnp.broadcast_to(b_ref[3:4, 0:Hp], (B_pad, Hp))

    def step(t, carry):
        h0, h1, acc = carry
        row = pl.multiple_of(t * B_pad, B_pad)            # sublane-aligned
        gi0 = gi_ref[pl.ds(row, B_pad), :]                # (B_pad, 3Hp) f32

        # ---- layer 0: ONE fused recurrent matmul on the serial path ---------
        gh0 = jnp.dot(h0.astype(MXU_DTYPE), wrec_ref[0:Hp, :],
                      preferred_element_type=jnp.float32)
        r0 = jax.nn.sigmoid(gi0[:, 0:Hp] + gh0[:, 0:Hp])
        z0 = jax.nn.sigmoid(gi0[:, Hp:2 * Hp] + gh0[:, Hp:2 * Hp])
        n0 = jnp.tanh(gi0[:, 2 * Hp:3 * Hp]
                      + r0 * (gh0[:, 2 * Hp:3 * Hp] + b0hn_b))
        h0n = (1.0 - z0) * n0 + z0 * h0

        # ---- layer 1: fused input + recurrent matmuls (dropout: eval) -------
        gi1 = jnp.dot(h0n.astype(MXU_DTYPE), wrec_ref[Hp:2 * Hp, :],
                      preferred_element_type=jnp.float32) + b1i_b
        gh1 = jnp.dot(h1.astype(MXU_DTYPE), wrec_ref[2 * Hp:3 * Hp, :],
                      preferred_element_type=jnp.float32)
        r1 = jax.nn.sigmoid(gi1[:, 0:Hp] + gh1[:, 0:Hp])
        z1 = jax.nn.sigmoid(gi1[:, Hp:2 * Hp] + gh1[:, Hp:2 * Hp])
        n1 = jnp.tanh(gi1[:, 2 * Hp:3 * Hp]
                      + r1 * (gh1[:, 2 * Hp:3 * Hp] + b1hn_b))
        h1n = (1.0 - z1) * n1 + z1 * h1

        # ---- masked, length-normalized accumulation (1/len folded in mask) --
        m = tmask_ref[pl.ds(row, B_pad), :]               # (B_pad, 1) f32
        return h0n, h1n, acc + m * h1n

    zeros = jnp.zeros((B_pad, Hp), jnp.float32)
    _, _, pooled = lax.fori_loop(0, T, step, (zeros, zeros, zeros),
                                 unroll=min(T, 8))

    # ---- head: fc1 + leaky_relu + fc2 (all 128-lane-dense) -------------------
    h = (jnp.dot(pooled.astype(MXU_DTYPE), whead_ref[0:Hp, 0:F1p],
                 preferred_element_type=jnp.float32) + b_ref[4:5, 0:F1p])
    h = jnp.where(h >= 0.0, h, 0.01 * h)                  # F.leaky_relu, 0.01
    out_ref[...] = (jnp.dot(h.astype(MXU_DTYPE), whead_ref[Hp:Hp + F1p, 0:Lp],
                            preferred_element_type=jnp.float32)
                    + b_ref[5:6, 0:Lp])


# ------------------------------- full forward --------------------------------
def gru_net_forward(params, tokens, input_lens):
    B, T = tokens.shape
    E = params["embedding"].shape[1]
    H = params["whh0"].shape[1]
    F1 = params["fc1_w"].shape[0]
    L = params["fc2_w"].shape[0]

    Hp = _round_up(H, 128)                 # per-gate lane width
    F1p = _round_up(F1, 128)
    Lp = _round_up(L, 128)
    # NOTE: pad batch to 16 sublanes once B is real-sized (bf16 MXU LHS packs
    # 16 rows/vreg); at tiny B an 8-row f32 tile is fine.
    B_pad = max(8, _round_up(B, 8))

    # Time-major embedding gather: transpose the small (B, T) token matrix and
    # gather directly into (T, B_pad, E) — no (B, T, E) transpose in HBM.
    tok_t = jnp.transpose(tokens)                                  # (T, B)
    tok_t = jnp.pad(tok_t, ((0, 0), (0, B_pad - B)))               # pad batch
    emb = jnp.take(params["embedding"], tok_t, axis=0)             # (T,B_pad,E)
    x2d = emb.reshape(T * B_pad, E).astype(MXU_DTYPE)

    # Per-(t, b) mask with the EXACT 1/len normalization folded in:
    #   tmask[t, b] = (t < len[b]) / max(len[b], 1)
    lens = jnp.pad(input_lens.astype(jnp.int32), (0, B_pad - B))   # (B_pad,)
    t_idx = jnp.arange(T, dtype=jnp.int32)[:, None]                # (T, 1)
    valid = (t_idx < lens[None, :]).astype(jnp.float32)            # (T, B_pad)
    inv_len = 1.0 / jnp.maximum(lens, 1).astype(jnp.float32)
    tmask = (valid * inv_len[None, :]).reshape(T * B_pad, 1)

    # ---- fused / lane-padded weight slabs ------------------------------------
    def fuse_gates(w, in_pad):
        # PyTorch (3H, in) -> (in_pad, 3*Hp): gate g occupies rows [0:in],
        # lanes [g*Hp : g*Hp+H]; everything else zero.
        in_dim = w.shape[1]
        blocks = []
        for g in range(3):
            blk = w[g * H:(g + 1) * H].T                           # (in, H)
            blk = jnp.pad(blk, ((0, in_pad - in_dim), (0, Hp - H)))
            blocks.append(blk)
        return jnp.concatenate(blocks, axis=1).astype(MXU_DTYPE)   # (in_pad,3Hp)

    wih0 = fuse_gates(params["wih0"], E)                           # (E, 3Hp)
    wrec = jnp.concatenate([fuse_gates(params["whh0"], Hp),        # rows 0:Hp
                            fuse_gates(params["wih1"], Hp),        # Hp:2Hp
                            fuse_gates(params["whh1"], Hp)],       # 2Hp:3Hp
                           axis=0)                                 # (3Hp, 3Hp)

    Cmax = max(F1p, Lp)
    wf1 = jnp.pad(params["fc1_w"].T, ((0, Hp - H), (0, Cmax - F1)))   # (Hp,Cmax)
    wf2 = jnp.pad(params["fc2_w"].T, ((0, F1p - F1), (0, Cmax - L)))  # (F1p,Cmax)
    whead = jnp.concatenate([wf1, wf2], axis=0).astype(MXU_DTYPE)  # (Hp+F1p,Cmax)

    # ---- single 8-row bias slab ----------------------------------------------
    BW = max(3 * Hp, F1p, Lp)
    pad_row = lambda v: jnp.pad(v.astype(jnp.float32), (0, BW - v.shape[0]))

    def gi_bias(bih, bhh):
        # fused r|z|n input-side bias: r/z take (b_ih+b_hh); n keeps only b_in
        br = bih[0:H] + bhh[0:H]
        bz = bih[H:2 * H] + bhh[H:2 * H]
        bn = bih[2 * H:3 * H]
        return jnp.concatenate([jnp.pad(br, (0, Hp - H)),
                                jnp.pad(bz, (0, Hp - H)),
                                jnp.pad(bn, (0, Hp - H))])          # (3Hp,)

    b_all = jnp.stack([
        pad_row(gi_bias(params["bih0"], params["bhh0"])),           # row 0
        pad_row(gi_bias(params["bih1"], params["bhh1"])),           # row 1
        pad_row(jnp.pad(params["bhh0"][2 * H:3 * H], (0, Hp - H))),  # row 2: b0_hn
        pad_row(jnp.pad(params["bhh1"][2 * H:3 * H], (0, Hp - H))),  # row 3: b1_hn
        pad_row(params["fc1_b"]),                                   # row 4
        pad_row(params["fc2_b"]),                                   # row 5
        jnp.zeros((BW,), jnp.float32),
        jnp.zeros((BW,), jnp.float32),
    ], axis=0)                                                      # (8, BW)

    kernel = functools.partial(_fused_grunet_kernel, T, B_pad, Hp, F1p, Lp)
    out = pl.pallas_call(
        kernel,
        out_shape=jax.ShapeDtypeStruct((B_pad, Lp), jnp.float32),
        scratch_shapes=[pltpu.VMEM((T * B_pad, 3 * Hp), jnp.float32)],
        compiler_params=pltpu.CompilerParams(vmem_limit_bytes=32 * 1024 * 1024),
    )(x2d, tmask, wih0, wrec, whead, b_all)
    return out[:B, :L]


# ------------------------------ JAX reference --------------------------------
def _ref_gru_layer(x_seq, wih, whh, bih, bhh):
    H = whh.shape[1]

    def step(h, xt):
        gi = jnp.dot(xt, wih.T, precision=jax.lax.Precision.HIGHEST) + bih
        gh = jnp.dot(h, whh.T, precision=jax.lax.Precision.HIGHEST) + bhh
        r = jax.nn.sigmoid(gi[:, :H] + gh[:, :H])
        z = jax.nn.sigmoid(gi[:, H:2 * H] + gh[:, H:2 * H])
        n = jnp.tanh(gi[:, 2 * H:] + r * gh[:, 2 * H:])
        h_new = (1.0 - z) * n + z * h
        return h_new, h_new

    B = x_seq.shape[1]
    h0 = jnp.zeros((B, H), jnp.float32)
    _, ys = jax.lax.scan(step, h0, x_seq)
    return ys


def ref_forward(params, tokens, input_lens):
    emb = jnp.take(params["embedding"], tokens, axis=0)
    x_seq = jnp.transpose(emb, (1, 0, 2)).astype(jnp.float32)
    out0 = _ref_gru_layer(x_seq, params["wih0"], params["whh0"],
                          params["bih0"], params["bhh0"])
    out1 = _ref_gru_layer(out0, params["wih1"], params["whh1"],
                          params["bih1"], params["bhh1"])
    T, B, H = out1.shape
    t_idx = jnp.arange(T)[:, None, None]
    mask = (t_idx < input_lens[None, :, None]).astype(jnp.float32)
    pooled = jnp.sum(out1 * mask, axis=0) / input_lens[:, None].astype(jnp.float32)
    h1 = pooled @ params["fc1_w"].T + params["fc1_b"]
    h1 = jnp.where(h1 >= 0.0, h1, 0.01 * h1)
    return h1 @ params["fc2_w"].T + params["fc2_b"]


# ---------------------------------- main -------------------------------------
def init_params(key, vocab, E, H, L):
    ks = jax.random.split(key, 16)
    u = lambda k, shape, s=0.1: jax.random.uniform(k, shape, jnp.float32, -s, s)
    return {
        "embedding": u(ks[0], (vocab, E)),
        "wih0": u(ks[1], (3 * H, E)), "whh0": u(ks[2], (3 * H, H)),
        "bih0": u(ks[3], (3 * H,)),   "bhh0": u(ks[4], (3 * H,)),
        "wih1": u(ks[5], (3 * H, H)), "whh1": u(ks[6], (3 * H, H)),
        "bih1": u(ks[7], (3 * H,)),   "bhh1": u(ks[8], (3 * H,)),
        "fc1_w": u(ks[9], (4 * H, H)), "fc1_b": u(ks[10], (4 * H,)),
        "fc2_w": u(ks[11], (L, 4 * H)), "fc2_b": u(ks[12], (L,)),
    }


if __name__ == "__main__":
    B, T, E, H, vocab, L = 4, 8, 32, 32, 50, 5
    key = jax.random.PRNGKey(0)
    kp, kt = jax.random.split(key)
    params = init_params(kp, vocab, E, H, L)
    tokens = jax.random.randint(kt, (B, T), 0, vocab, dtype=jnp.int32)
    input_lens = jnp.array([8, 5, 3, 6], dtype=jnp.int32)

    logits = jax.jit(gru_net_forward)(params, tokens, input_lens)
    jax.block_until_ready(logits)

    ref = jax.jit(ref_forward)(params, tokens, input_lens)
    np.testing.assert_allclose(np.asarray(logits), np.asarray(ref),
                               rtol=2e-2, atol=2e-2)
    print("KERNEL_OK")
</pallas_src>

<mosaic_0001>
module attributes {stable_mosaic.version = 11 : i64} {
  func.func @_fused_grunet_kernel(%arg0: memref<64x32xbf16, #tpu.memory_space<vmem>>, %arg1: memref<64x1xf32, #tpu.memory_space<vmem>>, %arg2: memref<32x384xbf16, #tpu.memory_space<vmem>>, %arg3: memref<384x384xbf16, #tpu.memory_space<vmem>>, %arg4: memref<256x128xbf16, #tpu.memory_space<vmem>>, %arg5: memref<8x384xf32, #tpu.memory_space<vmem>>, %arg6: memref<8x128xf32, #tpu.memory_space<vmem>>, %arg7: memref<64x384xf32, #tpu.memory_space<vmem>>) attributes {dimension_semantics = [], scalar_prefetch = 0 : i64, scratch_operands = 1 : i64, tpu.core_type = #tpu.core_type<tc>} {
    %c0 = arith.constant 0 : index
    %c0_0 = arith.constant 0 : index
    %0 = vector.load %arg0[%c0, %c0_0] : memref<64x32xbf16, #tpu.memory_space<vmem>>, vector<64x32xbf16>
    %c0_1 = arith.constant 0 : index
    %c0_2 = arith.constant 0 : index
    %1 = vector.load %arg2[%c0_1, %c0_2] : memref<32x384xbf16, #tpu.memory_space<vmem>>, vector<32x384xbf16>
    %cst = arith.constant dense<0.000000e+00> : vector<64x384xf32>
    %2 = tpu.matmul %0, %1, %cst {dimension_numbers = #tpu.dot_dimension_numbers<[1], [0], [0], [1], [0, 0, 1, 1], [], []>} : vector<64x32xbf16>, vector<32x384xbf16>, vector<64x384xf32> -> vector<64x384xf32>
    %c0_3 = arith.constant 0 : index
    %c0_4 = arith.constant 0 : index
    %3 = vector.load %arg5[%c0_3, %c0_4] : memref<8x384xf32, #tpu.memory_space<vmem>>, vector<1x384xf32>
    %4 = vector.broadcast %3 : vector<1x384xf32> to vector<64x384xf32>
    %5 = arith.addf %2, %4 : vector<64x384xf32>
    %c0_5 = arith.constant 0 : index
    %c0_6 = arith.constant 0 : index
    %6 = vector.load %arg7[%c0_5, %c0_6] : memref<64x384xf32, #tpu.memory_space<vmem>>, vector<64x384xf32>
    tpu.vector_store %arg7[%c0_5, %c0_6], %5 {strides = array<i32>} : memref<64x384xf32, #tpu.memory_space<vmem>>, vector<64x384xf32>,
    %c1 = arith.constant 1 : index
    %c0_7 = arith.constant 0 : index
    %7 = vector.load %arg5[%c1, %c0_7] : memref<8x384xf32, #tpu.memory_space<vmem>>, vector<1x384xf32>
    %8 = vector.shape_cast %7 : vector<1x384xf32> to vector<1x384xf32>
    %9 = vector.broadcast %8 : vector<1x384xf32> to vector<8x384xf32>
    %c2 = arith.constant 2 : index
    %c0_8 = arith.constant 0 : index
    %10 = vector.load %arg5[%c2, %c0_8] : memref<8x384xf32, #tpu.memory_space<vmem>>, vector<1x128xf32>
    %11 = vector.shape_cast %10 : vector<1x128xf32> to vector<1x128xf32>
    %12 = vector.broadcast %11 : vector<1x128xf32> to vector<8x128xf32>
    %c3 = arith.constant 3 : index
    %c0_9 = arith.constant 0 : index
    %13 = vector.load %arg5[%c3, %c0_9] : memref<8x384xf32, #tpu.memory_space<vmem>>, vector<1x128xf32>
    %14 = vector.shape_cast %13 : vector<1x128xf32> to vector<1x128xf32>
    %15 = vector.broadcast %14 : vector<1x128xf32> to vector<8x128xf32>
    %cst_10 = arith.constant 0.000000e+00 : f32
    %16 = vector.broadcast %cst_10 : f32 to vector<8x128xf32>
    %c0_i32 = arith.constant 0 : i32
    %c8_i32 = arith.constant 8 : i32
    %17 = arith.muli %c0_i32, %c8_i32 : i32
    %18 = tpu.assume_multiple %17, 8 : i32
    %19 = arith.index_cast %18 : i32 to index
    %c0_11 = arith.constant 0 : index
    %20 = vector.load %arg7[%19, %c0_11] : memref<64x384xf32, #tpu.memory_space<vmem>>, vector<8x384xf32>
    %21 = arith.truncf %16 : vector<8x128xf32> to vector<8x128xbf16>
    %c0_12 = arith.constant 0 : index
    %c0_13 = arith.constant 0 : index
    %22 = vector.load %arg3[%c0_12, %c0_13] : memref<384x384xbf16, #tpu.memory_space<vmem>>, vector<128x384xbf16>
    %cst_14 = arith.constant dense<0.000000e+00> : vector<8x384xf32>
    %23 = tpu.matmul %21, %22, %cst_14 {dimension_numbers = #tpu.dot_dimension_numbers<[1], [0], [0], [1], [0, 0, 1, 1], [], []>} : vector<8x128xbf16>, vector<128x384xbf16>, vector<8x384xf32> -> vector<8x384xf32>
    %24 = vector.extract_strided_slice %20 {offsets = [0, 0], sizes = [8, 128], strides = [1, 1]} : vector<8x384xf32> to vector<8x128xf32>
    %25 = vector.extract_strided_slice %23 {offsets = [0, 0], sizes = [8, 128], strides = [1, 1]} : vector<8x384xf32> to vector<8x128xf32>
    %26 = arith.addf %24, %25 : vector<8x128xf32>
    %27 = arith.negf %26 : vector<8x128xf32>
    %28 = math.exp %27 : vector<8x128xf32>
    %cst_15 = arith.constant 1.000000e+00 : f32
    %29 = vector.broadcast %cst_15 : f32 to vector<8x128xf32>
    %30 = arith.addf %29, %28 : vector<8x128xf32>
    %31 = arith.divf %29, %30 : vector<8x128xf32>
    %32 = vector.extract_strided_slice %20 {offsets = [0, 128], sizes = [8, 128], strides = [1, 1]} : vector<8x384xf32> to vector<8x128xf32>
    %33 = vector.extract_strided_slice %23 {offsets = [0, 128], sizes = [8, 128], strides = [1, 1]} : vector<8x384xf32> to vector<8x128xf32>
    %34 = arith.addf %32, %33 : vector<8x128xf32>
    %35 = arith.negf %34 : vector<8x128xf32>
    %36 = math.exp %35 : vector<8x128xf32>
    %cst_16 = arith.constant 1.000000e+00 : f32
    %37 = vector.broadcast %cst_16 : f32 to vector<8x128xf32>
    %38 = arith.addf %37, %36 : vector<8x128xf32>
    %39 = arith.divf %37, %38 : vector<8x128xf32>
    %40 = vector.extract_strided_slice %20 {offsets = [0, 256], sizes = [8, 128], strides = [1, 1]} : vector<8x384xf32> to vector<8x128xf32>
    %41 = vector.extract_strided_slice %23 {offsets = [0, 256], sizes = [8, 128], strides = [1, 1]} : vector<8x384xf32> to vector<8x128xf32>
    %42 = arith.addf %41, %12 : vector<8x128xf32>
    %43 = arith.mulf %31, %42 : vector<8x128xf32>
    %44 = arith.addf %40, %43 : vector<8x128xf32>
    %45 = math.tanh %44 : vector<8x128xf32>
    %cst_17 = arith.constant 1.000000e+00 : f32
    %46 = vector.broadcast %cst_17 : f32 to vector<8x128xf32>
    %47 = arith.subf %46, %39 : vector<8x128xf32>
    %48 = arith.mulf %47, %45 : vector<8x128xf32>
    %49 = arith.mulf %39, %16 : vector<8x128xf32>
    %50 = arith.addf %48, %49 : vector<8x128xf32>
    %51 = arith.truncf %50 : vector<8x128xf32> to vector<8x128xbf16>
    %c128 = arith.constant 128 : index
    %c0_18 = arith.constant 0 : index
    %52 = vector.load %arg3[%c128, %c0_18] : memref<384x384xbf16, #tpu.memory_space<vmem>>, vector<128x384xbf16>
    %cst_19 = arith.constant dense<0.000000e+00> : vector<8x384xf32>
    %53 = tpu.matmul %51, %52, %cst_19 {dimension_numbers = #tpu.dot_dimension_numbers<[1], [0], [0], [1], [0, 0, 1, 1], [], []>} : vector<8x128xbf16>, vector<128x384xbf16>, vector<8x384xf32> -> vector<8x384xf32>
    %54 = arith.addf %53, %9 : vector<8x384xf32>
    %55 = arith.truncf %16 : vector<8x128xf32> to vector<8x128xbf16>
    %c256 = arith.constant 256 : index
    %c0_20 = arith.constant 0 : index
    %56 = vector.load %arg3[%c256, %c0_20] : memref<384x384xbf16, #tpu.memory_space<vmem>>, vector<128x384xbf16>
    %cst_21 = arith.constant dense<0.000000e+00> : vector<8x384xf32>
    %57 = tpu.matmul %55, %56, %cst_21 {dimension_numbers = #tpu.dot_dimension_numbers<[1], [0], [0], [1], [0, 0, 1, 1], [], []>} : vector<8x128xbf16>, vector<128x384xbf16>, vector<8x384xf32> -> vector<8x384xf32>
    %58 = vector.extract_strided_slice %54 {offsets = [0, 0], sizes = [8, 128], strides = [1, 1]} : vector<8x384xf32> to vector<8x128xf32>
    %59 = vector.extract_strided_slice %57 {offsets = [0, 0], sizes = [8, 128], strides = [1, 1]} : vector<8x384xf32> to vector<8x128xf32>
    %60 = arith.addf %58, %59 : vector<8x128xf32>
    %61 = arith.negf %60 : vector<8x128xf32>
    %62 = math.exp %61 : vector<8x128xf32>
    %cst_22 = arith.constant 1.000000e+00 : f32
    %63 = vector.broadcast %cst_22 : f32 to vector<8x128xf32>
    %64 = arith.addf %63, %62 : vector<8x128xf32>
    %65 = arith.divf %63, %64 : vector<8x128xf32>
    %66 = vector.extract_strided_slice %54 {offsets = [0, 128], sizes = [8, 128], strides = [1, 1]} : vector<8x384xf32> to vector<8x128xf32>
    %67 = vector.extract_strided_slice %57 {offsets = [0, 128], sizes = [8, 128], strides = [1, 1]} : vector<8x384xf32> to vector<8x128xf32>
    %68 = arith.addf %66, %67 : vector<8x128xf32>
    %69 = arith.negf %68 : vector<8x128xf32>
    %70 = math.exp %69 : vector<8x128xf32>
    %cst_23 = arith.constant 1.000000e+00 : f32
    %71 = vector.broadcast %cst_23 : f32 to vector<8x128xf32>
    %72 = arith.addf %71, %70 : vector<8x128xf32>
    %73 = arith.divf %71, %72 : vector<8x128xf32>
    %74 = vector.extract_strided_slice %54 {offsets = [0, 256], sizes = [8, 128], strides = [1, 1]} : vector<8x384xf32> to vector<8x128xf32>
    %75 = vector.extract_strided_slice %57 {offsets = [0, 256], sizes = [8, 128], strides = [1, 1]} : vector<8x384xf32> to vector<8x128xf32>
    %76 = arith.addf %75, %15 : vector<8x128xf32>
    %77 = arith.mulf %65, %76 : vector<8x128xf32>
    %78 = arith.addf %74, %77 : vector<8x128xf32>
    %79 = math.tanh %78 : vector<8x128xf32>
    %cst_24 = arith.constant 1.000000e+00 : f32
    %80 = vector.broadcast %cst_24 : f32 to vector<8x128xf32>
    %81 = arith.subf %80, %73 : vector<8x128xf32>
    %82 = arith.mulf %81, %79 : vector<8x128xf32>
    %83 = arith.mulf %73, %16 : vector<8x128xf32>
    %84 = arith.addf %82, %83 : vector<8x128xf32>
    %85 = arith.index_cast %18 : i32 to index
    %c0_25 = arith.constant 0 : index
    %86 = vector.load %arg1[%85, %c0_25] : memref<64x1xf32, #tpu.memory_space<vmem>>, vector<8x1xf32>
    %87 = vector.broadcast %86 : vector<8x1xf32> to vector<8x128xf32>
    %88 = arith.mulf %87, %84 : vector<8x128xf32>
    %89 = arith.addf %16, %88 : vector<8x128xf32>
    %c1_i32 = arith.constant 1 : i32
    %c8_i32_26 = arith.constant 8 : i32
    %90 = arith.muli %c1_i32, %c8_i32_26 : i32
    %91 = tpu.assume_multiple %90, 8 : i32
    %92 = arith.index_cast %91 : i32 to index
    %c0_27 = arith.constant 0 : index
    %93 = vector.load %arg7[%92, %c0_27] : memref<64x384xf32, #tpu.memory_space<vmem>>, vector<8x384xf32>
    %94 = arith.truncf %50 : vector<8x128xf32> to vector<8x128xbf16>
    %c0_28 = arith.constant 0 : index
    %c0_29 = arith.constant 0 : index
    %95 = vector.load %arg3[%c0_28, %c0_29] : memref<384x384xbf16, #tpu.memory_space<vmem>>, vector<128x384xbf16>
    %cst_30 = arith.constant dense<0.000000e+00> : vector<8x384xf32>
    %96 = tpu.matmul %94, %95, %cst_30 {dimension_numbers = #tpu.dot_dimension_numbers<[1], [0], [0], [1], [0, 0, 1, 1], [], []>} : vector<8x128xbf16>, vector<128x384xbf16>, vector<8x384xf32> -> vector<8x384xf32>
    %97 = vector.extract_strided_slice %93 {offsets = [0, 0], sizes = [8, 128], strides = [1, 1]} : vector<8x384xf32> to vector<8x128xf32>
    %98 = vector.extract_strided_slice %96 {offsets = [0, 0], sizes = [8, 128], strides = [1, 1]} : vector<8x384xf32> to vector<8x128xf32>
    %99 = arith.addf %97, %98 : vector<8x128xf32>
    %100 = arith.negf %99 : vector<8x128xf32>
    %101 = math.exp %100 : vector<8x128xf32>
    %cst_31 = arith.constant 1.000000e+00 : f32
    %102 = vector.broadcast %cst_31 : f32 to vector<8x128xf32>
    %103 = arith.addf %102, %101 : vector<8x128xf32>
    %104 = arith.divf %102, %103 : vector<8x128xf32>
    %105 = vector.extract_strided_slice %93 {offsets = [0, 128], sizes = [8, 128], strides = [1, 1]} : vector<8x384xf32> to vector<8x128xf32>
    %106 = vector.extract_strided_slice %96 {offsets = [0, 128], sizes = [8, 128], strides = [1, 1]} : vector<8x384xf32> to vector<8x128xf32>
    %107 = arith.addf %105, %106 : vector<8x128xf32>
    %108 = arith.negf %107 : vector<8x128xf32>
    %109 = math.exp %108 : vector<8x128xf32>
    %cst_32 = arith.constant 1.000000e+00 : f32
    %110 = vector.broadcast %cst_32 : f32 to vector<8x128xf32>
    %111 = arith.addf %110, %109 : vector<8x128xf32>
    %112 = arith.divf %110, %111 : vector<8x128xf32>
    %113 = vector.extract_strided_slice %93 {offsets = [0, 256], sizes = [8, 128], strides = [1, 1]} : vector<8x384xf32> to vector<8x128xf32>
    %114 = vector.extract_strided_slice %96 {offsets = [0, 256], sizes = [8, 128], strides = [1, 1]} : vector<8x384xf32> to vector<8x128xf32>
    %115 = arith.addf %114, %12 : vector<8x128xf32>
    %116 = arith.mulf %104, %115 : vector<8x128xf32>
    %117 = arith.addf %113, %116 : vector<8x128xf32>
    %118 = math.tanh %117 : vector<8x128xf32>
    %cst_33 = arith.constant 1.000000e+00 : f32
    %119 = vector.broadcast %cst_33 : f32 to vector<8x128xf32>
    %120 = arith.subf %119, %112 : vector<8x128xf32>
    %121 = arith.mulf %120, %118 : vector<8x128xf32>
    %122 = arith.mulf %112, %50 : vector<8x128xf32>
    %123 = arith.addf %121, %122 : vector<8x128xf32>
    %124 = arith.truncf %123 : vector<8x128xf32> to vector<8x128xbf16>
    %c128_34 = arith.constant 128 : index
    %c0_35 = arith.constant 0 : index
    %125 = vector.load %arg3[%c128_34, %c0_35] : memref<384x384xbf16, #tpu.memory_space<vmem>>, vector<128x384xbf16>
    %cst_36 = arith.constant dense<0.000000e+00> : vector<8x384xf32>
    %126 = tpu.matmul %124, %125, %cst_36 {dimension_numbers = #tpu.dot_dimension_numbers<[1], [0], [0], [1], [0, 0, 1, 1], [], []>} : vector<8x128xbf16>, vector<128x384xbf16>, vector<8x384xf32> -> vector<8x384xf32>
    %127 = arith.addf %126, %9 : vector<8x384xf32>
    %128 = arith.truncf %84 : vector<8x128xf32> to vector<8x128xbf16>
    %c256_37 = arith.constant 256 : index
    %c0_38 = arith.constant 0 : index
    %129 = vector.load %arg3[%c256_37, %c0_38] : memref<384x384xbf16, #tpu.memory_space<vmem>>, vector<128x384xbf16>
    %cst_39 = arith.constant dense<0.000000e+00> : vector<8x384xf32>
    %130 = tpu.matmul %128, %129, %cst_39 {dimension_numbers = #tpu.dot_dimension_numbers<[1], [0], [0], [1], [0, 0, 1, 1], [], []>} : vector<8x128xbf16>, vector<128x384xbf16>, vector<8x384xf32> -> vector<8x384xf32>
    %131 = vector.extract_strided_slice %127 {offsets = [0, 0], sizes = [8, 128], strides = [1, 1]} : vector<8x384xf32> to vector<8x128xf32>
    %132 = vector.extract_strided_slice %130 {offsets = [0, 0], sizes = [8, 128], strides = [1, 1]} : vector<8x384xf32> to vector<8x128xf32>
    %133 = arith.addf %131, %132 : vector<8x128xf32>
    %134 = arith.negf %133 : vector<8x128xf32>
    %135 = math.exp %134 : vector<8x128xf32>
    %cst_40 = arith.constant 1.000000e+00 : f32
    %136 = vector.broadcast %cst_40 : f32 to vector<8x128xf32>
    %137 = arith.addf %136, %135 : vector<8x128xf32>
    %138 = arith.divf %136, %137 : vector<8x128xf32>
    %139 = vector.extract_strided_slice %127 {offsets = [0, 128], sizes = [8, 128], strides = [1, 1]} : vector<8x384xf32> to vector<8x128xf32>
    %140 = vector.extract_strided_slice %130 {offsets = [0, 128], sizes = [8, 128], strides = [1, 1]} : vector<8x384xf32> to vector<8x128xf32>
    %141 = arith.addf %139, %140 : vector<8x128xf32>
    %142 = arith.negf %141 : vector<8x128xf32>
    %143 = math.exp %142 : vector<8x128xf32>
    %cst_41 = arith.constant 1.000000e+00 : f32
    %144 = vector.broadcast %cst_41 : f32 to vector<8x128xf32>
    %145 = arith.addf %144, %143 : vector<8x128xf32>
    %146 = arith.divf %144, %145 : vector<8x128xf32>
    %147 = vector.extract_strided_slice %127 {offsets = [0, 256], sizes = [8, 128], strides = [1, 1]} : vector<8x384xf32> to vector<8x128xf32>
    %148 = vector.extract_strided_slice %130 {offsets = [0, 256], sizes = [8, 128], strides = [1, 1]} : vector<8x384xf32> to vector<8x128xf32>
    %149 = arith.addf %148, %15 : vector<8x128xf32>
    %150 = arith.mulf %138, %149 : vector<8x128xf32>
    %151 = arith.addf %147, %150 : vector<8x128xf32>
    %152 = math.tanh %151 : vector<8x128xf32>
    %cst_42 = arith.constant 1.000000e+00 : f32
    %153 = vector.broadcast %cst_42 : f32 to vector<8x128xf32>
    %154 = arith.subf %153, %146 : vector<8x128xf32>
    %155 = arith.mulf %154, %152 : vector<8x128xf32>
    %156 = arith.mulf %146, %84 : vector<8x128xf32>
    %157 = arith.addf %155, %156 : vector<8x128xf32>
    %158 = arith.index_cast %91 : i32 to index
    %c0_43 = arith.constant 0 : index
    %159 = vector.load %arg1[%158, %c0_43] : memref<64x1xf32, #tpu.memory_space<vmem>>, vector<8x1xf32>
    %160 = vector.broadcast %159 : vector<8x1xf32> to vector<8x128xf32>
    %161 = arith.mulf %160, %157 : vector<8x128xf32>
    %162 = arith.addf %89, %161 : vector<8x128xf32>
    %c2_i32 = arith.constant 2 : i32
    %c8_i32_44 = arith.constant 8 : i32
    %163 = arith.muli %c2_i32, %c8_i32_44 : i32
    %164 = tpu.assume_multiple %163, 8 : i32
    %165 = arith.index_cast %164 : i32 to index
    %c0_45 = arith.constant 0 : index
    %166 = vector.load %arg7[%165, %c0_45] : memref<64x384xf32, #tpu.memory_space<vmem>>, vector<8x384xf32>
    %167 = arith.truncf %123 : vector<8x128xf32> to vector<8x128xbf16>
    %c0_46 = arith.constant 0 : index
    %c0_47 = arith.constant 0 : index
    %168 = vector.load %arg3[%c0_46, %c0_47] : memref<384x384xbf16, #tpu.memory_space<vmem>>, vector<128x384xbf16>
    %cst_48 = arith.constant dense<0.000000e+00> : vector<8x384xf32>
    %169 = tpu.matmul %167, %168, %cst_48 {dimension_numbers = #tpu.dot_dimension_numbers<[1], [0], [0], [1], [0, 0, 1, 1], [], []>} : vector<8x128xbf16>, vector<128x384xbf16>, vector<8x384xf32> -> vector<8x384xf32>
    %170 = vector.extract_strided_slice %166 {offsets = [0, 0], sizes = [8, 128], strides = [1, 1]} : vector<8x384xf32> to vector<8x128xf32>
    %171 = vector.extract_strided_slice %169 {offsets = [0, 0], sizes = [8, 128], strides = [1, 1]} : vector<8x384xf32> to vector<8x128xf32>
    %172 = arith.addf %170, %171 : vector<8x128xf32>
    %173 = arith.negf %172 : vector<8x128xf32>
    %174 = math.exp %173 : vector<8x128xf32>
    %cst_49 = arith.constant 1.000000e+00 : f32
    %175 = vector.broadcast %cst_49 : f32 to vector<8x128xf32>
    %176 = arith.addf %175, %174 : vector<8x128xf32>
    %177 = arith.divf %175, %176 : vector<8x128xf32>
    %178 = vector.extract_strided_slice %166 {offsets = [0, 128], sizes = [8, 128], strides = [1, 1]} : vector<8x384xf32> to vector<8x128xf32>
    %179 = vector.extract_strided_slice %169 {offsets = [0, 128], sizes = [8, 128], strides = [1, 1]} : vector<8x384xf32> to vector<8x128xf32>
    %180 = arith.addf %178, %179 : vector<8x128xf32>
    %181 = arith.negf %180 : vector<8x128xf32>
    %182 = math.exp %181 : vector<8x128xf32>
    %cst_50 = arith.constant 1.000000e+00 : f32
    %183 = vector.broadcast %cst_50 : f32 to vector<8x128xf32>
    %184 = arith.addf %183, %182 : vector<8x128xf32>
    %185 = arith.divf %183, %184 : vector<8x128xf32>
    %186 = vector.extract_strided_slice %166 {offsets = [0, 256], sizes = [8, 128], strides = [1, 1]} : vector<8x384xf32> to vector<8x128xf32>
    %187 = vector.extract_strided_slice %169 {offsets = [0, 256], sizes = [8, 128], strides = [1, 1]} : vector<8x384xf32> to vector<8x128xf32>
    %188 = arith.addf %187, %12 : vector<8x128xf32>
    %189 = arith.mulf %177, %188 : vector<8x128xf32>
    %190 = arith.addf %186, %189 : vector<8x128xf32>
    %191 = math.tanh %190 : vector<8x128xf32>
    %cst_51 = arith.constant 1.000000e+00 : f32
    %192 = vector.broadcast %cst_51 : f32 to vector<8x128xf32>
    %193 = arith.subf %192, %185 : vector<8x128xf32>
    %194 = arith.mulf %193, %191 : vector<8x128xf32>
    %195 = arith.mulf %185, %123 : vector<8x128xf32>
    %196 = arith.addf %194, %195 : vector<8x128xf32>
    %197 = arith.truncf %196 : vector<8x128xf32> to vector<8x128xbf16>
    %c128_52 = arith.constant 128 : index
    %c0_53 = arith.constant 0 : index
    %198 = vector.load %arg3[%c128_52, %c0_53] : memref<384x384xbf16, #tpu.memory_space<vmem>>, vector<128x384xbf16>
    %cst_54 = arith.constant dense<0.000000e+00> : vector<8x384xf32>
    %199 = tpu.matmul %197, %198, %cst_54 {dimension_numbers = #tpu.dot_dimension_numbers<[1], [0], [0], [1], [0, 0, 1, 1], [], []>} : vector<8x128xbf16>, vector<128x384xbf16>, vector<8x384xf32> -> vector<8x384xf32>
    %200 = arith.addf %199, %9 : vector<8x384xf32>
    %201 = arith.truncf %157 : vector<8x128xf32> to vector<8x128xbf16>
    %c256_55 = arith.constant 256 : index
    %c0_56 = arith.constant 0 : index
    %202 = vector.load %arg3[%c256_55, %c0_56] : memref<384x384xbf16, #tpu.memory_space<vmem>>, vector<128x384xbf16>
    %cst_57 = arith.constant dense<0.000000e+00> : vector<8x384xf32>
    %203 = tpu.matmul %201, %202, %cst_57 {dimension_numbers = #tpu.dot_dimension_numbers<[1], [0], [0], [1], [0, 0, 1, 1], [], []>} : vector<8x128xbf16>, vector<128x384xbf16>, vector<8x384xf32> -> vector<8x384xf32>
    %204 = vector.extract_strided_slice %200 {offsets = [0, 0], sizes = [8, 128], strides = [1, 1]} : vector<8x384xf32> to vector<8x128xf32>
    %205 = vector.extract_strided_slice %203 {offsets = [0, 0], sizes = [8, 128], strides = [1, 1]} : vector<8x384xf32> to vector<8x128xf32>
    %206 = arith.addf %204, %205 : vector<8x128xf32>
    %207 = arith.negf %206 : vector<8x128xf32>
    %208 = math.exp %207 : vector<8x128xf32>
    %cst_58 = arith.constant 1.000000e+00 : f32
    %209 = vector.broadcast %cst_58 : f32 to vector<8x128xf32>
    %210 = arith.addf %209, %208 : vector<8x128xf32>
    %211 = arith.divf %209, %210 : vector<8x128xf32>
    %212 = vector.extract_strided_slice %200 {offsets = [0, 128], sizes = [8, 128], strides = [1, 1]} : vector<8x384xf32> to vector<8x128xf32>
    %213 = vector.extract_strided_slice %203 {offsets = [0, 128], sizes = [8, 128], strides = [1, 1]} : vector<8x384xf32> to vector<8x128xf32>
    %214 = arith.addf %212, %213 : vector<8x128xf32>
    %215 = arith.negf %214 : vector<8x128xf32>
    %216 = math.exp %215 : vector<8x128xf32>
    %cst_59 = arith.constant 1.000000e+00 : f32
    %217 = vector.broadcast %cst_59 : f32 to vector<8x128xf32>
    %218 = arith.addf %217, %216 : vector<8x128xf32>
    %219 = arith.divf %217, %218 : vector<8x128xf32>
    %220 = vector.extract_strided_slice %200 {offsets = [0, 256], sizes = [8, 128], strides = [1, 1]} : vector<8x384xf32> to vector<8x128xf32>
    %221 = vector.extract_strided_slice %203 {offsets = [0, 256], sizes = [8, 128], strides = [1, 1]} : vector<8x384xf32> to vector<8x128xf32>
    %222 = arith.addf %221, %15 : vector<8x128xf32>
    %223 = arith.mulf %211, %222 : vector<8x128xf32>
    %224 = arith.addf %220, %223 : vector<8x128xf32>
    %225 = math.tanh %224 : vector<8x128xf32>
    %cst_60 = arith.constant 1.000000e+00 : f32
    %226 = vector.broadcast %cst_60 : f32 to vector<8x128xf32>
    %227 = arith.subf %226, %219 : vector<8x128xf32>
    %228 = arith.mulf %227, %225 : vector<8x128xf32>
    %229 = arith.mulf %219, %157 : vector<8x128xf32>
    %230 = arith.addf %228, %229 : vector<8x128xf32>
    %231 = arith.index_cast %164 : i32 to index
    %c0_61 = arith.constant 0 : index
    %232 = vector.load %arg1[%231, %c0_61] : memref<64x1xf32, #tpu.memory_space<vmem>>, vector<8x1xf32>
    %233 = vector.broadcast %232 : vector<8x1xf32> to vector<8x128xf32>
    %234 = arith.mulf %233, %230 : vector<8x128xf32>
    %235 = arith.addf %162, %234 : vector<8x128xf32>
    %c3_i32 = arith.constant 3 : i32
    %c8_i32_62 = arith.constant 8 : i32
    %236 = arith.muli %c3_i32, %c8_i32_62 : i32
    %237 = tpu.assume_multiple %236, 8 : i32
    %238 = arith.index_cast %237 : i32 to index
    %c0_63 = arith.constant 0 : index
    %239 = vector.load %arg7[%238, %c0_63] : memref<64x384xf32, #tpu.memory_space<vmem>>, vector<8x384xf32>
    %240 = arith.truncf %196 : vector<8x128xf32> to vector<8x128xbf16>
    %c0_64 = arith.constant 0 : index
    %c0_65 = arith.constant 0 : index
    %241 = vector.load %arg3[%c0_64, %c0_65] : memref<384x384xbf16, #tpu.memory_space<vmem>>, vector<128x384xbf16>
    %cst_66 = arith.constant dense<0.000000e+00> : vector<8x384xf32>
    %242 = tpu.matmul %240, %241, %cst_66 {dimension_numbers = #tpu.dot_dimension_numbers<[1], [0], [0], [1], [0, 0, 1, 1], [], []>} : vector<8x128xbf16>, vector<128x384xbf16>, vector<8x384xf32> -> vector<8x384xf32>
    %243 = vector.extract_strided_slice %239 {offsets = [0, 0], sizes = [8, 128], strides = [1, 1]} : vector<8x384xf32> to vector<8x128xf32>
    %244 = vector.extract_strided_slice %242 {offsets = [0, 0], sizes = [8, 128], strides = [1, 1]} : vector<8x384xf32> to vector<8x128xf32>
    %245 = arith.addf %243, %244 : vector<8x128xf32>
    %246 = arith.negf %245 : vector<8x128xf32>
    %247 = math.exp %246 : vector<8x128xf32>
    %cst_67 = arith.constant 1.000000e+00 : f32
    %248 = vector.broadcast %cst_67 : f32 to vector<8x128xf32>
    %249 = arith.addf %248, %247 : vector<8x128xf32>
    %250 = arith.divf %248, %249 : vector<8x128xf32>
    %251 = vector.extract_strided_slice %239 {offsets = [0, 128], sizes = [8, 128], strides = [1, 1]} : vector<8x384xf32> to vector<8x128xf32>
    %252 = vector.extract_strided_slice %242 {offsets = [0, 128], sizes = [8, 128], strides = [1, 1]} : vector<8x384xf32> to vector<8x128xf32>
    %253 = arith.addf %251, %252 : vector<8x128xf32>
    %254 = arith.negf %253 : vector<8x128xf32>
    %255 = math.exp %254 : vector<8x128xf32>
    %cst_68 = arith.constant 1.000000e+00 : f32
    %256 = vector.broadcast %cst_68 : f32 to vector<8x128xf32>
    %257 = arith.addf %256, %255 : vector<8x128xf32>
    %258 = arith.divf %256, %257 : vector<8x128xf32>
    %259 = vector.extract_strided_slice %239 {offsets = [0, 256], sizes = [8, 128], strides = [1, 1]} : vector<8x384xf32> to vector<8x128xf32>
    %260 = vector.extract_strided_slice %242 {offsets = [0, 256], sizes = [8, 128], strides = [1, 1]} : vector<8x384xf32> to vector<8x128xf32>
    %261 = arith.addf %260, %12 : vector<8x128xf32>
    %262 = arith.mulf %250, %261 : vector<8x128xf32>
    %263 = arith.addf %259, %262 : vector<8x128xf32>
    %264 = math.tanh %263 : vector<8x128xf32>
    %cst_69 = arith.constant 1.000000e+00 : f32
    %265 = vector.broadcast %cst_69 : f32 to vector<8x128xf32>
    %266 = arith.subf %265, %258 : vector<8x128xf32>
    %267 = arith.mulf %266, %264 : vector<8x128xf32>
    %268 = arith.mulf %258, %196 : vector<8x128xf32>
    %269 = arith.addf %267, %268 : vector<8x128xf32>
    %270 = arith.truncf %269 : vector<8x128xf32> to vector<8x128xbf16>
    %c128_70 = arith.constant 128 : index
    %c0_71 = arith.constant 0 : index
    %271 = vector.load %arg3[%c128_70, %c0_71] : memref<384x384xbf16, #tpu.memory_space<vmem>>, vector<128x384xbf16>
    %cst_72 = arith.constant dense<0.000000e+00> : vector<8x384xf32>
    %272 = tpu.matmul %270, %271, %cst_72 {dimension_numbers = #tpu.dot_dimension_numbers<[1], [0], [0], [1], [0, 0, 1, 1], [], []>} : vector<8x128xbf16>, vector<128x384xbf16>, vector<8x384xf32> -> vector<8x384xf32>
    %273 = arith.addf %272, %9 : vector<8x384xf32>
    %274 = arith.truncf %230 : vector<8x128xf32> to vector<8x128xbf16>
    %c256_73 = arith.constant 256 : index
    %c0_74 = arith.constant 0 : index
    %275 = vector.load %arg3[%c256_73, %c0_74] : memref<384x384xbf16, #tpu.memory_space<vmem>>, vector<128x384xbf16>
    %cst_75 = arith.constant dense<0.000000e+00> : vector<8x384xf32>
    %276 = tpu.matmul %274, %275, %cst_75 {dimension_numbers = #tpu.dot_dimension_numbers<[1], [0], [0], [1], [0, 0, 1, 1], [], []>} : vector<8x128xbf16>, vector<128x384xbf16>, vector<8x384xf32> -> vector<8x384xf32>
    %277 = vector.extract_strided_slice %273 {offsets = [0, 0], sizes = [8, 128], strides = [1, 1]} : vector<8x384xf32> to vector<8x128xf32>
    %278 = vector.extract_strided_slice %276 {offsets = [0, 0], sizes = [8, 128], strides = [1, 1]} : vector<8x384xf32> to vector<8x128xf32>
    %279 = arith.addf %277, %278 : vector<8x128xf32>
    %280 = arith.negf %279 : vector<8x128xf32>
    %281 = math.exp %280 : vector<8x128xf32>
    %cst_76 = arith.constant 1.000000e+00 : f32
    %282 = vector.broadcast %cst_76 : f32 to vector<8x128xf32>
    %283 = arith.addf %282, %281 : vector<8x128xf32>
    %284 = arith.divf %282, %283 : vector<8x128xf32>
    %285 = vector.extract_strided_slice %273 {offsets = [0, 128], sizes = [8, 128], strides = [1, 1]} : vector<8x384xf32> to vector<8x128xf32>
    %286 = vector.extract_strided_slice %276 {offsets = [0, 128], sizes = [8, 128], strides = [1, 1]} : vector<8x384xf32> to vector<8x128xf32>
    %287 = arith.addf %285, %286 : vector<8x128xf32>
    %288 = arith.negf %287 : vector<8x128xf32>
    %289 = math.exp %288 : vector<8x128xf32>
    %cst_77 = arith.constant 1.000000e+00 : f32
    %290 = vector.broadcast %cst_77 : f32 to vector<8x128xf32>
    %291 = arith.addf %290, %289 : vector<8x128xf32>
    %292 = arith.divf %290, %291 : vector<8x128xf32>
    %293 = vector.extract_strided_slice %273 {offsets = [0, 256], sizes = [8, 128], strides = [1, 1]} : vector<8x384xf32> to vector<8x128xf32>
    %294 = vector.extract_strided_slice %276 {offsets = [0, 256], sizes = [8, 128], strides = [1, 1]} : vector<8x384xf32> to vector<8x128xf32>
    %295 = arith.addf %294, %15 : vector<8x128xf32>
    %296 = arith.mulf %284, %295 : vector<8x128xf32>
    %297 = arith.addf %293, %296 : vector<8x128xf32>
    %298 = math.tanh %297 : vector<8x128xf32>
    %cst_78 = arith.constant 1.000000e+00 : f32
    %299 = vector.broadcast %cst_78 : f32 to vector<8x128xf32>
    %300 = arith.subf %299, %292 : vector<8x128xf32>
    %301 = arith.mulf %300, %298 : vector<8x128xf32>
    %302 = arith.mulf %292, %230 : vector<8x128xf32>
    %303 = arith.addf %301, %302 : vector<8x128xf32>
    %304 = arith.index_cast %237 : i32 to index
    %c0_79 = arith.constant 0 : index
    %305 = vector.load %arg1[%304, %c0_79] : memref<64x1xf32, #tpu.memory_space<vmem>>, vector<8x1xf32>
    %306 = vector.broadcast %305 : vector<8x1xf32> to vector<8x128xf32>
    %307 = arith.mulf %306, %303 : vector<8x128xf32>
    %308 = arith.addf %235, %307 : vector<8x128xf32>
    %c4_i32 = arith.constant 4 : i32
    %c8_i32_80 = arith.constant 8 : i32
    %309 = arith.muli %c4_i32, %c8_i32_80 : i32
    %310 = tpu.assume_multiple %309, 8 : i32
    %311 = arith.index_cast %310 : i32 to index
    %c0_81 = arith.constant 0 : index
    %312 = vector.load %arg7[%311, %c0_81] : memref<64x384xf32, #tpu.memory_space<vmem>>, vector<8x384xf32>
    %313 = arith.truncf %269 : vector<8x128xf32> to vector<8x128xbf16>
    %c0_82 = arith.constant 0 : index
    %c0_83 = arith.constant 0 : index
    %314 = vector.load %arg3[%c0_82, %c0_83] : memref<384x384xbf16, #tpu.memory_space<vmem>>, vector<128x384xbf16>
    %cst_84 = arith.constant dense<0.000000e+00> : vector<8x384xf32>
    %315 = tpu.matmul %313, %314, %cst_84 {dimension_numbers = #tpu.dot_dimension_numbers<[1], [0], [0], [1], [0, 0, 1, 1], [], []>} : vector<8x128xbf16>, vector<128x384xbf16>, vector<8x384xf32> -> vector<8x384xf32>
    %316 = vector.extract_strided_slice %312 {offsets = [0, 0], sizes = [8, 128], strides = [1, 1]} : vector<8x384xf32> to vector<8x128xf32>
    %317 = vector.extract_strided_slice %315 {offsets = [0, 0], sizes = [8, 128], strides = [1, 1]} : vector<8x384xf32> to vector<8x128xf32>
    %318 = arith.addf %316, %317 : vector<8x128xf32>
    %319 = arith.negf %318 : vector<8x128xf32>
    %320 = math.exp %319 : vector<8x128xf32>
    %cst_85 = arith.constant 1.000000e+00 : f32
    %321 = vector.broadcast %cst_85 : f32 to vector<8x128xf32>
    %322 = arith.addf %321, %320 : vector<8x128xf32>
    %323 = arith.divf %321, %322 : vector<8x128xf32>
    %324 = vector.extract_strided_slice %312 {offsets = [0, 128], sizes = [8, 128], strides = [1, 1]} : vector<8x384xf32> to vector<8x128xf32>
    %325 = vector.extract_strided_slice %315 {offsets = [0, 128], sizes = [8, 128], strides = [1, 1]} : vector<8x384xf32> to vector<8x128xf32>
    %326 = arith.addf %324, %325 : vector<8x128xf32>
    %327 = arith.negf %326 : vector<8x128xf32>
    %328 = math.exp %327 : vector<8x128xf32>
    %cst_86 = arith.constant 1.000000e+00 : f32
    %329 = vector.broadcast %cst_86 : f32 to vector<8x128xf32>
    %330 = arith.addf %329, %328 : vector<8x128xf32>
    %331 = arith.divf %329, %330 : vector<8x128xf32>
    %332 = vector.extract_strided_slice %312 {offsets = [0, 256], sizes = [8, 128], strides = [1, 1]} : vector<8x384xf32> to vector<8x128xf32>
    %333 = vector.extract_strided_slice %315 {offsets = [0, 256], sizes = [8, 128], strides = [1, 1]} : vector<8x384xf32> to vector<8x128xf32>
    %334 = arith.addf %333, %12 : vector<8x128xf32>
    %335 = arith.mulf %323, %334 : vector<8x128xf32>
    %336 = arith.addf %332, %335 : vector<8x128xf32>
    %337 = math.tanh %336 : vector<8x128xf32>
    %cst_87 = arith.constant 1.000000e+00 : f32
    %338 = vector.broadcast %cst_87 : f32 to vector<8x128xf32>
    %339 = arith.subf %338, %331 : vector<8x128xf32>
    %340 = arith.mulf %339, %337 : vector<8x128xf32>
    %341 = arith.mulf %331, %269 : vector<8x128xf32>
    %342 = arith.addf %340, %341 : vector<8x128xf32>
    %343 = arith.truncf %342 : vector<8x128xf32> to vector<8x128xbf16>
    %c128_88 = arith.constant 128 : index
    %c0_89 = arith.constant 0 : index
    %344 = vector.load %arg3[%c128_88, %c0_89] : memref<384x384xbf16, #tpu.memory_space<vmem>>, vector<128x384xbf16>
    %cst_90 = arith.constant dense<0.000000e+00> : vector<8x384xf32>
    %345 = tpu.matmul %343, %344, %cst_90 {dimension_numbers = #tpu.dot_dimension_numbers<[1], [0], [0], [1], [0, 0, 1, 1], [], []>} : vector<8x128xbf16>, vector<128x384xbf16>, vector<8x384xf32> -> vector<8x384xf32>
    %346 = arith.addf %345, %9 : vector<8x384xf32>
    %347 = arith.truncf %303 : vector<8x128xf32> to vector<8x128xbf16>
    %c256_91 = arith.constant 256 : index
    %c0_92 = arith.constant 0 : index
    %348 = vector.load %arg3[%c256_91, %c0_92] : memref<384x384xbf16, #tpu.memory_space<vmem>>, vector<128x384xbf16>
    %cst_93 = arith.constant dense<0.000000e+00> : vector<8x384xf32>
    %349 = tpu.matmul %347, %348, %cst_93 {dimension_numbers = #tpu.dot_dimension_numbers<[1], [0], [0], [1], [0, 0, 1, 1], [], []>} : vector<8x128xbf16>, vector<128x384xbf16>, vector<8x384xf32> -> vector<8x384xf32>
    %350 = vector.extract_strided_slice %346 {offsets = [0, 0], sizes = [8, 128], strides = [1, 1]} : vector<8x384xf32> to vector<8x128xf32>
    %351 = vector.extract_strided_slice %349 {offsets = [0, 0], sizes = [8, 128], strides = [1, 1]} : vector<8x384xf32> to vector<8x128xf32>
    %352 = arith.addf %350, %351 : vector<8x128xf32>
    %353 = arith.negf %352 : vector<8x128xf32>
    %354 = math.exp %353 : vector<8x128xf32>
    %cst_94 = arith.constant 1.000000e+00 : f32
    %355 = vector.broadcast %cst_94 : f32 to vector<8x128xf32>
    %356 = arith.addf %355, %354 : vector<8x128xf32>
    %357 = arith.divf %355, %356 : vector<8x128xf32>
    %358 = vector.extract_strided_slice %346 {offsets = [0, 128], sizes = [8, 128], strides = [1, 1]} : vector<8x384xf32> to vector<8x128xf32>
    %359 = vector.extract_strided_slice %349 {offsets = [0, 128], sizes = [8, 128], strides = [1, 1]} : vector<8x384xf32> to vector<8x128xf32>
    %360 = arith.addf %358, %359 : vector<8x128xf32>
    %361 = arith.negf %360 : vector<8x128xf32>
    %362 = math.exp %361 : vector<8x128xf32>
    %cst_95 = arith.constant 1.000000e+00 : f32
    %363 = vector.broadcast %cst_95 : f32 to vector<8x128xf32>
    %364 = arith.addf %363, %362 : vector<8x128xf32>
    %365 = arith.divf %363, %364 : vector<8x128xf32>
    %366 = vector.extract_strided_slice %346 {offsets = [0, 256], sizes = [8, 128], strides = [1, 1]} : vector<8x384xf32> to vector<8x128xf32>
    %367 = vector.extract_strided_slice %349 {offsets = [0, 256], sizes = [8, 128], strides = [1, 1]} : vector<8x384xf32> to vector<8x128xf32>
    %368 = arith.addf %367, %15 : vector<8x128xf32>
    %369 = arith.mulf %357, %368 : vector<8x128xf32>
    %370 = arith.addf %366, %369 : vector<8x128xf32>
    %371 = math.tanh %370 : vector<8x128xf32>
    %cst_96 = arith.constant 1.000000e+00 : f32
    %372 = vector.broadcast %cst_96 : f32 to vector<8x128xf32>
    %373 = arith.subf %372, %365 : vector<8x128xf32>
    %374 = arith.mulf %373, %371 : vector<8x128xf32>
    %375 = arith.mulf %365, %303 : vector<8x128xf32>
    %376 = arith.addf %374, %375 : vector<8x128xf32>
    %377 = arith.index_cast %310 : i32 to index
    %c0_97 = arith.constant 0 : index
    %378 = vector.load %arg1[%377, %c0_97] : memref<64x1xf32, #tpu.memory_space<vmem>>, vector<8x1xf32>
    %379 = vector.broadcast %378 : vector<8x1xf32> to vector<8x128xf32>
    %380 = arith.mulf %379, %376 : vector<8x128xf32>
    %381 = arith.addf %308, %380 : vector<8x128xf32>
    %c5_i32 = arith.constant 5 : i32
    %c8_i32_98 = arith.constant 8 : i32
    %382 = arith.muli %c5_i32, %c8_i32_98 : i32
    %383 = tpu.assume_multiple %382, 8 : i32
    %384 = arith.index_cast %383 : i32 to index
    %c0_99 = arith.constant 0 : index
    %385 = vector.load %arg7[%384, %c0_99] : memref<64x384xf32, #tpu.memory_space<vmem>>, vector<8x384xf32>
    %386 = arith.truncf %342 : vector<8x128xf32> to vector<8x128xbf16>
    %c0_100 = arith.constant 0 : index
    %c0_101 = arith.constant 0 : index
    %387 = vector.load %arg3[%c0_100, %c0_101] : memref<384x384xbf16, #tpu.memory_space<vmem>>, vector<128x384xbf16>
    %cst_102 = arith.constant dense<0.000000e+00> : vector<8x384xf32>
    %388 = tpu.matmul %386, %387, %cst_102 {dimension_numbers = #tpu.dot_dimension_numbers<[1], [0], [0], [1], [0, 0, 1, 1], [], []>} : vector<8x128xbf16>, vector<128x384xbf16>, vector<8x384xf32> -> vector<8x384xf32>
    %389 = vector.extract_strided_slice %385 {offsets = [0, 0], sizes = [8, 128], strides = [1, 1]} : vector<8x384xf32> to vector<8x128xf32>
    %390 = vector.extract_strided_slice %388 {offsets = [0, 0], sizes = [8, 128], strides = [1, 1]} : vector<8x384xf32> to vector<8x128xf32>
    %391 = arith.addf %389, %390 : vector<8x128xf32>
    %392 = arith.negf %391 : vector<8x128xf32>
    %393 = math.exp %392 : vector<8x128xf32>
    %cst_103 = arith.constant 1.000000e+00 : f32
    %394 = vector.broadcast %cst_103 : f32 to vector<8x128xf32>
    %395 = arith.addf %394, %393 : vector<8x128xf32>
    %396 = arith.divf %394, %395 : vector<8x128xf32>
    %397 = vector.extract_strided_slice %385 {offsets = [0, 128], sizes = [8, 128], strides = [1, 1]} : vector<8x384xf32> to vector<8x128xf32>
    %398 = vector.extract_strided_slice %388 {offsets = [0, 128], sizes = [8, 128], strides = [1, 1]} : vector<8x384xf32> to vector<8x128xf32>
    %399 = arith.addf %397, %398 : vector<8x128xf32>
    %400 = arith.negf %399 : vector<8x128xf32>
    %401 = math.exp %400 : vector<8x128xf32>
    %cst_104 = arith.constant 1.000000e+00 : f32
    %402 = vector.broadcast %cst_104 : f32 to vector<8x128xf32>
    %403 = arith.addf %402, %401 : vector<8x128xf32>
    %404 = arith.divf %402, %403 : vector<8x128xf32>
    %405 = vector.extract_strided_slice %385 {offsets = [0, 256], sizes = [8, 128], strides = [1, 1]} : vector<8x384xf32> to vector<8x128xf32>
    %406 = vector.extract_strided_slice %388 {offsets = [0, 256], sizes = [8, 128], strides = [1, 1]} : vector<8x384xf32> to vector<8x128xf32>
    %407 = arith.addf %406, %12 : vector<8x128xf32>
    %408 = arith.mulf %396, %407 : vector<8x128xf32>
    %409 = arith.addf %405, %408 : vector<8x128xf32>
    %410 = math.tanh %409 : vector<8x128xf32>
    %cst_105 = arith.constant 1.000000e+00 : f32
    %411 = vector.broadcast %cst_105 : f32 to vector<8x128xf32>
    %412 = arith.subf %411, %404 : vector<8x128xf32>
    %413 = arith.mulf %412, %410 : vector<8x128xf32>
    %414 = arith.mulf %404, %342 : vector<8x128xf32>
    %415 = arith.addf %413, %414 : vector<8x128xf32>
    %416 = arith.truncf %415 : vector<8x128xf32> to vector<8x128xbf16>
    %c128_106 = arith.constant 128 : index
    %c0_107 = arith.constant 0 : index
    %417 = vector.load %arg3[%c128_106, %c0_107] : memref<384x384xbf16, #tpu.memory_space<vmem>>, vector<128x384xbf16>
    %cst_108 = arith.constant dense<0.000000e+00> : vector<8x384xf32>
    %418 = tpu.matmul %416, %417, %cst_108 {dimension_numbers = #tpu.dot_dimension_numbers<[1], [0], [0], [1], [0, 0, 1, 1], [], []>} : vector<8x128xbf16>, vector<128x384xbf16>, vector<8x384xf32> -> vector<8x384xf32>
    %419 = arith.addf %418, %9 : vector<8x384xf32>
    %420 = arith.truncf %376 : vector<8x128xf32> to vector<8x128xbf16>
    %c256_109 = arith.constant 256 : index
    %c0_110 = arith.constant 0 : index
    %421 = vector.load %arg3[%c256_109, %c0_110] : memref<384x384xbf16, #tpu.memory_space<vmem>>, vector<128x384xbf16>
    %cst_111 = arith.constant dense<0.000000e+00> : vector<8x384xf32>
    %422 = tpu.matmul %420, %421, %cst_111 {dimension_numbers = #tpu.dot_dimension_numbers<[1], [0], [0], [1], [0, 0, 1, 1], [], []>} : vector<8x128xbf16>, vector<128x384xbf16>, vector<8x384xf32> -> vector<8x384xf32>
    %423 = vector.extract_strided_slice %419 {offsets = [0, 0], sizes = [8, 128], strides = [1, 1]} : vector<8x384xf32> to vector<8x128xf32>
    %424 = vector.extract_strided_slice %422 {offsets = [0, 0], sizes = [8, 128], strides = [1, 1]} : vector<8x384xf32> to vector<8x128xf32>
    %425 = arith.addf %423, %424 : vector<8x128xf32>
    %426 = arith.negf %425 : vector<8x128xf32>
    %427 = math.exp %426 : vector<8x128xf32>
    %cst_112 = arith.constant 1.000000e+00 : f32
    %428 = vector.broadcast %cst_112 : f32 to vector<8x128xf32>
    %429 = arith.addf %428, %427 : vector<8x128xf32>
    %430 = arith.divf %428, %429 : vector<8x128xf32>
    %431 = vector.extract_strided_slice %419 {offsets = [0, 128], sizes = [8, 128], strides = [1, 1]} : vector<8x384xf32> to vector<8x128xf32>
    %432 = vector.extract_strided_slice %422 {offsets = [0, 128], sizes = [8, 128], strides = [1, 1]} : vector<8x384xf32> to vector<8x128xf32>
    %433 = arith.addf %431, %432 : vector<8x128xf32>
    %434 = arith.negf %433 : vector<8x128xf32>
    %435 = math.exp %434 : vector<8x128xf32>
    %cst_113 = arith.constant 1.000000e+00 : f32
    %436 = vector.broadcast %cst_113 : f32 to vector<8x128xf32>
    %437 = arith.addf %436, %435 : vector<8x128xf32>
    %438 = arith.divf %436, %437 : vector<8x128xf32>
    %439 = vector.extract_strided_slice %419 {offsets = [0, 256], sizes = [8, 128], strides = [1, 1]} : vector<8x384xf32> to vector<8x128xf32>
    %440 = vector.extract_strided_slice %422 {offsets = [0, 256], sizes = [8, 128], strides = [1, 1]} : vector<8x384xf32> to vector<8x128xf32>
    %441 = arith.addf %440, %15 : vector<8x128xf32>
    %442 = arith.mulf %430, %441 : vector<8x128xf32>
    %443 = arith.addf %439, %442 : vector<8x128xf32>
    %444 = math.tanh %443 : vector<8x128xf32>
    %cst_114 = arith.constant 1.000000e+00 : f32
    %445 = vector.broadcast %cst_114 : f32 to vector<8x128xf32>
    %446 = arith.subf %445, %438 : vector<8x128xf32>
    %447 = arith.mulf %446, %444 : vector<8x128xf32>
    %448 = arith.mulf %438, %376 : vector<8x128xf32>
    %449 = arith.addf %447, %448 : vector<8x128xf32>
    %450 = arith.index_cast %383 : i32 to index
    %c0_115 = arith.constant 0 : index
    %451 = vector.load %arg1[%450, %c0_115] : memref<64x1xf32, #tpu.memory_space<vmem>>, vector<8x1xf32>
    %452 = vector.broadcast %451 : vector<8x1xf32> to vector<8x128xf32>
    %453 = arith.mulf %452, %449 : vector<8x128xf32>
    %454 = arith.addf %381, %453 : vector<8x128xf32>
    %c6_i32 = arith.constant 6 : i32
    %c8_i32_116 = arith.constant 8 : i32
    %455 = arith.muli %c6_i32, %c8_i32_116 : i32
    %456 = tpu.assume_multiple %455, 8 : i32
    %457 = arith.index_cast %456 : i32 to index
    %c0_117 = arith.constant 0 : index
    %458 = vector.load %arg7[%457, %c0_117] : memref<64x384xf32, #tpu.memory_space<vmem>>, vector<8x384xf32>
    %459 = arith.truncf %415 : vector<8x128xf32> to vector<8x128xbf16>
    %c0_118 = arith.constant 0 : index
    %c0_119 = arith.constant 0 : index
    %460 = vector.load %arg3[%c0_118, %c0_119] : memref<384x384xbf16, #tpu.memory_space<vmem>>, vector<128x384xbf16>
    %cst_120 = arith.constant dense<0.000000e+00> : vector<8x384xf32>
    %461 = tpu.matmul %459, %460, %cst_120 {dimension_numbers = #tpu.dot_dimension_numbers<[1], [0], [0], [1], [0, 0, 1, 1], [], []>} : vector<8x128xbf16>, vector<128x384xbf16>, vector<8x384xf32> -> vector<8x384xf32>
    %462 = vector.extract_strided_slice %458 {offsets = [0, 0], sizes = [8, 128], strides = [1, 1]} : vector<8x384xf32> to vector<8x128xf32>
    %463 = vector.extract_strided_slice %461 {offsets = [0, 0], sizes = [8, 128], strides = [1, 1]} : vector<8x384xf32> to vector<8x128xf32>
    %464 = arith.addf %462, %463 : vector<8x128xf32>
    %465 = arith.negf %464 : vector<8x128xf32>
    %466 = math.exp %465 : vector<8x128xf32>
    %cst_121 = arith.constant 1.000000e+00 : f32
    %467 = vector.broadcast %cst_121 : f32 to vector<8x128xf32>
    %468 = arith.addf %467, %466 : vector<8x128xf32>
    %469 = arith.divf %467, %468 : vector<8x128xf32>
    %470 = vector.extract_strided_slice %458 {offsets = [0, 128], sizes = [8, 128], strides = [1, 1]} : vector<8x384xf32> to vector<8x128xf32>
    %471 = vector.extract_strided_slice %461 {offsets = [0, 128], sizes = [8, 128], strides = [1, 1]} : vector<8x384xf32> to vector<8x128xf32>
    %472 = arith.addf %470, %471 : vector<8x128xf32>
    %473 = arith.negf %472 : vector<8x128xf32>
    %474 = math.exp %473 : vector<8x128xf32>
    %cst_122 = arith.constant 1.000000e+00 : f32
    %475 = vector.broadcast %cst_122 : f32 to vector<8x128xf32>
    %476 = arith.addf %475, %474 : vector<8x128xf32>
    %477 = arith.divf %475, %476 : vector<8x128xf32>
    %478 = vector.extract_strided_slice %458 {offsets = [0, 256], sizes = [8, 128], strides = [1, 1]} : vector<8x384xf32> to vector<8x128xf32>
    %479 = vector.extract_strided_slice %461 {offsets = [0, 256], sizes = [8, 128], strides = [1, 1]} : vector<8x384xf32> to vector<8x128xf32>
    %480 = arith.addf %479, %12 : vector<8x128xf32>
    %481 = arith.mulf %469, %480 : vector<8x128xf32>
    %482 = arith.addf %478, %481 : vector<8x128xf32>
    %483 = math.tanh %482 : vector<8x128xf32>
    %cst_123 = arith.constant 1.000000e+00 : f32
    %484 = vector.broadcast %cst_123 : f32 to vector<8x128xf32>
    %485 = arith.subf %484, %477 : vector<8x128xf32>
    %486 = arith.mulf %485, %483 : vector<8x128xf32>
    %487 = arith.mulf %477, %415 : vector<8x128xf32>
    %488 = arith.addf %486, %487 : vector<8x128xf32>
    %489 = arith.truncf %488 : vector<8x128xf32> to vector<8x128xbf16>
    %c128_124 = arith.constant 128 : index
    %c0_125 = arith.constant 0 : index
    %490 = vector.load %arg3[%c128_124, %c0_125] : memref<384x384xbf16, #tpu.memory_space<vmem>>, vector<128x384xbf16>
    %cst_126 = arith.constant dense<0.000000e+00> : vector<8x384xf32>
    %491 = tpu.matmul %489, %490, %cst_126 {dimension_numbers = #tpu.dot_dimension_numbers<[1], [0], [0], [1], [0, 0, 1, 1], [], []>} : vector<8x128xbf16>, vector<128x384xbf16>, vector<8x384xf32> -> vector<8x384xf32>
    %492 = arith.addf %491, %9 : vector<8x384xf32>
    %493 = arith.truncf %449 : vector<8x128xf32> to vector<8x128xbf16>
    %c256_127 = arith.constant 256 : index
    %c0_128 = arith.constant 0 : index
    %494 = vector.load %arg3[%c256_127, %c0_128] : memref<384x384xbf16, #tpu.memory_space<vmem>>, vector<128x384xbf16>
    %cst_129 = arith.constant dense<0.000000e+00> : vector<8x384xf32>
    %495 = tpu.matmul %493, %494, %cst_129 {dimension_numbers = #tpu.dot_dimension_numbers<[1], [0], [0], [1], [0, 0, 1, 1], [], []>} : vector<8x128xbf16>, vector<128x384xbf16>, vector<8x384xf32> -> vector<8x384xf32>
    %496 = vector.extract_strided_slice %492 {offsets = [0, 0], sizes = [8, 128], strides = [1, 1]} : vector<8x384xf32> to vector<8x128xf32>
    %497 = vector.extract_strided_slice %495 {offsets = [0, 0], sizes = [8, 128], strides = [1, 1]} : vector<8x384xf32> to vector<8x128xf32>
    %498 = arith.addf %496, %497 : vector<8x128xf32>
    %499 = arith.negf %498 : vector<8x128xf32>
    %500 = math.exp %499 : vector<8x128xf32>
    %cst_130 = arith.constant 1.000000e+00 : f32
    %501 = vector.broadcast %cst_130 : f32 to vector<8x128xf32>
    %502 = arith.addf %501, %500 : vector<8x128xf32>
    %503 = arith.divf %501, %502 : vector<8x128xf32>
    %504 = vector.extract_strided_slice %492 {offsets = [0, 128], sizes = [8, 128], strides = [1, 1]} : vector<8x384xf32> to vector<8x128xf32>
    %505 = vector.extract_strided_slice %495 {offsets = [0, 128], sizes = [8, 128], strides = [1, 1]} : vector<8x384xf32> to vector<8x128xf32>
    %506 = arith.addf %504, %505 : vector<8x128xf32>
    %507 = arith.negf %506 : vector<8x128xf32>
    %508 = math.exp %507 : vector<8x128xf32>
    %cst_131 = arith.constant 1.000000e+00 : f32
    %509 = vector.broadcast %cst_131 : f32 to vector<8x128xf32>
    %510 = arith.addf %509, %508 : vector<8x128xf32>
    %511 = arith.divf %509, %510 : vector<8x128xf32>
    %512 = vector.extract_strided_slice %492 {offsets = [0, 256], sizes = [8, 128], strides = [1, 1]} : vector<8x384xf32> to vector<8x128xf32>
    %513 = vector.extract_strided_slice %495 {offsets = [0, 256], sizes = [8, 128], strides = [1, 1]} : vector<8x384xf32> to vector<8x128xf32>
    %514 = arith.addf %513, %15 : vector<8x128xf32>
    %515 = arith.mulf %503, %514 : vector<8x128xf32>
    %516 = arith.addf %512, %515 : vector<8x128xf32>
    %517 = math.tanh %516 : vector<8x128xf32>
    %cst_132 = arith.constant 1.000000e+00 : f32
    %518 = vector.broadcast %cst_132 : f32 to vector<8x128xf32>
    %519 = arith.subf %518, %511 : vector<8x128xf32>
    %520 = arith.mulf %519, %517 : vector<8x128xf32>
    %521 = arith.mulf %511, %449 : vector<8x128xf32>
    %522 = arith.addf %520, %521 : vector<8x128xf32>
    %523 = arith.index_cast %456 : i32 to index
    %c0_133 = arith.constant 0 : index
    %524 = vector.load %arg1[%523, %c0_133] : memref<64x1xf32, #tpu.memory_space<vmem>>, vector<8x1xf32>
    %525 = vector.broadcast %524 : vector<8x1xf32> to vector<8x128xf32>
    %526 = arith.mulf %525, %522 : vector<8x128xf32>
    %527 = arith.addf %454, %526 : vector<8x128xf32>
    %c7_i32 = arith.constant 7 : i32
    %c8_i32_134 = arith.constant 8 : i32
    %528 = arith.muli %c7_i32, %c8_i32_134 : i32
    %529 = tpu.assume_multiple %528, 8 : i32
    %530 = arith.index_cast %529 : i32 to index
    %c0_135 = arith.constant 0 : index
    %531 = vector.load %arg7[%530, %c0_135] : memref<64x384xf32, #tpu.memory_space<vmem>>, vector<8x384xf32>
    %532 = arith.truncf %488 : vector<8x128xf32> to vector<8x128xbf16>
    %c0_136 = arith.constant 0 : index
    %c0_137 = arith.constant 0 : index
    %533 = vector.load %arg3[%c0_136, %c0_137] : memref<384x384xbf16, #tpu.memory_space<vmem>>, vector<128x384xbf16>
    %cst_138 = arith.constant dense<0.000000e+00> : vector<8x384xf32>
    %534 = tpu.matmul %532, %533, %cst_138 {dimension_numbers = #tpu.dot_dimension_numbers<[1], [0], [0], [1], [0, 0, 1, 1], [], []>} : vector<8x128xbf16>, vector<128x384xbf16>, vector<8x384xf32> -> vector<8x384xf32>
    %535 = vector.extract_strided_slice %531 {offsets = [0, 0], sizes = [8, 128], strides = [1, 1]} : vector<8x384xf32> to vector<8x128xf32>
    %536 = vector.extract_strided_slice %534 {offsets = [0, 0], sizes = [8, 128], strides = [1, 1]} : vector<8x384xf32> to vector<8x128xf32>
    %537 = arith.addf %535, %536 : vector<8x128xf32>
    %538 = arith.negf %537 : vector<8x128xf32>
    %539 = math.exp %538 : vector<8x128xf32>
    %cst_139 = arith.constant 1.000000e+00 : f32
    %540 = vector.broadcast %cst_139 : f32 to vector<8x128xf32>
    %541 = arith.addf %540, %539 : vector<8x128xf32>
    %542 = arith.divf %540, %541 : vector<8x128xf32>
    %543 = vector.extract_strided_slice %531 {offsets = [0, 128], sizes = [8, 128], strides = [1, 1]} : vector<8x384xf32> to vector<8x128xf32>
    %544 = vector.extract_strided_slice %534 {offsets = [0, 128], sizes = [8, 128], strides = [1, 1]} : vector<8x384xf32> to vector<8x128xf32>
    %545 = arith.addf %543, %544 : vector<8x128xf32>
    %546 = arith.negf %545 : vector<8x128xf32>
    %547 = math.exp %546 : vector<8x128xf32>
    %cst_140 = arith.constant 1.000000e+00 : f32
    %548 = vector.broadcast %cst_140 : f32 to vector<8x128xf32>
    %549 = arith.addf %548, %547 : vector<8x128xf32>
    %550 = arith.divf %548, %549 : vector<8x128xf32>
    %551 = vector.extract_strided_slice %531 {offsets = [0, 256], sizes = [8, 128], strides = [1, 1]} : vector<8x384xf32> to vector<8x128xf32>
    %552 = vector.extract_strided_slice %534 {offsets = [0, 256], sizes = [8, 128], strides = [1, 1]} : vector<8x384xf32> to vector<8x128xf32>
    %553 = arith.addf %552, %12 : vector<8x128xf32>
    %554 = arith.mulf %542, %553 : vector<8x128xf32>
    %555 = arith.addf %551, %554 : vector<8x128xf32>
    %556 = math.tanh %555 : vector<8x128xf32>
    %cst_141 = arith.constant 1.000000e+00 : f32
    %557 = vector.broadcast %cst_141 : f32 to vector<8x128xf32>
    %558 = arith.subf %557, %550 : vector<8x128xf32>
    %559 = arith.mulf %558, %556 : vector<8x128xf32>
    %560 = arith.mulf %550, %488 : vector<8x128xf32>
    %561 = arith.addf %559, %560 : vector<8x128xf32>
    %562 = arith.truncf %561 : vector<8x128xf32> to vector<8x128xbf16>
    %c128_142 = arith.constant 128 : index
    %c0_143 = arith.constant 0 : index
    %563 = vector.load %arg3[%c128_142, %c0_143] : memref<384x384xbf16, #tpu.memory_space<vmem>>, vector<128x384xbf16>
    %cst_144 = arith.constant dense<0.000000e+00> : vector<8x384xf32>
    %564 = tpu.matmul %562, %563, %cst_144 {dimension_numbers = #tpu.dot_dimension_numbers<[1], [0], [0], [1], [0, 0, 1, 1], [], []>} : vector<8x128xbf16>, vector<128x384xbf16>, vector<8x384xf32> -> vector<8x384xf32>
    %565 = arith.addf %564, %9 : vector<8x384xf32>
    %566 = arith.truncf %522 : vector<8x128xf32> to vector<8x128xbf16>
    %c256_145 = arith.constant 256 : index
    %c0_146 = arith.constant 0 : index
    %567 = vector.load %arg3[%c256_145, %c0_146] : memref<384x384xbf16, #tpu.memory_space<vmem>>, vector<128x384xbf16>
    %cst_147 = arith.constant dense<0.000000e+00> : vector<8x384xf32>
    %568 = tpu.matmul %566, %567, %cst_147 {dimension_numbers = #tpu.dot_dimension_numbers<[1], [0], [0], [1], [0, 0, 1, 1], [], []>} : vector<8x128xbf16>, vector<128x384xbf16>, vector<8x384xf32> -> vector<8x384xf32>
    %569 = vector.extract_strided_slice %565 {offsets = [0, 0], sizes = [8, 128], strides = [1, 1]} : vector<8x384xf32> to vector<8x128xf32>
    %570 = vector.extract_strided_slice %568 {offsets = [0, 0], sizes = [8, 128], strides = [1, 1]} : vector<8x384xf32> to vector<8x128xf32>
    %571 = arith.addf %569, %570 : vector<8x128xf32>
    %572 = arith.negf %571 : vector<8x128xf32>
    %573 = math.exp %572 : vector<8x128xf32>
    %cst_148 = arith.constant 1.000000e+00 : f32
    %574 = vector.broadcast %cst_148 : f32 to vector<8x128xf32>
    %575 = arith.addf %574, %573 : vector<8x128xf32>
    %576 = arith.divf %574, %575 : vector<8x128xf32>
    %577 = vector.extract_strided_slice %565 {offsets = [0, 128], sizes = [8, 128], strides = [1, 1]} : vector<8x384xf32> to vector<8x128xf32>
    %578 = vector.extract_strided_slice %568 {offsets = [0, 128], sizes = [8, 128], strides = [1, 1]} : vector<8x384xf32> to vector<8x128xf32>
    %579 = arith.addf %577, %578 : vector<8x128xf32>
    %580 = arith.negf %579 : vector<8x128xf32>
    %581 = math.exp %580 : vector<8x128xf32>
    %cst_149 = arith.constant 1.000000e+00 : f32
    %582 = vector.broadcast %cst_149 : f32 to vector<8x128xf32>
    %583 = arith.addf %582, %581 : vector<8x128xf32>
    %584 = arith.divf %582, %583 : vector<8x128xf32>
    %585 = vector.extract_strided_slice %565 {offsets = [0, 256], sizes = [8, 128], strides = [1, 1]} : vector<8x384xf32> to vector<8x128xf32>
    %586 = vector.extract_strided_slice %568 {offsets = [0, 256], sizes = [8, 128], strides = [1, 1]} : vector<8x384xf32> to vector<8x128xf32>
    %587 = arith.addf %586, %15 : vector<8x128xf32>
    %588 = arith.mulf %576, %587 : vector<8x128xf32>
    %589 = arith.addf %585, %588 : vector<8x128xf32>
    %590 = math.tanh %589 : vector<8x128xf32>
    %cst_150 = arith.constant 1.000000e+00 : f32
    %591 = vector.broadcast %cst_150 : f32 to vector<8x128xf32>
    %592 = arith.subf %591, %584 : vector<8x128xf32>
    %593 = arith.mulf %592, %590 : vector<8x128xf32>
    %594 = arith.mulf %584, %522 : vector<8x128xf32>
    %595 = arith.addf %593, %594 : vector<8x128xf32>
    %596 = arith.index_cast %529 : i32 to index
    %c0_151 = arith.constant 0 : index
    %597 = vector.load %arg1[%596, %c0_151] : memref<64x1xf32, #tpu.memory_space<vmem>>, vector<8x1xf32>
    %598 = vector.broadcast %597 : vector<8x1xf32> to vector<8x128xf32>
    %599 = arith.mulf %598, %595 : vector<8x128xf32>
    %600 = arith.addf %527, %599 : vector<8x128xf32>
    %c8_i32_152 = arith.constant 8 : i32
    %601 = arith.truncf %600 : vector<8x128xf32> to vector<8x128xbf16>
    %c0_153 = arith.constant 0 : index
    %c0_154 = arith.constant 0 : index
    %602 = vector.load %arg4[%c0_153, %c0_154] : memref<256x128xbf16, #tpu.memory_space<vmem>>, vector<128x128xbf16>
    %cst_155 = arith.constant dense<0.000000e+00> : vector<8x128xf32>
    %603 = tpu.matmul %601, %602, %cst_155 {dimension_numbers = #tpu.dot_dimension_numbers<[1], [0], [0], [1], [0, 0, 1, 1], [], []>} : vector<8x128xbf16>, vector<128x128xbf16>, vector<8x128xf32> -> vector<8x128xf32>
    %c4 = arith.constant 4 : index
    %c0_156 = arith.constant 0 : index
    %604 = vector.load %arg5[%c4, %c0_156] : memref<8x384xf32, #tpu.memory_space<vmem>>, vector<1x128xf32>
    %605 = vector.broadcast %604 : vector<1x128xf32> to vector<8x128xf32>
    %606 = arith.addf %603, %605 : vector<8x128xf32>
    %cst_157 = arith.constant 0.000000e+00 : f32
    %607 = vector.broadcast %cst_157 : f32 to vector<8x128xf32>
    %608 = arith.cmpf oge, %606, %607 : vector<8x128xf32>
    %cst_158 = arith.constant 0.00999999977 : f32
    %609 = vector.broadcast %cst_158 : f32 to vector<8x128xf32>
    %610 = arith.mulf %609, %606 : vector<8x128xf32>
    %611 = arith.select %608, %606, %610 : vector<8x128xi1>, vector<8x128xf32>
    %612 = arith.truncf %611 : vector<8x128xf32> to vector<8x128xbf16>
    %c128_159 = arith.constant 128 : index
    %c0_160 = arith.constant 0 : index
    %613 = vector.load %arg4[%c128_159, %c0_160] : memref<256x128xbf16, #tpu.memory_space<vmem>>, vector<128x128xbf16>
    %cst_161 = arith.constant dense<0.000000e+00> : vector<8x128xf32>
    %614 = tpu.matmul %612, %613, %cst_161 {dimension_numbers = #tpu.dot_dimension_numbers<[1], [0], [0], [1], [0, 0, 1, 1], [], []>} : vector<8x128xbf16>, vector<128x128xbf16>, vector<8x128xf32> -> vector<8x128xf32>
    %c5 = arith.constant 5 : index
    %c0_162 = arith.constant 0 : index
    %615 = vector.load %arg5[%c5, %c0_162] : memref<8x384xf32, #tpu.memory_space<vmem>>, vector<1x128xf32>
    %616 = vector.broadcast %615 : vector<1x128xf32> to vector<8x128xf32>
    %617 = arith.addf %614, %616 : vector<8x128xf32>
    %c0_163 = arith.constant 0 : index
    %c0_164 = arith.constant 0 : index
    %618 = vector.load %arg6[%c0_163, %c0_164] : memref<8x128xf32, #tpu.memory_space<vmem>>, vector<8x128xf32>
    tpu.vector_store %arg6[%c0_163, %c0_164], %617 {strides = array<i32>} : memref<8x128xf32, #tpu.memory_space<vmem>>, vector<8x128xf32>,
    return
  }
}

</mosaic_0001>

<bundles_post_ra>
// kernel: gru_net_forward.1
= control target key start
LH: loop header
LB: loop body
LE: loop exit
PB: predicated region body
PF: predicated region fallthrough
CT: control target
= control target key end

     0   :  { %v7249_v1 = vmov 0   ;;  %vm109_vm0 = vcmask 261120   ;;  %v7251_v20 = vmov 0.0   ;;  %vm4846_vm1 = vmmov 0   ;;  %s7242_s2 = inlined_call_operand.vmem [shape: bf16[32,384], index: 2, kind: input, shape index: {}]   ;;  %s7243_s0 = inlined_call_operand.vmem [shape: bf16[64,32], index: 0, kind: input, shape index: {}]   ;;  %s7244_s3 = inlined_call_operand.vmem [shape: bf16[384,384], index: 3, kind: input, shape index: {}]   ;;  %s7245_s5 = inlined_call_operand.vmem [shape: f32[8,384], index: 5, kind: input, shape index: {}]   ;;  %s7246_s1 = inlined_call_operand.vmem [shape: f32[64,1], index: 1, kind: input, shape index: {}]   ;;  %s7247_s4 = inlined_call_operand.vmem [shape: bf16[256,128], index: 4, kind: input, shape index: {}]   ;;  %s7248_s6 = inlined_call_operand.vmem [shape: f32[8,128], index: 6, kind: output, shape index: {}]  }
   0x1   :  { %v4412_v0 = vld [vmem:[%s7242_s2 + $0x4] ss:$12 sps:$4 sm:$0xff]   ;;  %154 = vmatprep.mubr.bf16.mxu0 %v7249_v1  ;;  %4410 = vset.pattern.permute.xlu0 %v7249_v1  ;;  %v4414_v2 = vld [vmem:[%s7242_s2] ss:$12 sps:$4 sm:$0xff]   ;;  %v4415_v3 = vld [vmem:[%s7242_s2 + $0x1c] ss:$12 sps:$4 sm:$0xff]   ;;  %v42_v61 = vlaneseq }
   0x2   :  { %4411 = vset.pattern.permute.xlu1 %v7249_v1  ;;  %122 = vmatprep.subr.bf16.mxu0 %v4412_v0  ;;  %v4417_v4 = vld [vmem:[%s7242_s2 + $0x18] ss:$12 sps:$4 sm:$0xff]   ;;  %v4909_v7 = vld [vmem:[%s7244_s3] ss:$12 sps:$4 sm:$0xff]   ;;  %v4915_v8 = vld [vmem:[%s7244_s3 + $0x1c] ss:$12 sps:$4 sm:$0xff]  }
   0x3   :  { %123 = vmatpush1.bf16.msra.mxu0 %v4414_v2  ;;  %v4418_v5 = vld [vmem:[%s7243_s0] sm:$0xff]   ;;  %v4433_v10 = vld [vmem:[%s7242_s2 + $0x8] ss:$12 sps:$4 sm:$0xff]   ;;  %v4944_v14 = vld [vmem:[%s7244_s3 + $0x30] ss:$12 sps:$4 sm:$0xff]   ;;  %v5245_v62 = vshrl.u32 %v42_v61, 7 }
   0x4   :  { %124 = vmatprep.subr.bf16.mxu0 %v4415_v3  ;;  %v4903_v6 = vld [vmem:[%s7244_s3 + $0x4] ss:$12 sps:$4 sm:$0xff]   ;;  %3831 = vmatprep.mubr.msk.bf16.mxu1 %vm109_vm0, %v4418_v5  ;;  %v4932_v11 = vld [vmem:[%s7244_s3 + $0x34] ss:$12 sps:$4 sm:$0xff]   ;;  %v4425_v12 = vld [vmem:[%s7243_s0 + $0x8] sm:$0xff]  }
   0x5   :  { %v4921_v9 = vld [vmem:[%s7244_s3 + $0x18] ss:$12 sps:$4 sm:$0xff]   ;;  %3827 = vmatprep.subr.bf16.mxu1 %v4433_v10  ;;  %v4437_v13 = vld [vmem:[%s7242_s2 + $0x20] ss:$12 sps:$4 sm:$0xff]   ;;  %v4955_v16 = vld [vmem:[%s7244_s3 + $0x48] ss:$12 sps:$4 sm:$0xff]  }
   0x6   :  { %3828 = vmatpush3.bf16.msra.mxu1 %v4433_v10  ;;  %v4950_v15 = vld [vmem:[%s7244_s3 + $0x4c] ss:$12 sps:$4 sm:$0xff]   ;;  %v4961_v17 = vld [vmem:[%s7244_s3 + $0x8] ss:$12 sps:$4 sm:$0xff]   ;;  %v4972_v19 = vld [vmem:[%s7244_s3 + $0x64] ss:$12 sps:$4 sm:$0xff]  }
   0x7   :  { %125 = vmatpush1.bf16.msra.mxu0 %v4417_v4  ;;  %3829 = vmatprep.subr.bf16.mxu1 %v4437_v13  ;;  %v4432_v18 = vld [vmem:[%s7243_s0 + $0x10] sm:$0xff]   ;;  %v4980_v21 = vld [vmem:[%s7244_s3 + $0x20] ss:$12 sps:$4 sm:$0xff]   ;;  %v4994_v23 = vld [vmem:[%s7244_s3 + $0x7c] ss:$12 sps:$4 sm:$0xff]   ;;  %7377 = vst [vmem:[#allocation15_spill] sm:$0xff] %v5245_v62 }
   0x8   :  { %470 = vmatprep.subr.bf16.mxu0 %v4903_v6  ;;  %v4987_v22 = vld [vmem:[%s7244_s3 + $0x60] ss:$12 sps:$4 sm:$0xff]   ;;  %v4999_v24 = vld [vmem:[%s7244_s3 + $0x78] ss:$12 sps:$4 sm:$0xff]   ;;  %v5023_v28 = vld [vmem:[%s7244_s3 + $0x50] ss:$12 sps:$4 sm:$0xff]  }
   0x9   :  { %v5006_v25 = vld [vmem:[%s7244_s3 + $0x38] ss:$12 sps:$4 sm:$0xff]   ;;  %v5016_v27 = vld [vmem:[%s7244_s3 + $0x94] ss:$12 sps:$4 sm:$0xff]   ;;  %v5028_v29 = vld [vmem:[%s7244_s3 + $0x90] ss:$12 sps:$4 sm:$0xff]  }
   0xa   :  { %3451 = vmatmul.mubr.msk.bf16.vlgmr.msra.gmra.mrb[0].mxu0 %vm109_vm0, %v4418_v5  ;;  %3830 = vmatpush3.bf16.msra.mxu1 %v4437_v13  ;;  %v4441_v26 = vld [vmem:[%s7243_s0 + $0x18] sm:$0xff]   ;;  %v5045_v31 = vld [vmem:[%s7244_s3 + $0x68] ss:$12 sps:$4 sm:$0xff]   ;;  %v5061_v33 = vld [vmem:[%s7244_s3 + $0x80] ss:$12 sps:$4 sm:$0xff]   ;;  %v7255_v63 = vsub.s32 0, %v5245_v62 }
   0xb   :  { %471 = vmatpush1.bf16.msra.mxu0 %v4909_v7  ;;  %164 = vmatprep.mubr.bf16.mxu0 %v7249_v1  ;;  %v5034_v30 = vld [vmem:[%s7244_s3 + $0xac] ss:$12 sps:$4 sm:$0xff]   ;;  %v5050_v32 = vld [vmem:[%s7244_s3 + $0xa8] ss:$12 sps:$4 sm:$0xff]   ;;  %v5078_v35 = vld [vmem:[%s7244_s3 + $0xb0] ss:$12 sps:$4 sm:$0xff]  }
   0xc   :  { %472 = vmatprep.subr.bf16.mxu0 %v4915_v8  ;;  %3839 = vmatprep.subr.bf16.mxu1 %v7251_v20  ;;  %v5069_v34 = vld [vmem:[%s7244_s3 + $0x98] ss:$12 sps:$4 sm:$0xff]   ;;  %v5095_v37 = vld [vmem:[%s7244_s3 + $0xc0] ss:$12 sps:$4 sm:$0xff]   ;;  %v5100_v38 = vld [vmem:[%s7244_s3 + $0xc8] ss:$12 sps:$4 sm:$0xff]  }
   0xd   :  { %3832 = vmatmul.mubr.msk.bf16.vlgmr.msra.gmra.mrb[0].mxu1 %vm109_vm0, %v4425_v12  ;;  %v5090_v36 = vld [vmem:[%s7244_s3 + $0xc4] ss:$12 sps:$4 sm:$0xff]   ;;  %v5108_v39 = vld [vmem:[%s7244_s3 + $0xdc] ss:$12 sps:$4 sm:$0xff]   ;;  %v5119_v41 = vld [vmem:[%s7244_s3 + $0xe0] ss:$12 sps:$4 sm:$0xff]  }
   0xe   :  { %3840 = vmatpush3.bf16.msra.mxu1 %v4961_v17  ;;  %3835 = vmatprep.mubr.msk.bf16.mxu1 %vm109_vm0, %v4432_v18  ;;  %v5114_v40 = vld [vmem:[%s7244_s3 + $0xd8] ss:$12 sps:$4 sm:$0xff]   ;;  %v5127_v42 = vld [vmem:[%s7244_s3 + $0xf4] ss:$12 sps:$4 sm:$0xff]   ;;  %v5133_v43 = vld [vmem:[%s7244_s3 + $0xf0] ss:$12 sps:$4 sm:$0xff]  }
   0xf   :  { %473 = vmatpush1.bf16.msra.mxu0 %v4921_v9  ;;  %3841 = vmatprep.subr.bf16.mxu1 %v7251_v20  ;;  %v5138_v44 = vld [vmem:[%s7244_s3 + $0xf8] ss:$12 sps:$4 sm:$0xff]   ;;  %v5152_v46 = vld [vmem:[%s7244_s3 + $0x108] ss:$12 sps:$4 sm:$0xff]   ;;  %v5157_v47 = vld [vmem:[%s7244_s3 + $0x110] ss:$12 sps:$4 sm:$0xff]  }
  0x10   :  { %474 = vmatprep.subr.bf16.mxu0 %v4932_v11  ;;  %v5146_v45 = vld [vmem:[%s7244_s3 + $0x10c] ss:$12 sps:$4 sm:$0xff]   ;;  %v5165_v48 = vld [vmem:[%s7244_s3 + $0x124] ss:$12 sps:$4 sm:$0xff]   ;;  %v5176_v50 = vld [vmem:[%s7244_s3 + $0x128] ss:$12 sps:$4 sm:$0xff]  }
  0x11   :  { %v5171_v49 = vld [vmem:[%s7244_s3 + $0x120] ss:$12 sps:$4 sm:$0xff]   ;;  %7366 = vst [vmem:[#allocation4_spill] sm:$0xff] %v5176_v50  ;;  %v5182_v51 = vld [vmem:[%s7244_s3 + $0x13c] ss:$12 sps:$4 sm:$0xff]   ;;  %v7260_v2 = vsub.s32 1, %v5245_v62 }
  0x12   :  { %3452 = vmatmul.mubr.msk.bf16.gmra.mrb[4].mxu0 %vm109_vm0, %v4425_v12  ;;  %3842 = vmatpush3.bf16.msra.mxu1 %v4980_v21  ;;  %7365 = vst [vmem:[#allocation3_spill] sm:$0xff] %v5171_v49  ;;  %7367 = vst [vmem:[#allocation5_spill] sm:$0xff] %v5182_v51  ;;  %v5189_v52 = vld [vmem:[%s7244_s3 + $0x138] ss:$12 sps:$4 sm:$0xff]   ;;  %v5194_v53 = vld [vmem:[%s7244_s3 + $0x140] ss:$12 sps:$4 sm:$0xff]  }
  0x13   :  { %475 = vmatpush1.bf16.msra.mxu0 %v4944_v14  ;;  %174 = vmatprep.mubr.bf16.mxu0 %v7249_v1  ;;  %7368 = vst [vmem:[#allocation6_spill] sm:$0xff] %v5189_v52  ;;  %7369 = vst [vmem:[#allocation7_spill] sm:$0xff] %v5194_v53  ;;  %v5201_v54 = vld [vmem:[%s7244_s3 + $0x154] ss:$12 sps:$4 sm:$0xff]   ;;  %v5208_v55 = vld [vmem:[%s7244_s3 + $0x150] ss:$12 sps:$4 sm:$0xff]  }
  0x14   :  { %476 = vmatprep.subr.bf16.mxu0 %v4950_v15  ;;  %3843 = vmatprep.subr.bf16.mxu1 %v7251_v20  ;;  %7370 = vst [vmem:[#allocation8_spill] sm:$0xff] %v5201_v54  ;;  %7371 = vst [vmem:[#allocation9_spill] sm:$0xff] %v5208_v55  ;;  %v5213_v56 = vld [vmem:[%s7244_s3 + $0x158] ss:$12 sps:$4 sm:$0xff]   ;;  %v5227_v58 = vld [vmem:[%s7244_s3 + $0x168] ss:$12 sps:$4 sm:$0xff]  }
  0x15   :  { %3836 = vmatmul.mubr.msk.bf16.gmra.mrb[4].mxu1 %vm109_vm0, %v4441_v26  ;;  %7372 = vst [vmem:[#allocation10_spill] sm:$0xff] %v5213_v56  ;;  %v5220_v57 = vld [vmem:[%s7244_s3 + $0x16c] ss:$12 sps:$4 sm:$0xff]   ;;  %7374 = vst [vmem:[#allocation12_spill] sm:$0xff] %v5227_v58  ;;  %v5232_v59 = vld [vmem:[%s7244_s3 + $0x170] ss:$12 sps:$4 sm:$0xff]  }
  0x16   :  { %3844 = vmatpush3.bf16.msra.mxu1 %v5006_v25  ;;  %3855 = vmatprep.mubr.msk.bf16.mxu1 %vm4846_vm1, %v7251_v20  ;;  %7373 = vst [vmem:[#allocation11_spill] sm:$0xff] %v5220_v57  ;;  %7375 = vst [vmem:[#allocation13_spill] sm:$0xff] %v5232_v59  ;;  %v5239_v60 = vld [vmem:[%s7244_s3 + $0x184] ss:$12 sps:$4 sm:$0xff]   ;;  %v7265_v61 = vsub.s32 2, %v5245_v62 }
  0x17   :  { %477 = vmatpush1.bf16.msra.mxu0 %v4955_v16  ;;  %3845 = vmatprep.subr.bf16.mxu1 %v7251_v20  ;;  %7376 = vst [vmem:[#allocation14_spill] sm:$0xff] %v5239_v60  ;;  %v40_v0 = vld [vmem:[%s7245_s5] ss:$8 sm:$0x7] }
  0x18   :  { %478 = vmatprep.subr.bf16.mxu0 %v4972_v19  ;;  %v45_v4 = vrot.slane %v40_v0, %v7255_v63  ;;  %v49_v10 = vrot.slane %v40_v0, %v7260_v2 }
  0x1a   :  { %3453 = vmatmul.mubr.msk.bf16.gmra.mrb[8].mxu0 %vm109_vm0, %v4432_v18  ;;  %3846 = vmatpush3.bf16.msra.mxu1 %v5023_v28 }
  0x1b   :  { %479 = vmatpush1.bf16.msra.mxu0 %v4987_v22  ;;  %184 = vmatprep.mubr.bf16.mxu0 %v7249_v1 }
  0x1c   :  { %480 = vmatprep.subr.bf16.mxu0 %v4994_v23  ;;  %3847 = vmatprep.subr.bf16.mxu1 %v7251_v20 }
  0x1e   :  { %3848 = vmatpush3.bf16.msra.mxu1 %v5045_v31 }
  0x1f   :  { %481 = vmatpush1.bf16.msra.mxu0 %v4999_v24  ;;  %3849 = vmatprep.subr.bf16.mxu1 %v7251_v20 }
  0x20   :  { %482 = vmatprep.subr.bf16.mxu0 %v5016_v27 }
  0x22   :  { %3454 = vmatmul.mubr.msk.bf16.gmra.mrb[12].mxu0 %vm109_vm0, %v4441_v26  ;;  %3850 = vmatpush3.bf16.msra.mxu1 %v5061_v33 }
  0x23   :  { %483 = vmatpush1.bf16.msra.mxu0 %v5028_v29  ;;  %502 = vmatprep.mubr.bf16.mxu0 %v7249_v1 }
  0x24   :  { %484 = vmatprep.subr.bf16.mxu0 %v5034_v30  ;;  %3851 = vmatprep.subr.bf16.mxu1 %v7251_v20 }
  0x26   :  { %3852 = vmatpush3.bf16.msra.mxu1 %v5069_v34 }
  0x27   :  { %485 = vmatpush1.bf16.msra.mxu0 %v5050_v32  ;;  %3853 = vmatprep.subr.bf16.mxu1 %v7251_v20 }
  0x28   :  { %734 = vmatprep.subr.bf16.mxu0 %v5090_v36 }
  0x2a   :  { %503 = vmatmul.mubr.bf16.vlgmr.msra.gmra.mrb[16].mxu0 %v7249_v1  ;;  %3854 = vmatpush3.bf16.msra.mxu1 %v5078_v35 }
  0x2b   :  { %766 = vmatprep.mubr.bf16.mxu0 %v7249_v1  ;;  %3859 = vmatprep.subr.bf16.mxu1 %v7251_v20 }
  0x2c   :  { %735 = vmatpush1.bf16.msra.mxu0 %v5095_v37 }
  0x2d   :  { %3856 = vmatmul.mubr.bf16.vlgmr.msra.gmra.mrb[8].mxu1 %v7249_v1  ;;  %736 = vmatprep.subr.bf16.mxu0 %v5108_v39 }
  0x2e   :  { %3875 = vmatprep.mubr.msk.bf16.mxu1 %vm4846_vm1, %v7251_v20  ;;  %3860 = vmatpush3.bf16.msra.mxu1 %v5100_v38 }
  0x2f   :  { %3861 = vmatprep.subr.bf16.mxu1 %v7251_v20 }
  0x30   :  { %737 = vmatpush1.bf16.msra.mxu0 %v5114_v40 }
  0x31   :  { %738 = vmatprep.subr.bf16.mxu0 %v5127_v42 }
  0x32   :  { %3862 = vmatpush3.bf16.msra.mxu1 %v5119_v41 }
  0x33   :  { %3863 = vmatprep.subr.bf16.mxu1 %v7251_v20 }
  0x34   :  { %739 = vmatpush1.bf16.msra.mxu0 %v5133_v43 }
  0x35   :  { %740 = vmatprep.subr.bf16.mxu0 %v5146_v45 }
  0x36   :  { %3864 = vmatpush3.bf16.msra.mxu1 %v5138_v44 }
  0x37   :  { %3865 = vmatprep.subr.bf16.mxu1 %v7251_v20 }
  0x38   :  { %741 = vmatpush1.bf16.msra.mxu0 %v5152_v46 }
  0x39   :  { %742 = vmatprep.subr.bf16.mxu0 %v5165_v48 }
  0x3a   :  { %3866 = vmatpush3.bf16.msra.mxu1 %v5157_v47 }
  0x3b   :  { %3867 = vmatprep.subr.bf16.mxu1 %v7251_v20 }
  0x3c   :  { %743 = vmatpush1.bf16.msra.mxu0 %v5171_v49 }
  0x3d   :  { %744 = vmatprep.subr.bf16.mxu0 %v5182_v51 }
  0x3e   :  { %3868 = vmatpush3.bf16.msra.mxu1 %v5176_v50 }
  0x3f   :  { %3869 = vmatprep.subr.bf16.mxu1 %v7251_v20 }
  0x40   :  { %745 = vmatpush1.bf16.msra.mxu0 %v5189_v52 }
  0x41   :  { %746 = vmatprep.subr.bf16.mxu0 %v5201_v54 }
  0x42   :  { %3870 = vmatpush3.bf16.msra.mxu1 %v5194_v53 }
  0x43   :  { %3871 = vmatprep.subr.bf16.mxu1 %v7251_v20 }
  0x44   :  { %747 = vmatpush1.bf16.msra.mxu0 %v5208_v55 }
  0x45   :  { %748 = vmatprep.subr.bf16.mxu0 %v5220_v57 }
  0x46   :  { %3872 = vmatpush3.bf16.msra.mxu1 %v5213_v56 }
  0x47   :  { %3873 = vmatprep.subr.bf16.mxu1 %v7251_v20 }
  0x48   :  { %749 = vmatpush1.bf16.msra.mxu0 %v5227_v58 }
  0x49   :  { %975 = vmatprep.subr.bf16.mxu0 %v5239_v60 }
  0x4a   :  { %3874 = vmatpush3.bf16.msra.mxu1 %v5232_v59 }
  0x4b   :  { %3879 = vmatprep.subr.bf16.mxu1 %v7251_v20  ;;  %v5263_v20 = vrot.slane %v40_v0, %v7265_v61 }
  0xdd   :  { %v156_v3 = vpop.f32.mrb[0].mxu0 }
  0xde   :  { %v158_v5 = vpop.f32.mrb[1].mxu0 }
  0xdf   :  { %v160_v12 = vpop.f32.mrb[2].mxu0  ;;  %v159_v62 = vadd.f32 %v158_v5, %v49_v10 }
  0xe0   :  { %v5256_v13 = vadd.f32 %v160_v12, %v45_v4  ;;  %v162_v18 = vpop.f32.mrb[3].mxu0 }
  0xe1   :  { %v5258_v26 = vadd.f32 %v162_v18, %v49_v10 }
  0xe2   :  { %7378 = vst [vmem:[#allocation16_spill] sm:$0xff] %v5256_v13  ;;  %v3833_v13 = vpop.f32.mrb[0].mxu1 }
  0xe3   :  { %7379 = vst [vmem:[#allocation17_spill] sm:$0xff] %v5258_v26  ;;  %v5274_v18 = vadd.f32 %v3833_v13, %v5263_v20  ;;  %v229_v26 = vpop.f32.mrb[1].mxu1 }
  0xe4   :  { %v3834_v56 = vpop.f32.mrb[2].mxu1 }
  0xe5   :  { %v166_v1 = vpop.f32.mrb[4].mxu0  ;;  %7384 = vst [vmem:[#allocation22_spill] sm:$0xff] %v5274_v18  ;;  %v5277_v0 = vadd.f32 %v3834_v56, %v5263_v20  ;;  %v1078_v56 = vld [vmem:[%s7246_s1] sm:$0xff] }
  0xe6   :  { %v5265_v60 = vadd.f32 %v166_v1, %v45_v4  ;;  %v168_v63 = vpop.f32.mrb[5].mxu0  ;;  %v232_v1 = vpop.f32.mrb[3].mxu1  ;;  %1081 = vperm.xlu0 %4410, %v1078_v56  }
  0xe7   :  { %v5267_v59 = vadd.f32 %v168_v63, %v49_v10  ;;  %v170_v58 = vpop.f32.mrb[6].mxu0  ;;  %7385 = vst [vmem:[#allocation23_spill] sm:$0xff] %v5277_v0  ;;  %v5280_v61 = vadd.f32 %v232_v1, %v5263_v20 }
  0xe8   :  { %7380 = vst [vmem:[#allocation18_spill] sm:$0xff] %v5265_v60  ;;  %v5269_v2 = vadd.f32 %v170_v58, %v45_v4  ;;  %v172_v12 = vpop.f32.mrb[7].mxu0  ;;  %v3837_v18 = vpop.f32.mrb[4].mxu1 }
  0xe9   :  { %7381 = vst [vmem:[#allocation19_spill] sm:$0xff] %v5267_v59  ;;  %v5271_v57 = vadd.f32 %v172_v12, %v49_v10  ;;  %7386 = vst [vmem:[#allocation24_spill] sm:$0xff] %v5280_v61  ;;  %v5294_v1 = vadd.f32 %v3837_v18, %v5263_v20  ;;  %v245_v60 = vpop.f32.mrb[5].mxu1 }
  0xea   :  { %7382 = vst [vmem:[#allocation20_spill] sm:$0xff] %v5269_v2 }
  0xeb   :  { %7383 = vst [vmem:[#allocation21_spill] sm:$0xff] %v5271_v57  ;;  %7391 = vst [vmem:[#allocation29_spill] sm:$0xff] %v5294_v1 }
  0xed   :  { %v176_v63 = vpop.f32.mrb[8].mxu0 }
  0xee   :  { %v5282_v59 = vadd.f32 %v176_v63, %v45_v4  ;;  %v178_v58 = vpop.f32.mrb[9].mxu0  ;;  %v5297_v63 = vadd.f32 %v245_v60, %v5263_v20 }
  0xef   :  { %v5284_v2 = vadd.f32 %v178_v58, %v49_v10  ;;  %v180_v12 = vpop.f32.mrb[10].mxu0  ;;  %v3838_v58 = vpop.f32.mrb[6].mxu1 }
  0xf0   :  { %7387 = vst [vmem:[#allocation25_spill] sm:$0xff] %v5282_v59  ;;  %v5286_v57 = vadd.f32 %v180_v12, %v45_v4  ;;  %v182_v13 = vpop.f32.mrb[11].mxu0  ;;  %7392 = vst [vmem:[#allocation30_spill] sm:$0xff] %v5297_v63  ;;  %v5300_v12 = vadd.f32 %v3838_v58, %v5263_v20  ;;  %v157_v63 = vadd.f32 %v156_v3, %v45_v4  ;;  %v5316_v3 = vld [vmem:[%s7245_s5 + $0x2] ss:$0 sm:$0xff] }
  0xf1   :  { %7388 = vst [vmem:[#allocation26_spill] sm:$0xff] %v5284_v2  ;;  %v5291_v0 = vadd.f32 %v182_v13, %v49_v10 }
  0xf2   :  { %7389 = vst [vmem:[#allocation27_spill] sm:$0xff] %v5286_v57  ;;  %7393 = vst [vmem:[#allocation31_spill] sm:$0xff] %v5300_v12  ;;  %v248_v57 = vpop.f32.mrb[7].mxu1 }
  0xf3   :  { %7390 = vst [vmem:[#allocation28_spill] sm:$0xff] %v5291_v0  ;;  %v5303_v2 = vadd.f32 %v248_v57, %v5263_v20 }
  0xf5   :  { %7394 = vst [vmem:[#allocation32_spill] sm:$0xff] %v5303_v2  ;;  %v186_v59 = vpop.f32.mrb[12].mxu0 }
  0xf6   :  { %v5305_v61 = vadd.f32 %v186_v59, %v45_v4  ;;  %v188_v13 = vpop.f32.mrb[13].mxu0 }
  0xf7   :  { %v5307_v0 = vadd.f32 %v188_v13, %v49_v10  ;;  %v190_v18 = vpop.f32.mrb[14].mxu0 }
  0xf8   :  { %7395 = vst [vmem:[#allocation33_spill] sm:$0xff] %v5305_v61  ;;  %v5309_v1 = vadd.f32 %v190_v18, %v45_v4  ;;  %v192_v56 = vpop.f32.mrb[15].mxu0 }
  0xf9   :  { %7396 = vst [vmem:[#allocation34_spill] sm:$0xff] %v5307_v0  ;;  %v5311_v60 = vadd.f32 %v192_v56, %v49_v10 }
  0xfa   :  { %7397 = vst [vmem:[#allocation35_spill] sm:$0xff] %v5309_v1 }
  0xfb   :  { %7398 = vst [vmem:[#allocation36_spill] sm:$0xff] %v5311_v60  ;;  %v5446_v60 = vld [vmem:[%s7244_s3 + $0x210] ss:$12 sps:$4 sm:$0xff]  }
  0xfd   :  { %v504_v58 = vpop.f32.mrb[16].mxu0 }
  0xfe   :  { %v551_v12 = vadd.f32 %v504_v58, %v157_v63  ;;  %v506_v55 = vpop.f32.mrb[17].mxu0  ;;  %v5348_v58 = vld [vmem:[%s7244_s3 + $0x198] ss:$12 sps:$4 sm:$0xff]  }
  0xff   :  { %v558_v54 = vadd.f32 %v506_v55, %v159_v62  ;;  %v508_v57 = vpop.f32.mrb[18].mxu0 }
 0x100   :  { %v3484_v2 = vmul.f32 -1.442695, %v551_v12  ;;  %v509_v53 = vpop.f32.mrb[19].mxu0  ;;  %v545_v61 = vpop.f32.mrb[8].mxu1  ;;  %v5325_v12 = vld [vmem:[%s7244_s3 + $0x180] ss:$12 sps:$4 sm:$0xff]  }
 0x101   :  { %v3485_v59 = vmul.f32 -1.442695, %v558_v54  ;;  %v3857_v13 = vpop.f32.mrb[9].mxu1  ;;  %v565_v62 = vadd.f32 %v545_v61, %v5316_v3  ;;  %v230_v54 = vadd.f32 %v229_v26, %v5263_v20  ;;  %v5330_v20 = vld [vmem:[%s7244_s3 + $0x188] ss:$12 sps:$4 sm:$0xff]  }
 0x102   :  { %4536 = vpow2.f32 %v3484_v2  ;;  %v548_v0 = vpop.f32.mrb[10].mxu1  ;;  %v5339_v61 = vld [vmem:[%s7244_s3 + $0x19c] ss:$12 sps:$4 sm:$0xff]   ;;  %v5353_v57 = vld [vmem:[%s7244_s3 + $0x1a0] ss:$12 sps:$4 sm:$0xff]  }
 0x103   :  { %4538 = vpow2.f32 %v3485_v59  ;;  %v3858_v18 = vpop.f32.mrb[11].mxu1  ;;  %v7399_v59 = vmov 0.0   ;;  %v5360_v13 = vld [vmem:[%s7244_s3 + $0x1b4] ss:$12 sps:$4 sm:$0xff]  }
 0x104   :  { %v7400_v18 = vmov 0  }
 0x10c   :  { %v4537_v1 = vpop.eup %4536 }
 0x10d   :  { %v555_v52 = vadd.f32 1.0, %v4537_v1  ;;  %v4539_v56 = vpop.eup %4538 }
 0x10e   :  { %v562_v55 = vadd.f32 1.0, %v4539_v56  ;;  %v5370_v56 = vld [vmem:[%s7244_s3 + $0x1b0] ss:$12 sps:$4 sm:$0xff]  }
 0x10f   :  { %4540 = vrcp.f32 %v555_v52 }
 0x110   :  { %4542 = vrcp.f32 %v562_v55  ;;  %v5375_v55 = vld [vmem:[%s7244_s3 + $0x1b8] ss:$12 sps:$4 sm:$0xff]  }
 0x119   :  { %v4541_v53 = vpop.eup %4540 }
 0x11a   :  { %v566_v2 = vmul.f32 %v4541_v53, %v565_v62  ;;  %v4543_v5 = vpop.eup %4542  ;;  %v5382_v62 = vld [vmem:[%s7244_s3 + $0x1cc] ss:$12 sps:$4 sm:$0xff]   ;;  %v5389_v53 = vld [vmem:[%s7244_s3 + $0x1c8] ss:$12 sps:$4 sm:$0xff]  }
 0x11b   :  { %v569_v10 = vsub.f32 1.0, %v4543_v5  ;;  %v571_v1 = vmul.f32 0.0, %v4543_v5  ;;  %v5413_v5 = vld [vmem:[%s7244_s3 + $0x1e8] ss:$12 sps:$4 sm:$0xff]  }
 0x11c   :  { %v567_v4 = vadd.f32 %v566_v2, %v230_v54  ;;  %v5394_v54 = vld [vmem:[%s7244_s3 + $0x1d0] ss:$12 sps:$4 sm:$0xff]  }
 0x11d   :  { %v5401_v2 = vld [vmem:[%s7244_s3 + $0x1e4] ss:$12 sps:$4 sm:$0xff]  }
 0x11e   :  { %4544 = vtanh.f32 %v567_v4  ;;  %v5408_v4 = vld [vmem:[%s7244_s3 + $0x1e0] ss:$12 sps:$4 sm:$0xff]  }
 0x128   :  { %v4545_v0 = vpop.eup %4544 }
 0x129   :  { %v570_v52 = vmul.f32 %v4545_v0, %v569_v10  ;;  %v5420_v10 = vld [vmem:[%s7244_s3 + $0x1fc] ss:$12 sps:$4 sm:$0xff]   ;;  %v5427_v0 = vld [vmem:[%s7244_s3 + $0x1f8] ss:$12 sps:$4 sm:$0xff]  }
 0x12a   :  { %7401 = vst [vmem:[#allocation37_spill] sm:$0xff] %v5420_v10  ;;  %7402 = vst [vmem:[#allocation38_spill] sm:$0xff] %v5427_v0 }
 0x12b   :  { %v5320_v63 = vadd.f32 %v571_v1, %v570_v52  ;;  %v5432_v52 = vld [vmem:[%s7244_s3 + $0x200] ss:$12 sps:$4 sm:$0xff]  }
 0x12c   :  { %7403 = vst [vmem:[#allocation39_spill] sm:$0xff] %v5432_v52  ;;  %v5439_v1 = vld [vmem:[%s7244_s3 + $0x214] ss:$12 sps:$4 sm:$0xff]  }
 0x12d   :  { %v5334_v26 = vpack.c.bf16 %v5320_v63, %v5320_v63  ;;  %7404 = vst [vmem:[#allocation40_spill] sm:$0xff] %v5439_v1 }
 0x12f   :  { %767 = vmatmul.mubr.bf16.vlgmr.msra.gmra.mrb[20].mxu0 %v5334_v26  ;;  %3876 = vmatmul.mubr.bf16.vlgmr.msra.gmra.mrb[12].mxu1 %v5334_v26 }
 0x130   :  { %976 = vmatpush1.bf16.msra.mxu0 %v5325_v12  ;;  %3880 = vmatpush3.bf16.msra.mxu1 %v5330_v20 }
 0x131   :  { %977 = vmatprep.subr.bf16.mxu0 %v5339_v61  ;;  %3881 = vmatprep.subr.bf16.mxu1 %v7399_v59 }
 0x132   :  { %1007 = vmatprep.mubr.bf16.mxu0 %v7400_v18  ;;  %3895 = vmatprep.mubr.msk.bf16.mxu1 %vm4846_vm1, %v7399_v59 }
 0x134   :  { %978 = vmatpush1.bf16.msra.mxu0 %v5348_v58  ;;  %3882 = vmatpush3.bf16.msra.mxu1 %v5353_v57 }
 0x135   :  { %979 = vmatprep.subr.bf16.mxu0 %v5360_v13  ;;  %3883 = vmatprep.subr.bf16.mxu1 %v7399_v59 }
 0x138   :  { %980 = vmatpush1.bf16.msra.mxu0 %v5370_v56  ;;  %3884 = vmatpush3.bf16.msra.mxu1 %v5375_v55 }
 0x139   :  { %981 = vmatprep.subr.bf16.mxu0 %v5382_v62  ;;  %3885 = vmatprep.subr.bf16.mxu1 %v7399_v59 }
 0x13c   :  { %982 = vmatpush1.bf16.msra.mxu0 %v5389_v53  ;;  %3886 = vmatpush3.bf16.msra.mxu1 %v5394_v54 }
 0x13d   :  { %983 = vmatprep.subr.bf16.mxu0 %v5401_v2  ;;  %3887 = vmatprep.subr.bf16.mxu1 %v7399_v59 }
 0x140   :  { %984 = vmatpush1.bf16.msra.mxu0 %v5408_v4  ;;  %3888 = vmatpush3.bf16.msra.mxu1 %v5413_v5 }
 0x141   :  { %985 = vmatprep.subr.bf16.mxu0 %v5420_v10  ;;  %3889 = vmatprep.subr.bf16.mxu1 %v7399_v59  ;;  %v5451_v10 = vld [vmem:[%s7244_s3 + $0x218] ss:$12 sps:$4 sm:$0xff]  }
 0x144   :  { %986 = vmatpush1.bf16.msra.mxu0 %v5427_v0  ;;  %3890 = vmatpush3.bf16.msra.mxu1 %v5432_v52  ;;  %v5458_v0 = vld [vmem:[%s7244_s3 + $0x22c] ss:$12 sps:$4 sm:$0xff]   ;;  %v5465_v52 = vld [vmem:[%s7244_s3 + $0x228] ss:$12 sps:$4 sm:$0xff]  }
 0x145   :  { %987 = vmatprep.subr.bf16.mxu0 %v5439_v1  ;;  %3891 = vmatprep.subr.bf16.mxu1 %v7399_v59  ;;  %v5470_v1 = vld [vmem:[%s7244_s3 + $0x230] ss:$12 sps:$4 sm:$0xff]  }
 0x148   :  { %988 = vmatpush1.bf16.msra.mxu0 %v5446_v60  ;;  %3892 = vmatpush3.bf16.msra.mxu1 %v5451_v10 }
 0x149   :  { %989 = vmatprep.subr.bf16.mxu0 %v5458_v0  ;;  %3893 = vmatprep.subr.bf16.mxu1 %v7399_v59 }
 0x14c   :  { %990 = vmatpush1.bf16.msra.mxu0 %v5465_v52  ;;  %3894 = vmatpush3.bf16.msra.mxu1 %v5470_v1 }
 0x14d   :  { %1092 = vmatprep.subr.bf16.mxu0 %v4903_v6  ;;  %3899 = vmatprep.subr.bf16.mxu1 %v7399_v59  ;;  %v7405_v6 = vld [vmem:[#allocation6_spill] sm:$0xff] }
 0x14f   :  { %1008 = vmatmul.mubr.bf16.vlgmr.msra.gmra.mrb[20].mxu0 %v7400_v18  ;;  %3896 = vmatmul.mubr.bf16.vlgmr.msra.gmra.mrb[16].mxu1 %v7400_v18 }
 0x150   :  { %1093 = vmatpush1.bf16.msra.mxu0 %v4909_v7  ;;  %3900 = vmatpush3.bf16.msra.mxu1 %v4961_v17  ;;  %v7406_v7 = vld [vmem:[#allocation7_spill] sm:$0xff]  ;;  %v7413_v17 = vld [vmem:[#allocation14_spill] sm:$0xff] }
 0x151   :  { %1094 = vmatprep.subr.bf16.mxu0 %v4915_v8  ;;  %3901 = vmatprep.subr.bf16.mxu1 %v7399_v59  ;;  %v7407_v8 = vld [vmem:[#allocation8_spill] sm:$0xff] }
 0x152   :  { %1124 = vmatprep.mubr.bf16.mxu0 %v7400_v18  ;;  %3915 = vmatprep.mubr.msk.bf16.mxu1 %vm4846_vm1, %v7399_v59 }
 0x154   :  { %1095 = vmatpush1.bf16.msra.mxu0 %v4921_v9  ;;  %3902 = vmatpush3.bf16.msra.mxu1 %v4980_v21  ;;  %v7408_v9 = vld [vmem:[#allocation9_spill] sm:$0xff] }
 0x155   :  { %1096 = vmatprep.subr.bf16.mxu0 %v4932_v11  ;;  %3903 = vmatprep.subr.bf16.mxu1 %v7399_v59  ;;  %v7409_v11 = vld [vmem:[#allocation10_spill] sm:$0xff] }
 0x158   :  { %1097 = vmatpush1.bf16.msra.mxu0 %v4944_v14  ;;  %3904 = vmatpush3.bf16.msra.mxu1 %v5006_v25  ;;  %v7410_v14 = vld [vmem:[#allocation11_spill] sm:$0xff] }
 0x159   :  { %1098 = vmatprep.subr.bf16.mxu0 %v4950_v15  ;;  %3905 = vmatprep.subr.bf16.mxu1 %v7399_v59  ;;  %v7411_v15 = vld [vmem:[#allocation12_spill] sm:$0xff]  ;;  %v7414_v25 = vld [vmem:[#allocation15_spill] sm:$0xff] }
 0x15c   :  { %1099 = vmatpush1.bf16.msra.mxu0 %v4955_v16  ;;  %3906 = vmatpush3.bf16.msra.mxu1 %v5023_v28  ;;  %v7412_v16 = vld [vmem:[#allocation13_spill] sm:$0xff] }
 0x15d   :  { %1100 = vmatprep.subr.bf16.mxu0 %v4972_v19  ;;  %3907 = vmatprep.subr.bf16.mxu1 %v7399_v59 }
 0x160   :  { %1101 = vmatpush1.bf16.msra.mxu0 %v4987_v22  ;;  %3908 = vmatpush3.bf16.msra.mxu1 %v5045_v31 }
 0x161   :  { %1102 = vmatprep.subr.bf16.mxu0 %v4994_v23  ;;  %3909 = vmatprep.subr.bf16.mxu1 %v7399_v59 }
 0x164   :  { %1103 = vmatpush1.bf16.msra.mxu0 %v4999_v24  ;;  %3910 = vmatpush3.bf16.msra.mxu1 %v5061_v33  ;;  %v3459_v24 = vld [vmem:[%s7245_s5 + $0x1] ss:$8 sm:$0x7] }
 0x165   :  { %1104 = vmatprep.subr.bf16.mxu0 %v5016_v27  ;;  %3911 = vmatprep.subr.bf16.mxu1 %v7399_v59  ;;  %v7415_v27 = vsub.s32 0, %v7414_v25 }
 0x168   :  { %1105 = vmatpush1.bf16.msra.mxu0 %v5028_v29  ;;  %3912 = vmatpush3.bf16.msra.mxu1 %v5069_v34  ;;  %v5557_v29 = vrot.slane %v3459_v24, %v7415_v27 }
 0x169   :  { %1106 = vmatprep.subr.bf16.mxu0 %v5034_v30  ;;  %3913 = vmatprep.subr.bf16.mxu1 %v7399_v59 }
 0x16a   :  { %7416 = vst [vmem:[#allocation15_spill] sm:$0xff] %v5557_v29 }
 0x16c   :  { %1107 = vmatpush1.bf16.msra.mxu0 %v5050_v32  ;;  %3914 = vmatpush3.bf16.msra.mxu1 %v5078_v35 }
 0x16d   :  { %1196 = vmatprep.subr.bf16.mxu0 %v5090_v36  ;;  %3919 = vmatprep.subr.bf16.mxu1 %v7399_v59 }
 0x16f   :  { %1125 = vmatmul.mubr.bf16.vlgmr.msra.gmra.mrb[24].mxu0 %v5334_v26  ;;  %3916 = vmatmul.mubr.bf16.vlgmr.msra.gmra.mrb[20].mxu1 %v5334_v26  ;;  %v7417_v26 = vsub.s32 1, %v7414_v25 }
 0x170   :  { %1197 = vmatpush1.bf16.msra.mxu0 %v5095_v37  ;;  %3920 = vmatpush3.bf16.msra.mxu1 %v5100_v38 }
 0x171   :  { %1198 = vmatprep.subr.bf16.mxu0 %v5108_v39  ;;  %3921 = vmatprep.subr.bf16.mxu1 %v7399_v59 }
 0x172   :  { %1228 = vmatprep.mubr.bf16.mxu0 %v7400_v18  ;;  %3935 = vmatprep.mubr.msk.bf16.mxu1 %vm4846_vm1, %v7399_v59 }
 0x174   :  { %1199 = vmatpush1.bf16.msra.mxu0 %v5114_v40  ;;  %3922 = vmatpush3.bf16.msra.mxu1 %v5119_v41 }
 0x175   :  { %1200 = vmatprep.subr.bf16.mxu0 %v5127_v42  ;;  %3923 = vmatprep.subr.bf16.mxu1 %v7399_v59 }
 0x178   :  { %1201 = vmatpush1.bf16.msra.mxu0 %v5133_v43  ;;  %3924 = vmatpush3.bf16.msra.mxu1 %v5138_v44 }
 0x179   :  { %1202 = vmatprep.subr.bf16.mxu0 %v5146_v45  ;;  %3925 = vmatprep.subr.bf16.mxu1 %v7399_v59 }
 0x17c   :  { %1203 = vmatpush1.bf16.msra.mxu0 %v5152_v46  ;;  %3926 = vmatpush3.bf16.msra.mxu1 %v5157_v47 }
 0x17d   :  { %1204 = vmatprep.subr.bf16.mxu0 %v5165_v48  ;;  %3927 = vmatprep.subr.bf16.mxu1 %v7399_v59 }
 0x180   :  { %1205 = vmatpush1.bf16.msra.mxu0 %v5171_v49  ;;  %3928 = vmatpush3.bf16.msra.mxu1 %v5176_v50  ;;  %v7422_v50 = vld [vmem:[#allocation17_spill] sm:$0xff] }
 0x181   :  { %1206 = vmatprep.subr.bf16.mxu0 %v5182_v51  ;;  %3929 = vmatprep.subr.bf16.mxu1 %v7399_v59 }
 0x184   :  { %1207 = vmatpush1.bf16.msra.mxu0 %v7405_v6  ;;  %3930 = vmatpush3.bf16.msra.mxu1 %v7406_v7 }
 0x185   :  { %1208 = vmatprep.subr.bf16.mxu0 %v7407_v8  ;;  %3931 = vmatprep.subr.bf16.mxu1 %v7399_v59 }
 0x188   :  { %1209 = vmatpush1.bf16.msra.mxu0 %v7408_v9  ;;  %3932 = vmatpush3.bf16.msra.mxu1 %v7409_v11 }
 0x189   :  { %1210 = vmatprep.subr.bf16.mxu0 %v7410_v14  ;;  %3933 = vmatprep.subr.bf16.mxu1 %v7399_v59 }
 0x18c   :  { %1211 = vmatpush1.bf16.msra.mxu0 %v7411_v15  ;;  %3934 = vmatpush3.bf16.msra.mxu1 %v7412_v16  ;;  %v5561_v16 = vrot.slane %v3459_v24, %v7417_v26  ;;  %v3540_v26 = vld [vmem:[%s7246_s1 + $0x8] sm:$0xff] }
 0x18d   :  { %1278 = vmatprep.subr.bf16.mxu0 %v7413_v17  ;;  %3939 = vmatprep.subr.bf16.mxu1 %v7399_v59 }
 0x18e   :  { %7418 = vst [vmem:[#allocation41_spill] sm:$0xff] %v5561_v16  ;;  %1385 = vperm.xlu0 %4410, %v3540_v26  }
 0x202   :  { %v809_v19 = vpop.f32.mrb[12].mxu1 }
 0x203   :  { %v3877_v21 = vpop.f32.mrb[13].mxu1 }
 0x204   :  { %v812_v22 = vpop.f32.mrb[14].mxu1 }
 0x205   :  { %v3878_v23 = vpop.f32.mrb[15].mxu1 }
 0x222   :  { %v1009_v30 = vpop.f32.mrb[20].mxu0  ;;  %v1050_v17 = vpop.f32.mrb[16].mxu1 }
 0x223   :  { %v4359_v15 = vadd.f32 %v1009_v30, %v5557_v29  ;;  %v1011_v14 = vpop.f32.mrb[21].mxu0  ;;  %v3897_v21 = vpop.f32.mrb[17].mxu1 }
 0x224   :  { %v1013_v22 = vpop.f32.mrb[22].mxu0  ;;  %v1053_v23 = vpop.f32.mrb[18].mxu1  ;;  %v4360_v7 = vadd.f32 %v1011_v14, %v5561_v16 }
 0x225   :  { %v3534_v11 = vmul.f32 -1.442695, %v4359_v15  ;;  %v1014_v9 = vpop.f32.mrb[23].mxu0  ;;  %v3898_v8 = vpop.f32.mrb[19].mxu1  ;;  %v5571_v15 = vld [vmem:[%s7245_s5 + $0x3] ss:$0 sm:$0xff] }
 0x226   :  { %v3535_v27 = vmul.f32 -1.442695, %v4360_v7  ;;  %7419 = vst [vmem:[#allocation42_spill] sm:$0xff] %v5571_v15  ;;  %v7420_v8 = vsub.s32 2, %v7414_v25 }
 0x227   :  { %4546 = vpow2.f32 %v3534_v11  ;;  %v1070_v11 = vadd.f32 %v1050_v17, %v5571_v15 }
 0x228   :  { %4548 = vpow2.f32 %v3535_v27  ;;  %v5575_v9 = vrot.slane %v3459_v24, %v7420_v8  ;;  %v7421_v27 = vld [vmem:[#allocation16_spill] sm:$0xff] }
 0x231   :  { %v4547_v6 = vpop.eup %4546 }
 0x232   :  { %v1060_v51 = vadd.f32 1.0, %v4547_v6  ;;  %v4549_v30 = vpop.eup %4548 }
 0x233   :  { %v1067_v7 = vadd.f32 1.0, %v4549_v30 }
 0x234   :  { %4550 = vrcp.f32 %v1060_v51  ;;  %v810_v51 = vadd.f32 %v809_v19, %v5575_v9 }
 0x235   :  { %4552 = vrcp.f32 %v1067_v7 }
 0x23e   :  { %v4551_v6 = vpop.eup %4550 }
 0x23f   :  { %v1071_v14 = vmul.f32 %v4551_v6, %v1070_v11  ;;  %v4553_v15 = vpop.eup %4552 }
 0x240   :  { %v1074_v7 = vsub.f32 1.0, %v4553_v15 }
 0x241   :  { %v1072_v21 = vadd.f32 %v1071_v14, %v810_v51  ;;  %v1076_v51 = vmul.f32 0.0, %v4553_v15 }
 0x242   :  { %v1126_v22 = vpop.f32.mrb[24].mxu0  ;;  %v1167_v23 = vpop.f32.mrb[20].mxu1 }
 0x243   :  { %4554 = vtanh.f32 %v1072_v21  ;;  %v1173_v26 = vadd.f32 %v1126_v22, %v7421_v27  ;;  %v1128_v16 = vpop.f32.mrb[25].mxu0  ;;  %v3917_v29 = vpop.f32.mrb[21].mxu1 }
 0x244   :  { %v1180_v25 = vadd.f32 %v1128_v16, %v7422_v50  ;;  %v1130_v24 = vpop.f32.mrb[26].mxu0  ;;  %v1170_v8 = vpop.f32.mrb[22].mxu1  ;;  %v1187_v16 = vadd.f32 %v1167_v23, %v5316_v3  ;;  %v7426_v23 = vld [vmem:[#allocation38_spill] sm:$0xff] }
 0x245   :  { %v3536_v30 = vmul.f32 -1.442695, %v1173_v26  ;;  %v1131_v49 = vpop.f32.mrb[27].mxu0  ;;  %v3918_v17 = vpop.f32.mrb[23].mxu1  ;;  %v7424_v26 = vld [vmem:[#allocation24_spill] sm:$0xff] }
 0x246   :  { %v3537_v19 = vmul.f32 -1.442695, %v1180_v25 }
 0x247   :  { %4556 = vpow2.f32 %v3536_v30 }
 0x248   :  { %4558 = vpow2.f32 %v3537_v19 }
 0x24d   :  { %v4555_v11 = vpop.eup %4554 }
 0x24e   :  { %v1075_v6 = vmul.f32 %v4555_v11, %v1074_v7  ;;  %v7427_v11 = vld [vmem:[#allocation39_spill] sm:$0xff] }
 0x250   :  { %v5581_v14 = vadd.f32 %v1076_v51, %v1075_v6  ;;  %v7428_v6 = vld [vmem:[#allocation40_spill] sm:$0xff] }
 0x251   :  { %v4557_v21 = vpop.eup %4556 }
 0x252   :  { %7423 = vst [vmem:[#allocation16_spill] sm:$0xff] %v5581_v14  ;;  %v1177_v22 = vadd.f32 1.0, %v4557_v21  ;;  %v4559_v29 = vpop.eup %4558  ;;  %v1277_v51 = vpack.c.bf16 %v5581_v14, %v5581_v14  ;;  %v5632_v21 = vld [vmem:[%s7244_s3 + $0x4] ss:$12 sps:$4 sm:$0xff]  }
 0x253   :  { %v1184_v50 = vadd.f32 1.0, %v4559_v29  ;;  %v5645_v29 = vld [vmem:[%s7244_s3 + $0x8] ss:$12 sps:$4 sm:$0xff]  }
 0x254   :  { %4560 = vrcp.f32 %v1177_v22  ;;  %v5639_v22 = vld [vmem:[%s7244_s3] ss:$12 sps:$4 sm:$0xff]  }
 0x255   :  { %4562 = vrcp.f32 %v1184_v50  ;;  %v5651_v50 = vld [vmem:[%s7244_s3 + $0x1c] ss:$12 sps:$4 sm:$0xff]  }
 0x25e   :  { %v4561_v27 = vpop.eup %4560 }
 0x25f   :  { %v1188_v49 = vmul.f32 %v4561_v27, %v1187_v16  ;;  %v4563_v25 = vpop.eup %4562  ;;  %v5661_v16 = vld [vmem:[%s7244_s3 + $0x18] ss:$12 sps:$4 sm:$0xff]   ;;  %v5667_v27 = vld [vmem:[%s7244_s3 + $0x20] ss:$12 sps:$4 sm:$0xff]  }
 0x260   :  { %v1191_v8 = vsub.f32 1.0, %v4563_v25  ;;  %v1193_v15 = vmul.f32 %v4563_v25, %v5320_v63  ;;  %v7425_v63 = vld [vmem:[#allocation37_spill] sm:$0xff]  ;;  %v5692_v25 = vld [vmem:[%s7244_s3 + $0x4c] ss:$12 sps:$4 sm:$0xff]  }
 0x261   :  { %v1189_v24 = vadd.f32 %v1188_v49, %v7424_v26  ;;  %v5673_v49 = vld [vmem:[%s7244_s3 + $0x34] ss:$12 sps:$4 sm:$0xff]   ;;  %v5680_v26 = vld [vmem:[%s7244_s3 + $0x30] ss:$12 sps:$4 sm:$0xff]  }
 0x263   :  { %4564 = vtanh.f32 %v1189_v24  ;;  %v5686_v24 = vld [vmem:[%s7244_s3 + $0x38] ss:$12 sps:$4 sm:$0xff]  }
 0x26d   :  { %v4565_v30 = vpop.eup %4564 }
 0x26e   :  { %v1192_v17 = vmul.f32 %v4565_v30, %v1191_v8  ;;  %v5699_v8 = vld [vmem:[%s7244_s3 + $0x48] ss:$12 sps:$4 sm:$0xff]   ;;  %v5706_v30 = vld [vmem:[%s7244_s3 + $0x64] ss:$12 sps:$4 sm:$0xff]  }
 0x270   :  { %v5586_v19 = vadd.f32 %v1193_v15, %v1192_v17  ;;  %v5713_v17 = vld [vmem:[%s7244_s3 + $0x60] ss:$12 sps:$4 sm:$0xff]   ;;  %v5727_v15 = vld [vmem:[%s7244_s3 + $0x78] ss:$12 sps:$4 sm:$0xff]  }
 0x271   :  { %7429 = vst [vmem:[#allocation17_spill] sm:$0xff] %v5727_v15 }
 0x272   :  { %v5590_v7 = vpack.c.bf16 %v5586_v19, %v5586_v19 }
 0x274   :  { %1229 = vmatmul.mubr.bf16.vlgmr.msra.gmra.mrb[28].mxu0 %v5590_v7  ;;  %3936 = vmatmul.mubr.bf16.vlgmr.msra.gmra.mrb[24].mxu1 %v5590_v7 }
 0x275   :  { %1279 = vmatpush1.bf16.msra.mxu0 %v5325_v12  ;;  %3940 = vmatpush3.bf16.msra.mxu1 %v5330_v20 }
 0x276   :  { %1280 = vmatprep.subr.bf16.mxu0 %v5339_v61  ;;  %3941 = vmatprep.subr.bf16.mxu1 %v7399_v59 }
 0x277   :  { %1310 = vmatprep.mubr.bf16.mxu0 %v7400_v18  ;;  %3955 = vmatprep.mubr.msk.bf16.mxu1 %vm4846_vm1, %v7399_v59 }
 0x279   :  { %1281 = vmatpush1.bf16.msra.mxu0 %v5348_v58  ;;  %3942 = vmatpush3.bf16.msra.mxu1 %v5353_v57 }
 0x27a   :  { %1282 = vmatprep.subr.bf16.mxu0 %v5360_v13  ;;  %3943 = vmatprep.subr.bf16.mxu1 %v7399_v59 }
 0x27d   :  { %1283 = vmatpush1.bf16.msra.mxu0 %v5370_v56  ;;  %3944 = vmatpush3.bf16.msra.mxu1 %v5375_v55 }
 0x27e   :  { %1284 = vmatprep.subr.bf16.mxu0 %v5382_v62  ;;  %3945 = vmatprep.subr.bf16.mxu1 %v7399_v59 }
 0x281   :  { %1285 = vmatpush1.bf16.msra.mxu0 %v5389_v53  ;;  %3946 = vmatpush3.bf16.msra.mxu1 %v5394_v54 }
 0x282   :  { %1286 = vmatprep.subr.bf16.mxu0 %v5401_v2  ;;  %3947 = vmatprep.subr.bf16.mxu1 %v7399_v59 }
 0x285   :  { %1287 = vmatpush1.bf16.msra.mxu0 %v5408_v4  ;;  %3948 = vmatpush3.bf16.msra.mxu1 %v5413_v5 }
 0x286   :  { %1288 = vmatprep.subr.bf16.mxu0 %v7425_v63  ;;  %3949 = vmatprep.subr.bf16.mxu1 %v7399_v59 }
 0x289   :  { %1289 = vmatpush1.bf16.msra.mxu0 %v7426_v23  ;;  %3950 = vmatpush3.bf16.msra.mxu1 %v7427_v11 }
 0x28a   :  { %1290 = vmatprep.subr.bf16.mxu0 %v7428_v6  ;;  %3951 = vmatprep.subr.bf16.mxu1 %v7399_v59 }
 0x28d   :  { %1291 = vmatpush1.bf16.msra.mxu0 %v5446_v60  ;;  %3952 = vmatpush3.bf16.msra.mxu1 %v5451_v10 }
 0x28e   :  { %1292 = vmatprep.subr.bf16.mxu0 %v5458_v0  ;;  %3953 = vmatprep.subr.bf16.mxu1 %v7399_v59 }
 0x291   :  { %1293 = vmatpush1.bf16.msra.mxu0 %v5465_v52  ;;  %3954 = vmatpush3.bf16.msra.mxu1 %v5470_v1 }
 0x292   :  { %1396 = vmatprep.subr.bf16.mxu0 %v5632_v21  ;;  %3959 = vmatprep.subr.bf16.mxu1 %v7399_v59 }
 0x294   :  { %1311 = vmatmul.mubr.bf16.vlgmr.msra.gmra.mrb[28].mxu0 %v1277_v51  ;;  %3956 = vmatmul.mubr.bf16.vlgmr.msra.gmra.mrb[28].mxu1 %v1277_v51  ;;  %v5741_v51 = vld [vmem:[%s7244_s3 + $0x90] ss:$12 sps:$4 sm:$0xff]  }
 0x295   :  { %1397 = vmatpush1.bf16.msra.mxu0 %v5639_v22  ;;  %3960 = vmatpush3.bf16.msra.mxu1 %v5645_v29  ;;  %7431 = vst [vmem:[#allocation37_spill] sm:$0xff] %v5741_v51 }
 0x296   :  { %1398 = vmatprep.subr.bf16.mxu0 %v5651_v50  ;;  %3961 = vmatprep.subr.bf16.mxu1 %v7399_v59 }
 0x297   :  { %1428 = vmatprep.mubr.bf16.mxu0 %v7400_v18  ;;  %3975 = vmatprep.mubr.msk.bf16.mxu1 %vm4846_vm1, %v7399_v59 }
 0x299   :  { %1399 = vmatpush1.bf16.msra.mxu0 %v5661_v16  ;;  %3962 = vmatpush3.bf16.msra.mxu1 %v5667_v27 }
 0x29a   :  { %1400 = vmatprep.subr.bf16.mxu0 %v5673_v49  ;;  %3963 = vmatprep.subr.bf16.mxu1 %v7399_v59 }
 0x29d   :  { %1401 = vmatpush1.bf16.msra.mxu0 %v5680_v26  ;;  %3964 = vmatpush3.bf16.msra.mxu1 %v5686_v24 }
 0x29e   :  { %1402 = vmatprep.subr.bf16.mxu0 %v5692_v25  ;;  %3965 = vmatprep.subr.bf16.mxu1 %v7399_v59 }
 0x2a1   :  { %1403 = vmatpush1.bf16.msra.mxu0 %v5699_v8  ;;  %3966 = vmatpush3.bf16.msra.mxu1 %v5023_v28  ;;  %v5720_v28 = vld [vmem:[%s7244_s3 + $0x7c] ss:$12 sps:$4 sm:$0xff]  }
 0x2a2   :  { %1404 = vmatprep.subr.bf16.mxu0 %v5706_v30  ;;  %3967 = vmatprep.subr.bf16.mxu1 %v7399_v59 }
 0x2a5   :  { %1405 = vmatpush1.bf16.msra.mxu0 %v5713_v17  ;;  %3968 = vmatpush3.bf16.msra.mxu1 %v5045_v31  ;;  %v5734_v31 = vld [vmem:[%s7244_s3 + $0x94] ss:$12 sps:$4 sm:$0xff]  }
 0x2a6   :  { %1406 = vmatprep.subr.bf16.mxu0 %v5720_v28  ;;  %3969 = vmatprep.subr.bf16.mxu1 %v7399_v59  ;;  %7430 = vst [vmem:[#allocation24_spill] sm:$0xff] %v5734_v31 }
 0x2a9   :  { %1407 = vmatpush1.bf16.msra.mxu0 %v5727_v15  ;;  %3970 = vmatpush3.bf16.msra.mxu1 %v5061_v33  ;;  %v5748_v33 = vld [vmem:[%s7244_s3 + $0xac] ss:$12 sps:$4 sm:$0xff]  }
 0x2aa   :  { %1408 = vmatprep.subr.bf16.mxu0 %v5734_v31  ;;  %3971 = vmatprep.subr.bf16.mxu1 %v7399_v59  ;;  %7432 = vst [vmem:[#allocation38_spill] sm:$0xff] %v5748_v33 }
 0x2ad   :  { %1409 = vmatpush1.bf16.msra.mxu0 %v5741_v51  ;;  %3972 = vmatpush3.bf16.msra.mxu1 %v5069_v34  ;;  %v7434_v34 = vld [vmem:[#allocation4_spill] sm:$0xff] }
 0x2ae   :  { %1410 = vmatprep.subr.bf16.mxu0 %v5748_v33  ;;  %3973 = vmatprep.subr.bf16.mxu1 %v7399_v59 }
 0x2b1   :  { %1411 = vmatpush1.bf16.msra.mxu0 %v5050_v32  ;;  %3974 = vmatpush3.bf16.msra.mxu1 %v5078_v35  ;;  %v7433_v32 = vld [vmem:[#allocation3_spill] sm:$0xff]  ;;  %v7435_v35 = vld [vmem:[#allocation5_spill] sm:$0xff] }
 0x2b2   :  { %1500 = vmatprep.subr.bf16.mxu0 %v5090_v36  ;;  %3979 = vmatprep.subr.bf16.mxu1 %v7399_v59  ;;  %v7436_v36 = vld [vmem:[#allocation6_spill] sm:$0xff] }
 0x2b4   :  { %1429 = vmatmul.mubr.bf16.vlgmr.msra.gmra.mrb[32].mxu0 %v5590_v7  ;;  %3976 = vmatmul.mubr.bf16.vlgmr.msra.gmra.mrb[32].mxu1 %v5590_v7 }
 0x2b5   :  { %1501 = vmatpush1.bf16.msra.mxu0 %v5095_v37  ;;  %3980 = vmatpush3.bf16.msra.mxu1 %v5100_v38  ;;  %v7437_v37 = vld [vmem:[#allocation7_spill] sm:$0xff]  ;;  %v7438_v38 = vld [vmem:[#allocation8_spill] sm:$0xff] }
 0x2b6   :  { %1502 = vmatprep.subr.bf16.mxu0 %v5108_v39  ;;  %3981 = vmatprep.subr.bf16.mxu1 %v7399_v59  ;;  %v7439_v39 = vld [vmem:[#allocation9_spill] sm:$0xff] }
 0x2b7   :  { %1532 = vmatprep.mubr.bf16.mxu0 %v7400_v18  ;;  %3995 = vmatprep.mubr.msk.bf16.mxu1 %vm4846_vm1, %v7399_v59 }
 0x2b9   :  { %1503 = vmatpush1.bf16.msra.mxu0 %v5114_v40  ;;  %3982 = vmatpush3.bf16.msra.mxu1 %v5119_v41  ;;  %v7440_v40 = vld [vmem:[#allocation10_spill] sm:$0xff]  ;;  %v7441_v41 = vld [vmem:[#allocation11_spill] sm:$0xff] }
 0x2ba   :  { %1504 = vmatprep.subr.bf16.mxu0 %v5127_v42  ;;  %3983 = vmatprep.subr.bf16.mxu1 %v7399_v59  ;;  %v7442_v42 = vld [vmem:[#allocation12_spill] sm:$0xff] }
 0x2bd   :  { %1505 = vmatpush1.bf16.msra.mxu0 %v5133_v43  ;;  %3984 = vmatpush3.bf16.msra.mxu1 %v5138_v44  ;;  %v7443_v43 = vld [vmem:[#allocation13_spill] sm:$0xff]  ;;  %v7444_v44 = vld [vmem:[#allocation14_spill] sm:$0xff] }
 0x2be   :  { %1506 = vmatprep.subr.bf16.mxu0 %v5146_v45  ;;  %3985 = vmatprep.subr.bf16.mxu1 %v7399_v59 }
 0x2c1   :  { %1507 = vmatpush1.bf16.msra.mxu0 %v5152_v46  ;;  %3986 = vmatpush3.bf16.msra.mxu1 %v5157_v47 }
 0x2c2   :  { %1508 = vmatprep.subr.bf16.mxu0 %v5165_v48  ;;  %3987 = vmatprep.subr.bf16.mxu1 %v7399_v59 }
 0x2c5   :  { %1509 = vmatpush1.bf16.msra.mxu0 %v7433_v32  ;;  %3988 = vmatpush3.bf16.msra.mxu1 %v7434_v34  ;;  %v7445_v34 = vld [vmem:[#allocation15_spill] sm:$0xff] }
 0x2c6   :  { %1510 = vmatprep.subr.bf16.mxu0 %v7435_v35  ;;  %3989 = vmatprep.subr.bf16.mxu1 %v7399_v59 }
 0x2c9   :  { %1511 = vmatpush1.bf16.msra.mxu0 %v7436_v36  ;;  %3990 = vmatpush3.bf16.msra.mxu1 %v7437_v37 }
 0x2ca   :  { %1512 = vmatprep.subr.bf16.mxu0 %v7438_v38  ;;  %3991 = vmatprep.subr.bf16.mxu1 %v7399_v59 }
 0x2cd   :  { %1513 = vmatpush1.bf16.msra.mxu0 %v7439_v39  ;;  %3992 = vmatpush3.bf16.msra.mxu1 %v7440_v40 }
 0x2ce   :  { %1514 = vmatprep.subr.bf16.mxu0 %v7441_v41  ;;  %3993 = vmatprep.subr.bf16.mxu1 %v7399_v59 }
 0x2d1   :  { %1515 = vmatpush1.bf16.msra.mxu0 %v7442_v42  ;;  %3994 = vmatpush3.bf16.msra.mxu1 %v7443_v43  ;;  %v7446_v43 = vld [vmem:[#allocation41_spill] sm:$0xff] }
 0x2d2   :  { %1582 = vmatprep.subr.bf16.mxu0 %v7444_v44  ;;  %3999 = vmatprep.subr.bf16.mxu1 %v7399_v59 }
 0x347   :  { %v1271_v45 = vpop.f32.mrb[24].mxu1 }
 0x348   :  { %v3937_v46 = vpop.f32.mrb[25].mxu1 }
 0x349   :  { %v1274_v47 = vpop.f32.mrb[26].mxu1 }
 0x34a   :  { %v3938_v48 = vpop.f32.mrb[27].mxu1  ;;  %v3545_v47 = vld [vmem:[%s7246_s1 + $0x10] sm:$0xff] }
 0x34b   :  { %1689 = vperm.xlu1 %4411, %v3545_v47  }
 0x367   :  { %v1312_v7 = vpop.f32.mrb[28].mxu0  ;;  %v1353_v32 = vpop.f32.mrb[28].mxu1 }
 0x368   :  { %v4361_v35 = vadd.f32 %v1312_v7, %v7445_v34  ;;  %v1314_v36 = vpop.f32.mrb[29].mxu0  ;;  %v3957_v37 = vpop.f32.mrb[29].mxu1 }
 0x369   :  { %v1316_v38 = vpop.f32.mrb[30].mxu0  ;;  %v1356_v39 = vpop.f32.mrb[30].mxu1  ;;  %v4362_v33 = vadd.f32 %v1314_v36, %v7446_v43  ;;  %v7447_v37 = vld [vmem:[#allocation42_spill] sm:$0xff]  ;;  %v7449_v43 = vld [vmem:[#allocation19_spill] sm:$0xff] }
 0x36a   :  { %v3538_v40 = vmul.f32 -1.442695, %v4361_v35  ;;  %v1317_v41 = vpop.f32.mrb[31].mxu0  ;;  %v3958_v42 = vpop.f32.mrb[31].mxu1  ;;  %v1373_v38 = vadd.f32 %v1353_v32, %v7447_v37  ;;  %v1272_v39 = vadd.f32 %v1271_v45, %v5575_v9 }
 0x36b   :  { %v3539_v44 = vmul.f32 -1.442695, %v4362_v33 }
 0x36c   :  { %4566 = vpow2.f32 %v3538_v40 }
 0x36d   :  { %4568 = vpow2.f32 %v3539_v44 }
 0x376   :  { %v4567_v51 = vpop.eup %4566 }
 0x377   :  { %v1363_v46 = vadd.f32 1.0, %v4567_v51  ;;  %v4569_v48 = vpop.eup %4568  ;;  %v7448_v51 = vld [vmem:[#allocation18_spill] sm:$0xff] }
 0x378   :  { %v1370_v7 = vadd.f32 1.0, %v4569_v48 }
 0x379   :  { %4570 = vrcp.f32 %v1363_v46 }
 0x37a   :  { %4572 = vrcp.f32 %v1370_v7 }
 0x383   :  { %v4571_v35 = vpop.eup %4570 }
 0x384   :  { %v1374_v41 = vmul.f32 %v4571_v35, %v1373_v38  ;;  %v4573_v37 = vpop.eup %4572 }
 0x385   :  { %v1377_v38 = vsub.f32 1.0, %v4573_v37 }
 0x386   :  { %v1375_v36 = vadd.f32 %v1374_v41, %v1272_v39  ;;  %v1379_v39 = vmul.f32 %v4573_v37, %v5581_v14 }
 0x387   :  { %v1430_v33 = vpop.f32.mrb[32].mxu0  ;;  %v1471_v40 = vpop.f32.mrb[32].mxu1 }
 0x388   :  { %4574 = vtanh.f32 %v1375_v36  ;;  %v1477_v42 = vadd.f32 %v1430_v33, %v7448_v51  ;;  %v1432_v44 = vpop.f32.mrb[33].mxu0  ;;  %v3977_v46 = vpop.f32.mrb[33].mxu1 }
 0x389   :  { %v1484_v34 = vadd.f32 %v1432_v44, %v7449_v43  ;;  %v1434_v47 = vpop.f32.mrb[34].mxu0  ;;  %v1474_v31 = vpop.f32.mrb[34].mxu1  ;;  %v7451_v44 = vld [vmem:[#allocation22_spill] sm:$0xff] }
 0x38a   :  { %v3541_v48 = vmul.f32 -1.442695, %v1477_v42  ;;  %v1435_v15 = vpop.f32.mrb[35].mxu0  ;;  %v3978_v32 = vpop.f32.mrb[35].mxu1  ;;  %v1491_v31 = vadd.f32 %v1471_v40, %v5316_v3  ;;  %v6013_v40 = vld [vmem:[%s7244_s3 + $0x128] ss:$12 sps:$4 sm:$0xff]  }
 0x38b   :  { %v3542_v45 = vmul.f32 -1.442695, %v1484_v34  ;;  %7457 = vst [vmem:[#allocation3_spill] sm:$0xff] %v6013_v40 }
 0x38c   :  { %4576 = vpow2.f32 %v3541_v48 }
 0x38d   :  { %4578 = vpow2.f32 %v3542_v45 }
 0x392   :  { %v4575_v7 = vpop.eup %4574 }
 0x393   :  { %v1378_v35 = vmul.f32 %v4575_v7, %v1377_v38  ;;  %v6019_v7 = vld [vmem:[%s7244_s3 + $0x13c] ss:$12 sps:$4 sm:$0xff]  }
 0x394   :  { %7458 = vst [vmem:[#allocation4_spill] sm:$0xff] %v6019_v7 }
 0x395   :  { %v5803_v41 = vadd.f32 %v1379_v39, %v1378_v35  ;;  %v6026_v35 = vld [vmem:[%s7244_s3 + $0x138] ss:$12 sps:$4 sm:$0xff]   ;;  %v6032_v39 = vld [vmem:[%s7244_s3 + $0x140] ss:$12 sps:$4 sm:$0xff]  }
 0x396   :  { %v4577_v36 = vpop.eup %4576  ;;  %7459 = vst [vmem:[#allocation5_spill] sm:$0xff] %v6026_v35  ;;  %7460 = vst [vmem:[#allocation6_spill] sm:$0xff] %v6032_v39 }
 0x397   :  { %7450 = vst [vmem:[#allocation39_spill] sm:$0xff] %v5803_v41  ;;  %v1481_v33 = vadd.f32 1.0, %v4577_v36  ;;  %v4579_v43 = vpop.eup %4578  ;;  %v1581_v3 = vpack.c.bf16 %v5803_v41, %v5803_v41  ;;  %v6038_v36 = vld [vmem:[%s7244_s3 + $0x154] ss:$12 sps:$4 sm:$0xff]  }
 0x398   :  { %v1488_v51 = vadd.f32 1.0, %v4579_v43  ;;  %7461 = vst [vmem:[#allocation7_spill] sm:$0xff] %v6038_v36  ;;  %v6051_v43 = vld [vmem:[%s7244_s3 + $0x158] ss:$12 sps:$4 sm:$0xff]  }
 0x399   :  { %4580 = vrcp.f32 %v1481_v33  ;;  %v6045_v33 = vld [vmem:[%s7244_s3 + $0x150] ss:$12 sps:$4 sm:$0xff]   ;;  %7463 = vst [vmem:[#allocation9_spill] sm:$0xff] %v6051_v43 }
 0x39a   :  { %4582 = vrcp.f32 %v1488_v51  ;;  %7462 = vst [vmem:[#allocation8_spill] sm:$0xff] %v6045_v33  ;;  %v6057_v51 = vld [vmem:[%s7244_s3 + $0x16c] ss:$12 sps:$4 sm:$0xff]  }
 0x39b   :  { %7464 = vst [vmem:[#allocation10_spill] sm:$0xff] %v6057_v51 }
 0x3a3   :  { %v4581_v15 = vpop.eup %4580 }
 0x3a4   :  { %v1492_v42 = vmul.f32 %v4581_v15, %v1491_v31  ;;  %v4583_v46 = vpop.eup %4582  ;;  %v6064_v31 = vld [vmem:[%s7244_s3 + $0x168] ss:$12 sps:$4 sm:$0xff]   ;;  %v6070_v15 = vld [vmem:[%s7244_s3 + $0x170] ss:$12 sps:$4 sm:$0xff]  }
 0x3a5   :  { %v1495_v47 = vsub.f32 1.0, %v4583_v46  ;;  %v1497_v37 = vmul.f32 %v4583_v46, %v5586_v19  ;;  %v5981_v19 = vld [vmem:[%s7244_s3 + $0x10c] ss:$12 sps:$4 sm:$0xff]   ;;  %7465 = vst [vmem:[#allocation11_spill] sm:$0xff] %v6064_v31  ;;  %7466 = vst [vmem:[#allocation12_spill] sm:$0xff] %v6070_v15 }
 0x3a6   :  { %v1493_v34 = vadd.f32 %v1492_v42, %v7451_v44  ;;  %v6076_v42 = vld [vmem:[%s7244_s3 + $0x184] ss:$12 sps:$4 sm:$0xff]  }
 0x3a7   :  { %7467 = vst [vmem:[#allocation13_spill] sm:$0xff] %v6076_v42 }
 0x3a8   :  { %4584 = vtanh.f32 %v1493_v34 }
 0x3b2   :  { %v4585_v48 = vpop.eup %4584 }
 0x3b3   :  { %v1496_v32 = vmul.f32 %v4585_v48, %v1495_v47 }
 0x3b5   :  { %v5808_v45 = vadd.f32 %v1497_v37, %v1496_v32  ;;  %v7468_v37 = vld [vmem:[#allocation15_spill] sm:$0xff] }
 0x3b7   :  { %v5812_v38 = vpack.c.bf16 %v5808_v45, %v5808_v45 }
 0x3b9   :  { %1533 = vmatmul.mubr.bf16.vlgmr.msra.gmra.mrb[36].mxu0 %v5812_v38  ;;  %3996 = vmatmul.mubr.bf16.vlgmr.msra.gmra.mrb[36].mxu1 %v5812_v38 }
 0x3ba   :  { %1583 = vmatpush1.bf16.msra.mxu0 %v5325_v12  ;;  %4000 = vmatpush3.bf16.msra.mxu1 %v5330_v20  ;;  %v5881_v12 = vld [vmem:[%s7244_s3 + $0x68] ss:$12 sps:$4 sm:$0xff]  }
 0x3bb   :  { %1584 = vmatprep.subr.bf16.mxu0 %v5339_v61  ;;  %4001 = vmatprep.subr.bf16.mxu1 %v7399_v59  ;;  %v7452_v20 = vld [vmem:[#allocation17_spill] sm:$0xff]  ;;  %v5890_v61 = vld [vmem:[%s7244_s3 + $0x80] ss:$12 sps:$4 sm:$0xff]  }
 0x3bc   :  { %1614 = vmatprep.mubr.bf16.mxu0 %v7400_v18  ;;  %4015 = vmatprep.mubr.msk.bf16.mxu1 %vm4846_vm1, %v7399_v59 }
 0x3be   :  { %1585 = vmatpush1.bf16.msra.mxu0 %v5348_v58  ;;  %4002 = vmatpush3.bf16.msra.mxu1 %v5353_v57  ;;  %v7453_v58 = vld [vmem:[#allocation24_spill] sm:$0xff]  ;;  %v7454_v57 = vld [vmem:[#allocation37_spill] sm:$0xff] }
 0x3bf   :  { %1586 = vmatprep.subr.bf16.mxu0 %v5360_v13  ;;  %4003 = vmatprep.subr.bf16.mxu1 %v7399_v59  ;;  %v5899_v13 = vld [vmem:[%s7244_s3 + $0x98] ss:$12 sps:$4 sm:$0xff]  }
 0x3c2   :  { %1587 = vmatpush1.bf16.msra.mxu0 %v5370_v56  ;;  %4004 = vmatpush3.bf16.msra.mxu1 %v5375_v55  ;;  %v7455_v56 = vld [vmem:[#allocation38_spill] sm:$0xff]  ;;  %v5907_v55 = vld [vmem:[%s7244_s3 + $0xa8] ss:$12 sps:$4 sm:$0xff]  }
 0x3c3   :  { %1588 = vmatprep.subr.bf16.mxu0 %v5382_v62  ;;  %4005 = vmatprep.subr.bf16.mxu1 %v7399_v59  ;;  %v5913_v62 = vld [vmem:[%s7244_s3 + $0xb0] ss:$12 sps:$4 sm:$0xff]  }
 0x3c6   :  { %1589 = vmatpush1.bf16.msra.mxu0 %v5389_v53  ;;  %4006 = vmatpush3.bf16.msra.mxu1 %v5394_v54  ;;  %v5919_v53 = vld [vmem:[%s7244_s3 + $0xc4] ss:$12 sps:$4 sm:$0xff]   ;;  %v5928_v54 = vld [vmem:[%s7244_s3 + $0xc0] ss:$12 sps:$4 sm:$0xff]  }
 0x3c7   :  { %1590 = vmatprep.subr.bf16.mxu0 %v5401_v2  ;;  %4007 = vmatprep.subr.bf16.mxu1 %v7399_v59  ;;  %v5934_v2 = vld [vmem:[%s7244_s3 + $0xc8] ss:$12 sps:$4 sm:$0xff]  }
 0x3ca   :  { %1591 = vmatpush1.bf16.msra.mxu0 %v5408_v4  ;;  %4008 = vmatpush3.bf16.msra.mxu1 %v5413_v5  ;;  %v5940_v4 = vld [vmem:[%s7244_s3 + $0xdc] ss:$12 sps:$4 sm:$0xff]   ;;  %v5950_v5 = vld [vmem:[%s7244_s3 + $0xd8] ss:$12 sps:$4 sm:$0xff]  }
 0x3cb   :  { %1592 = vmatprep.subr.bf16.mxu0 %v7425_v63  ;;  %4009 = vmatprep.subr.bf16.mxu1 %v7399_v59  ;;  %v5988_v63 = vld [vmem:[%s7244_s3 + $0x108] ss:$12 sps:$4 sm:$0xff]  }
 0x3ce   :  { %1593 = vmatpush1.bf16.msra.mxu0 %v7426_v23  ;;  %4010 = vmatpush3.bf16.msra.mxu1 %v7427_v11  ;;  %v5994_v23 = vld [vmem:[%s7244_s3 + $0x110] ss:$12 sps:$4 sm:$0xff]  }
 0x3cf   :  { %1594 = vmatprep.subr.bf16.mxu0 %v7428_v6  ;;  %4011 = vmatprep.subr.bf16.mxu1 %v7399_v59  ;;  %v6000_v11 = vld [vmem:[%s7244_s3 + $0x124] ss:$12 sps:$4 sm:$0xff]   ;;  %v6007_v6 = vld [vmem:[%s7244_s3 + $0x120] ss:$12 sps:$4 sm:$0xff]  }
 0x3d0   :  { %7456 = vst [vmem:[#allocation40_spill] sm:$0xff] %v6007_v6 }
 0x3d2   :  { %1595 = vmatpush1.bf16.msra.mxu0 %v5446_v60  ;;  %4012 = vmatpush3.bf16.msra.mxu1 %v5451_v10  ;;  %v5872_v60 = vld [vmem:[%s7244_s3 + $0x50] ss:$12 sps:$4 sm:$0xff]   ;;  %v5956_v10 = vld [vmem:[%s7244_s3 + $0xe0] ss:$12 sps:$4 sm:$0xff]  }
 0x3d3   :  { %1596 = vmatprep.subr.bf16.mxu0 %v5458_v0  ;;  %4013 = vmatprep.subr.bf16.mxu1 %v7399_v59  ;;  %v5962_v0 = vld [vmem:[%s7244_s3 + $0xf4] ss:$12 sps:$4 sm:$0xff]  }
 0x3d6   :  { %1597 = vmatpush1.bf16.msra.mxu0 %v5465_v52  ;;  %4014 = vmatpush3.bf16.msra.mxu1 %v5470_v1  ;;  %v5969_v52 = vld [vmem:[%s7244_s3 + $0xf0] ss:$12 sps:$4 sm:$0xff]   ;;  %v5975_v1 = vld [vmem:[%s7244_s3 + $0xf8] ss:$12 sps:$4 sm:$0xff]  }
 0x3d7   :  { %1700 = vmatprep.subr.bf16.mxu0 %v5632_v21  ;;  %4019 = vmatprep.subr.bf16.mxu1 %v7399_v59 }
 0x3d9   :  { %1615 = vmatmul.mubr.bf16.vlgmr.msra.gmra.mrb[36].mxu0 %v1581_v3  ;;  %4016 = vmatmul.mubr.bf16.vlgmr.msra.gmra.mrb[40].mxu1 %v1581_v3 }
 0x3da   :  { %1701 = vmatpush1.bf16.msra.mxu0 %v5639_v22  ;;  %4020 = vmatpush3.bf16.msra.mxu1 %v5645_v29 }
 0x3db   :  { %1702 = vmatprep.subr.bf16.mxu0 %v5651_v50  ;;  %4021 = vmatprep.subr.bf16.mxu1 %v7399_v59 }
 0x3dc   :  { %1732 = vmatprep.mubr.bf16.mxu0 %v7400_v18  ;;  %4035 = vmatprep.mubr.msk.bf16.mxu1 %vm4846_vm1, %v7399_v59 }
 0x3de   :  { %1703 = vmatpush1.bf16.msra.mxu0 %v5661_v16  ;;  %4022 = vmatpush3.bf16.msra.mxu1 %v5667_v27 }
 0x3df   :  { %1704 = vmatprep.subr.bf16.mxu0 %v5673_v49  ;;  %4023 = vmatprep.subr.bf16.mxu1 %v7399_v59 }
 0x3e2   :  { %1705 = vmatpush1.bf16.msra.mxu0 %v5680_v26  ;;  %4024 = vmatpush3.bf16.msra.mxu1 %v5686_v24 }
 0x3e3   :  { %1706 = vmatprep.subr.bf16.mxu0 %v5692_v25  ;;  %4025 = vmatprep.subr.bf16.mxu1 %v7399_v59 }
 0x3e6   :  { %1707 = vmatpush1.bf16.msra.mxu0 %v5699_v8  ;;  %4026 = vmatpush3.bf16.msra.mxu1 %v5872_v60 }
 0x3e7   :  { %1708 = vmatprep.subr.bf16.mxu0 %v5706_v30  ;;  %4027 = vmatprep.subr.bf16.mxu1 %v7399_v59 }
 0x3ea   :  { %1709 = vmatpush1.bf16.msra.mxu0 %v5713_v17  ;;  %4028 = vmatpush3.bf16.msra.mxu1 %v5881_v12 }
 0x3eb   :  { %1710 = vmatprep.subr.bf16.mxu0 %v5720_v28  ;;  %4029 = vmatprep.subr.bf16.mxu1 %v7399_v59 }
 0x3ee   :  { %1711 = vmatpush1.bf16.msra.mxu0 %v7452_v20  ;;  %4030 = vmatpush3.bf16.msra.mxu1 %v5890_v61 }
 0x3ef   :  { %1712 = vmatprep.subr.bf16.mxu0 %v7453_v58  ;;  %4031 = vmatprep.subr.bf16.mxu1 %v7399_v59 }
 0x3f2   :  { %1713 = vmatpush1.bf16.msra.mxu0 %v7454_v57  ;;  %4032 = vmatpush3.bf16.msra.mxu1 %v5899_v13 }
 0x3f3   :  { %1714 = vmatprep.subr.bf16.mxu0 %v7455_v56  ;;  %4033 = vmatprep.subr.bf16.mxu1 %v7399_v59 }
 0x3f6   :  { %1715 = vmatpush1.bf16.msra.mxu0 %v5907_v55  ;;  %4034 = vmatpush3.bf16.msra.mxu1 %v5913_v62 }
 0x3f7   :  { %1804 = vmatprep.subr.bf16.mxu0 %v5919_v53  ;;  %4039 = vmatprep.subr.bf16.mxu1 %v7399_v59 }
 0x3f9   :  { %1733 = vmatmul.mubr.bf16.vlgmr.msra.gmra.mrb[40].mxu0 %v5812_v38  ;;  %4036 = vmatmul.mubr.bf16.vlgmr.msra.gmra.mrb[44].mxu1 %v5812_v38 }
 0x3fa   :  { %1805 = vmatpush1.bf16.msra.mxu0 %v5928_v54  ;;  %4040 = vmatpush3.bf16.msra.mxu1 %v5934_v2 }
 0x3fb   :  { %1806 = vmatprep.subr.bf16.mxu0 %v5940_v4  ;;  %4041 = vmatprep.subr.bf16.mxu1 %v7399_v59 }
 0x3fc   :  { %1836 = vmatprep.mubr.bf16.mxu0 %v7400_v18  ;;  %4055 = vmatprep.mubr.msk.bf16.mxu1 %vm4846_vm1, %v7399_v59 }
 0x3fe   :  { %1807 = vmatpush1.bf16.msra.mxu0 %v5950_v5  ;;  %4042 = vmatpush3.bf16.msra.mxu1 %v5956_v10 }
 0x3ff   :  { %1808 = vmatprep.subr.bf16.mxu0 %v5962_v0  ;;  %4043 = vmatprep.subr.bf16.mxu1 %v7399_v59 }
 0x402   :  { %1809 = vmatpush1.bf16.msra.mxu0 %v5969_v52  ;;  %4044 = vmatpush3.bf16.msra.mxu1 %v5975_v1 }
 0x403   :  { %1810 = vmatprep.subr.bf16.mxu0 %v5981_v19  ;;  %4045 = vmatprep.subr.bf16.mxu1 %v7399_v59 }
 0x406   :  { %1811 = vmatpush1.bf16.msra.mxu0 %v5988_v63  ;;  %4046 = vmatpush3.bf16.msra.mxu1 %v5994_v23 }
 0x407   :  { %1812 = vmatprep.subr.bf16.mxu0 %v6000_v11  ;;  %4047 = vmatprep.subr.bf16.mxu1 %v7399_v59 }
 0x40a   :  { %1813 = vmatpush1.bf16.msra.mxu0 %v6007_v6  ;;  %4048 = vmatpush3.bf16.msra.mxu1 %v6013_v40 }
 0x40b   :  { %1814 = vmatprep.subr.bf16.mxu0 %v6019_v7  ;;  %4049 = vmatprep.subr.bf16.mxu1 %v7399_v59 }
 0x40e   :  { %1815 = vmatpush1.bf16.msra.mxu0 %v6026_v35  ;;  %4050 = vmatpush3.bf16.msra.mxu1 %v6032_v39 }
 0x40f   :  { %1816 = vmatprep.subr.bf16.mxu0 %v6038_v36  ;;  %4051 = vmatprep.subr.bf16.mxu1 %v7399_v59  ;;  %v7469_v36 = vld [vmem:[#allocation41_spill] sm:$0xff] }
 0x412   :  { %1817 = vmatpush1.bf16.msra.mxu0 %v6045_v33  ;;  %4052 = vmatpush3.bf16.msra.mxu1 %v6051_v43 }
 0x413   :  { %1818 = vmatprep.subr.bf16.mxu0 %v6057_v51  ;;  %4053 = vmatprep.subr.bf16.mxu1 %v7399_v59 }
 0x416   :  { %1819 = vmatpush1.bf16.msra.mxu0 %v6064_v31  ;;  %4054 = vmatpush3.bf16.msra.mxu1 %v6070_v15 }
 0x417   :  { %1886 = vmatprep.subr.bf16.mxu0 %v6076_v42  ;;  %4059 = vmatprep.subr.bf16.mxu1 %v7399_v59 }
 0x48c   :  { %v1575_v44 = vpop.f32.mrb[36].mxu1 }
 0x48d   :  { %v3997_v34 = vpop.f32.mrb[37].mxu1 }
 0x48e   :  { %v1578_v46 = vpop.f32.mrb[38].mxu1 }
 0x48f   :  { %v3998_v47 = vpop.f32.mrb[39].mxu1  ;;  %v3550_v46 = vld [vmem:[%s7246_s1 + $0x18] sm:$0xff] }
 0x490   :  { %1993 = vperm.xlu1 %4411, %v3550_v46  }
 0x4ac   :  { %v1616_v48 = vpop.f32.mrb[36].mxu0  ;;  %v1657_v32 = vpop.f32.mrb[40].mxu1 }
 0x4ad   :  { %v4363_v38 = vadd.f32 %v1616_v48, %v7468_v37  ;;  %v1618_v3 = vpop.f32.mrb[37].mxu0  ;;  %v4017_v14 = vpop.f32.mrb[41].mxu1 }
 0x4ae   :  { %v1620_v15 = vpop.f32.mrb[38].mxu0  ;;  %v1660_v31 = vpop.f32.mrb[42].mxu1  ;;  %v4364_v39 = vadd.f32 %v1618_v3, %v7469_v36  ;;  %v7472_v36 = vld [vmem:[#allocation21_spill] sm:$0xff] }
 0x4af   :  { %v3543_v51 = vmul.f32 -1.442695, %v4363_v38  ;;  %v1621_v43 = vpop.f32.mrb[39].mxu0  ;;  %v4018_v33 = vpop.f32.mrb[43].mxu1  ;;  %v7470_v15 = vld [vmem:[#allocation42_spill] sm:$0xff] }
 0x4b0   :  { %v3544_v42 = vmul.f32 -1.442695, %v4364_v39  ;;  %v1677_v31 = vadd.f32 %v1657_v32, %v7470_v15  ;;  %v1576_v33 = vadd.f32 %v1575_v44, %v5575_v9 }
 0x4b1   :  { %4586 = vpow2.f32 %v3543_v51 }
 0x4b2   :  { %4588 = vpow2.f32 %v3544_v42 }
 0x4bb   :  { %v4587_v35 = vpop.eup %4586 }
 0x4bc   :  { %v1667_v34 = vadd.f32 1.0, %v4587_v35  ;;  %v4589_v47 = vpop.eup %4588  ;;  %v7471_v35 = vld [vmem:[#allocation20_spill] sm:$0xff] }
 0x4bd   :  { %v1674_v14 = vadd.f32 1.0, %v4589_v47 }
 0x4be   :  { %4590 = vrcp.f32 %v1667_v34 }
 0x4bf   :  { %4592 = vrcp.f32 %v1674_v14 }
 0x4c8   :  { %v4591_v48 = vpop.eup %4590 }
 0x4c9   :  { %v1678_v43 = vmul.f32 %v4591_v48, %v1677_v31  ;;  %v4593_v15 = vpop.eup %4592 }
 0x4ca   :  { %v1681_v31 = vsub.f32 1.0, %v4593_v15 }
 0x4cb   :  { %v1679_v51 = vadd.f32 %v1678_v43, %v1576_v33  ;;  %v1683_v33 = vmul.f32 %v4593_v15, %v5803_v41  ;;  %v6228_v41 = vld [vmem:[%s7244_s3 + $0x210] ss:$12 sps:$4 sm:$0xff]  }
 0x4cc   :  { %v1734_v39 = vpop.f32.mrb[40].mxu0  ;;  %v1775_v42 = vpop.f32.mrb[44].mxu1  ;;  %7478 = vst [vmem:[#allocation17_spill] sm:$0xff] %v6228_v41 }
 0x4cd   :  { %4594 = vtanh.f32 %v1679_v51  ;;  %v1781_v38 = vadd.f32 %v1734_v39, %v7471_v35  ;;  %v1736_v3 = vpop.f32.mrb[41].mxu0  ;;  %v4037_v34 = vpop.f32.mrb[45].mxu1 }
 0x4ce   :  { %v1788_v37 = vadd.f32 %v1736_v3, %v7472_v36  ;;  %v1738_v46 = vpop.f32.mrb[42].mxu0  ;;  %v1778_v7 = vpop.f32.mrb[46].mxu1  ;;  %v7474_v3 = vld [vmem:[#allocation23_spill] sm:$0xff] }
 0x4cf   :  { %v3546_v47 = vmul.f32 -1.442695, %v1781_v38  ;;  %v1739_v40 = vpop.f32.mrb[43].mxu0  ;;  %v4038_v32 = vpop.f32.mrb[47].mxu1 }
 0x4d0   :  { %v3547_v44 = vmul.f32 -1.442695, %v1788_v37  ;;  %v6095_v40 = vld [vmem:[%s7245_s5 + $0x2] ss:$0 sm:$0xff] }
 0x4d1   :  { %4596 = vpow2.f32 %v3546_v47  ;;  %v1795_v7 = vadd.f32 %v6095_v40, %v1775_v42  ;;  %v6111_v42 = vld [vmem:[%s7244_s3 + $0x180] ss:$12 sps:$4 sm:$0xff]  }
 0x4d2   :  { %4598 = vpow2.f32 %v3547_v44 }
 0x4d7   :  { %v4595_v14 = vpop.eup %4594 }
 0x4d8   :  { %v1682_v48 = vmul.f32 %v4595_v14, %v1681_v31 }
 0x4da   :  { %v6090_v43 = vadd.f32 %v1683_v33, %v1682_v48  ;;  %v6123_v48 = vld [vmem:[%s7244_s3 + $0x19c] ss:$12 sps:$4 sm:$0xff]   ;;  %v6133_v33 = vld [vmem:[%s7244_s3 + $0x198] ss:$12 sps:$4 sm:$0xff]  }
 0x4db   :  { %v4597_v51 = vpop.eup %4596 }
 0x4dc   :  { %7473 = vst [vmem:[#allocation14_spill] sm:$0xff] %v6090_v43  ;;  %v1785_v39 = vadd.f32 1.0, %v4597_v51  ;;  %v4599_v36 = vpop.eup %4598  ;;  %v6139_v51 = vld [vmem:[%s7244_s3 + $0x1a0] ss:$12 sps:$4 sm:$0xff]  }
 0x4dd   :  { %v1792_v35 = vadd.f32 1.0, %v4599_v36  ;;  %v6152_v36 = vld [vmem:[%s7244_s3 + $0x1b0] ss:$12 sps:$4 sm:$0xff]  }
 0x4de   :  { %4600 = vrcp.f32 %v1785_v39  ;;  %v6145_v39 = vld [vmem:[%s7244_s3 + $0x1b4] ss:$12 sps:$4 sm:$0xff]  }
 0x4df   :  { %4602 = vrcp.f32 %v1792_v35  ;;  %v6158_v35 = vld [vmem:[%s7244_s3 + $0x1b8] ss:$12 sps:$4 sm:$0xff]  }
 0x4e8   :  { %v4601_v37 = vpop.eup %4600 }
 0x4e9   :  { %v1796_v38 = vmul.f32 %v4601_v37, %v1795_v7  ;;  %v4603_v46 = vpop.eup %4602  ;;  %v6164_v7 = vld [vmem:[%s7244_s3 + $0x1cc] ss:$12 sps:$4 sm:$0xff]   ;;  %v6171_v37 = vld [vmem:[%s7244_s3 + $0x1c8] ss:$12 sps:$4 sm:$0xff]  }
 0x4ea   :  { %v1799_v47 = vsub.f32 1.0, %v4603_v46  ;;  %v1801_v44 = vmul.f32 %v4603_v46, %v5808_v45  ;;  %v6117_v45 = vld [vmem:[%s7244_s3 + $0x188] ss:$12 sps:$4 sm:$0xff]  }
 0x4eb   :  { %v1797_v34 = vadd.f32 %v1796_v38, %v7474_v3  ;;  %v6177_v38 = vld [vmem:[%s7244_s3 + $0x1d0] ss:$12 sps:$4 sm:$0xff]   ;;  %v6196_v46 = vld [vmem:[%s7244_s3 + $0x1e8] ss:$12 sps:$4 sm:$0xff]  }
 0x4ec   :  { %v6183_v3 = vld [vmem:[%s7244_s3 + $0x1e4] ss:$12 sps:$4 sm:$0xff]  }
 0x4ed   :  { %4604 = vtanh.f32 %v1797_v34  ;;  %v6190_v34 = vld [vmem:[%s7244_s3 + $0x1e0] ss:$12 sps:$4 sm:$0xff]  }
 0x4f7   :  { %v4605_v32 = vpop.eup %4604 }
 0x4f8   :  { %v1800_v15 = vmul.f32 %v4605_v32, %v1799_v47  ;;  %v6202_v47 = vld [vmem:[%s7244_s3 + $0x1fc] ss:$12 sps:$4 sm:$0xff]   ;;  %v6209_v32 = vld [vmem:[%s7244_s3 + $0x1f8] ss:$12 sps:$4 sm:$0xff]  }
 0x4f9   :  { %7475 = vst [vmem:[#allocation18_spill] sm:$0xff] %v6209_v32 }
 0x4fa   :  { %v6100_v31 = vadd.f32 %v1801_v44, %v1800_v15  ;;  %v6215_v15 = vld [vmem:[%s7244_s3 + $0x200] ss:$12 sps:$4 sm:$0xff]  }
 0x4fb   :  { %7476 = vst [vmem:[#allocation19_spill] sm:$0xff] %v6215_v15  ;;  %v6221_v44 = vld [vmem:[%s7244_s3 + $0x214] ss:$12 sps:$4 sm:$0xff]  }
 0x4fc   :  { %v6104_v14 = vpack.c.bf16 %v6100_v31, %v6100_v31  ;;  %7477 = vst [vmem:[#allocation22_spill] sm:$0xff] %v6221_v44 }
 0x4fe   :  { %1837 = vmatmul.mubr.bf16.vlgmr.msra.gmra.mrb[44].mxu0 %v6104_v14  ;;  %4056 = vmatmul.mubr.bf16.vlgmr.msra.gmra.mrb[48].mxu1 %v6104_v14 }
 0x4ff   :  { %1887 = vmatpush1.bf16.msra.mxu0 %v6111_v42  ;;  %4060 = vmatpush3.bf16.msra.mxu1 %v6117_v45 }
 0x500   :  { %1888 = vmatprep.subr.bf16.mxu0 %v6123_v48  ;;  %4061 = vmatprep.subr.bf16.mxu1 %v7399_v59 }
 0x501   :  { %1918 = vmatprep.mubr.bf16.mxu0 %v7400_v18  ;;  %4075 = vmatprep.mubr.msk.bf16.mxu1 %vm4846_vm1, %v7399_v59 }
 0x503   :  { %1889 = vmatpush1.bf16.msra.mxu0 %v6133_v33  ;;  %4062 = vmatpush3.bf16.msra.mxu1 %v6139_v51 }
 0x504   :  { %1890 = vmatprep.subr.bf16.mxu0 %v6145_v39  ;;  %4063 = vmatprep.subr.bf16.mxu1 %v7399_v59 }
 0x507   :  { %1891 = vmatpush1.bf16.msra.mxu0 %v6152_v36  ;;  %4064 = vmatpush3.bf16.msra.mxu1 %v6158_v35 }
 0x508   :  { %1892 = vmatprep.subr.bf16.mxu0 %v6164_v7  ;;  %4065 = vmatprep.subr.bf16.mxu1 %v7399_v59 }
 0x50b   :  { %1893 = vmatpush1.bf16.msra.mxu0 %v6171_v37  ;;  %4066 = vmatpush3.bf16.msra.mxu1 %v6177_v38 }
 0x50c   :  { %1894 = vmatprep.subr.bf16.mxu0 %v6183_v3  ;;  %4067 = vmatprep.subr.bf16.mxu1 %v7399_v59 }
 0x50f   :  { %1895 = vmatpush1.bf16.msra.mxu0 %v6190_v34  ;;  %4068 = vmatpush3.bf16.msra.mxu1 %v6196_v46 }
 0x510   :  { %1896 = vmatprep.subr.bf16.mxu0 %v6202_v47  ;;  %4069 = vmatprep.subr.bf16.mxu1 %v7399_v59 }
 0x513   :  { %1897 = vmatpush1.bf16.msra.mxu0 %v6209_v32  ;;  %4070 = vmatpush3.bf16.msra.mxu1 %v6215_v15  ;;  %v6234_v15 = vld [vmem:[%s7244_s3 + $0x218] ss:$12 sps:$4 sm:$0xff]   ;;  %v1885_v32 = vpack.c.bf16 %v6090_v43, %v6090_v43 }
 0x514   :  { %1898 = vmatprep.subr.bf16.mxu0 %v6221_v44  ;;  %4071 = vmatprep.subr.bf16.mxu1 %v7399_v59  ;;  %7479 = vst [vmem:[#allocation24_spill] sm:$0xff] %v6234_v15  ;;  %v6240_v44 = vld [vmem:[%s7244_s3 + $0x22c] ss:$12 sps:$4 sm:$0xff]  }
 0x517   :  { %1899 = vmatpush1.bf16.msra.mxu0 %v6228_v41  ;;  %4072 = vmatpush3.bf16.msra.mxu1 %v6234_v15  ;;  %v6247_v41 = vld [vmem:[%s7244_s3 + $0x228] ss:$12 sps:$4 sm:$0xff]   ;;  %v6253_v15 = vld [vmem:[%s7244_s3 + $0x230] ss:$12 sps:$4 sm:$0xff]  }
 0x518   :  { %1900 = vmatprep.subr.bf16.mxu0 %v6240_v44  ;;  %4073 = vmatprep.subr.bf16.mxu1 %v7399_v59 }
 0x51b   :  { %1901 = vmatpush1.bf16.msra.mxu0 %v6247_v41  ;;  %4074 = vmatpush3.bf16.msra.mxu1 %v6253_v15 }
 0x51c   :  { %2004 = vmatprep.subr.bf16.mxu0 %v5632_v21  ;;  %4079 = vmatprep.subr.bf16.mxu1 %v7399_v59  ;;  %v7480_v21 = vld [vmem:[#allocation3_spill] sm:$0xff] }
 0x51e   :  { %1919 = vmatmul.mubr.bf16.vlgmr.msra.gmra.mrb[44].mxu0 %v1885_v32  ;;  %4076 = vmatmul.mubr.bf16.vlgmr.msra.gmra.mrb[52].mxu1 %v1885_v32 }
 0x51f   :  { %2005 = vmatpush1.bf16.msra.mxu0 %v5639_v22  ;;  %4080 = vmatpush3.bf16.msra.mxu1 %v5645_v29  ;;  %v7481_v22 = vld [vmem:[#allocation4_spill] sm:$0xff]  ;;  %v7482_v29 = vld [vmem:[#allocation5_spill] sm:$0xff] }
 0x520   :  { %2006 = vmatprep.subr.bf16.mxu0 %v5651_v50  ;;  %4081 = vmatprep.subr.bf16.mxu1 %v7399_v59  ;;  %v7483_v50 = vld [vmem:[#allocation6_spill] sm:$0xff] }
 0x521   :  { %2036 = vmatprep.mubr.bf16.mxu0 %v7400_v18  ;;  %4095 = vmatprep.mubr.msk.bf16.mxu1 %vm4846_vm1, %v7399_v59 }
 0x523   :  { %2007 = vmatpush1.bf16.msra.mxu0 %v5661_v16  ;;  %4082 = vmatpush3.bf16.msra.mxu1 %v5667_v27  ;;  %v7484_v16 = vld [vmem:[#allocation7_spill] sm:$0xff]  ;;  %v7485_v27 = vld [vmem:[#allocation8_spill] sm:$0xff] }
 0x524   :  { %2008 = vmatprep.subr.bf16.mxu0 %v5673_v49  ;;  %4083 = vmatprep.subr.bf16.mxu1 %v7399_v59  ;;  %v7486_v49 = vld [vmem:[#allocation9_spill] sm:$0xff] }
 0x527   :  { %2009 = vmatpush1.bf16.msra.mxu0 %v5680_v26  ;;  %4084 = vmatpush3.bf16.msra.mxu1 %v5686_v24  ;;  %v7487_v26 = vld [vmem:[#allocation10_spill] sm:$0xff]  ;;  %v7488_v24 = vld [vmem:[#allocation11_spill] sm:$0xff] }
 0x528   :  { %2010 = vmatprep.subr.bf16.mxu0 %v5692_v25  ;;  %4085 = vmatprep.subr.bf16.mxu1 %v7399_v59  ;;  %v7489_v25 = vld [vmem:[#allocation12_spill] sm:$0xff] }
 0x52b   :  { %2011 = vmatpush1.bf16.msra.mxu0 %v5699_v8  ;;  %4086 = vmatpush3.bf16.msra.mxu1 %v5872_v60  ;;  %v7490_v8 = vld [vmem:[#allocation13_spill] sm:$0xff] }
 0x52c   :  { %2012 = vmatprep.subr.bf16.mxu0 %v5706_v30  ;;  %4087 = vmatprep.subr.bf16.mxu1 %v7399_v59 }
 0x52f   :  { %2013 = vmatpush1.bf16.msra.mxu0 %v5713_v17  ;;  %4088 = vmatpush3.bf16.msra.mxu1 %v5881_v12 }
 0x530   :  { %2014 = vmatprep.subr.bf16.mxu0 %v5720_v28  ;;  %4089 = vmatprep.subr.bf16.mxu1 %v7399_v59 }
 0x533   :  { %2015 = vmatpush1.bf16.msra.mxu0 %v7452_v20  ;;  %4090 = vmatpush3.bf16.msra.mxu1 %v5890_v61 }
 0x534   :  { %2016 = vmatprep.subr.bf16.mxu0 %v7453_v58  ;;  %4091 = vmatprep.subr.bf16.mxu1 %v7399_v59 }
 0x537   :  { %2017 = vmatpush1.bf16.msra.mxu0 %v7454_v57  ;;  %4092 = vmatpush3.bf16.msra.mxu1 %v5899_v13 }
 0x538   :  { %2018 = vmatprep.subr.bf16.mxu0 %v7455_v56  ;;  %4093 = vmatprep.subr.bf16.mxu1 %v7399_v59  ;;  %v7491_v56 = vld [vmem:[#allocation15_spill] sm:$0xff] }
 0x53b   :  { %2019 = vmatpush1.bf16.msra.mxu0 %v5907_v55  ;;  %4094 = vmatpush3.bf16.msra.mxu1 %v5913_v62 }
 0x53c   :  { %2108 = vmatprep.subr.bf16.mxu0 %v5919_v53  ;;  %4099 = vmatprep.subr.bf16.mxu1 %v7399_v59 }
 0x53e   :  { %2037 = vmatmul.mubr.bf16.vlgmr.msra.gmra.mrb[48].mxu0 %v6104_v14  ;;  %4096 = vmatmul.mubr.bf16.vlgmr.msra.gmra.mrb[56].mxu1 %v6104_v14 }
 0x53f   :  { %2109 = vmatpush1.bf16.msra.mxu0 %v5928_v54  ;;  %4100 = vmatpush3.bf16.msra.mxu1 %v5934_v2 }
 0x540   :  { %2110 = vmatprep.subr.bf16.mxu0 %v5940_v4  ;;  %4101 = vmatprep.subr.bf16.mxu1 %v7399_v59 }
 0x541   :  { %2140 = vmatprep.mubr.bf16.mxu0 %v7400_v18  ;;  %4115 = vmatprep.mubr.msk.bf16.mxu1 %vm4846_vm1, %v7399_v59 }
 0x543   :  { %2111 = vmatpush1.bf16.msra.mxu0 %v5950_v5  ;;  %4102 = vmatpush3.bf16.msra.mxu1 %v5956_v10 }
 0x544   :  { %2112 = vmatprep.subr.bf16.mxu0 %v5962_v0  ;;  %4103 = vmatprep.subr.bf16.mxu1 %v7399_v59 }
 0x547   :  { %2113 = vmatpush1.bf16.msra.mxu0 %v5969_v52  ;;  %4104 = vmatpush3.bf16.msra.mxu1 %v5975_v1 }
 0x548   :  { %2114 = vmatprep.subr.bf16.mxu0 %v5981_v19  ;;  %4105 = vmatprep.subr.bf16.mxu1 %v7399_v59 }
 0x54b   :  { %2115 = vmatpush1.bf16.msra.mxu0 %v5988_v63  ;;  %4106 = vmatpush3.bf16.msra.mxu1 %v5994_v23 }
 0x54c   :  { %2116 = vmatprep.subr.bf16.mxu0 %v6000_v11  ;;  %4107 = vmatprep.subr.bf16.mxu1 %v7399_v59 }
 0x54f   :  { %2117 = vmatpush1.bf16.msra.mxu0 %v6007_v6  ;;  %4108 = vmatpush3.bf16.msra.mxu1 %v7480_v21 }
 0x550   :  { %2118 = vmatprep.subr.bf16.mxu0 %v7481_v22  ;;  %4109 = vmatprep.subr.bf16.mxu1 %v7399_v59 }
 0x553   :  { %2119 = vmatpush1.bf16.msra.mxu0 %v7482_v29  ;;  %4110 = vmatpush3.bf16.msra.mxu1 %v7483_v50 }
 0x554   :  { %2120 = vmatprep.subr.bf16.mxu0 %v7484_v16  ;;  %4111 = vmatprep.subr.bf16.mxu1 %v7399_v59 }
 0x557   :  { %2121 = vmatpush1.bf16.msra.mxu0 %v7485_v27  ;;  %4112 = vmatpush3.bf16.msra.mxu1 %v7486_v49 }
 0x558   :  { %2122 = vmatprep.subr.bf16.mxu0 %v7487_v26  ;;  %4113 = vmatprep.subr.bf16.mxu1 %v7399_v59 }
 0x55b   :  { %2123 = vmatpush1.bf16.msra.mxu0 %v7488_v24  ;;  %4114 = vmatpush3.bf16.msra.mxu1 %v7489_v25  ;;  %v7492_v25 = vld [vmem:[#allocation41_spill] sm:$0xff] }
 0x55c   :  { %2190 = vmatprep.subr.bf16.mxu0 %v7490_v8  ;;  %4119 = vmatprep.subr.bf16.mxu1 %v7399_v59 }
 0x5d1   :  { %v1879_v30 = vpop.f32.mrb[48].mxu1 }
 0x5d2   :  { %v4057_v17 = vpop.f32.mrb[49].mxu1 }
 0x5d3   :  { %v1882_v28 = vpop.f32.mrb[50].mxu1 }
 0x5d4   :  { %v4058_v20 = vpop.f32.mrb[51].mxu1  ;;  %v3555_v28 = vld [vmem:[%s7246_s1 + $0x20] sm:$0xff] }
 0x5d5   :  { %2297 = vperm.xlu0 %4410, %v3555_v28   ;;  %v7495_v28 = vld [vmem:[#allocation26_spill] sm:$0xff] }
 0x5f1   :  { %v1920_v58 = vpop.f32.mrb[44].mxu0  ;;  %v1961_v57 = vpop.f32.mrb[52].mxu1 }
 0x5f2   :  { %v4365_v14 = vadd.f32 %v1920_v58, %v7491_v56  ;;  %v1922_v32 = vpop.f32.mrb[45].mxu0  ;;  %v4077_v26 = vpop.f32.mrb[53].mxu1  ;;  %v7494_v58 = vld [vmem:[#allocation25_spill] sm:$0xff] }
 0x5f3   :  { %v1924_v49 = vpop.f32.mrb[46].mxu0  ;;  %v1964_v27 = vpop.f32.mrb[54].mxu1  ;;  %v4366_v29 = vadd.f32 %v1922_v32, %v7492_v25 }
 0x5f4   :  { %v3548_v16 = vmul.f32 -1.442695, %v4365_v14  ;;  %v1925_v24 = vpop.f32.mrb[47].mxu0  ;;  %v4078_v50 = vpop.f32.mrb[55].mxu1  ;;  %v6340_v27 = vld [vmem:[%s7245_s5 + $0x3] ss:$0 sm:$0xff] }
 0x5f5   :  { %v3549_v8 = vmul.f32 -1.442695, %v4366_v29  ;;  %7493 = vst [vmem:[#allocation37_spill] sm:$0xff] %v6340_v27  ;;  %v1981_v50 = vadd.f32 %v6340_v27, %v1961_v57  ;;  %v1880_v29 = vadd.f32 %v1879_v30, %v5575_v9 }
 0x5f6   :  { %4606 = vpow2.f32 %v3548_v16 }
 0x5f7   :  { %4608 = vpow2.f32 %v3549_v8 }
 0x600   :  { %v4607_v22 = vpop.eup %4606 }
 0x601   :  { %v1971_v17 = vadd.f32 1.0, %v4607_v22  ;;  %v4609_v20 = vpop.eup %4608 }
 0x602   :  { %v1978_v26 = vadd.f32 1.0, %v4609_v20 }
 0x603   :  { %4610 = vrcp.f32 %v1971_v17 }
 0x604   :  { %4612 = vrcp.f32 %v1978_v26 }
 0x60d   :  { %v4611_v16 = vpop.eup %4610 }
 0x60e   :  { %v1982_v49 = vmul.f32 %v4611_v16, %v1981_v50  ;;  %v4613_v27 = vpop.eup %4612 }
 0x60f   :  { %v1985_v50 = vsub.f32 1.0, %v4613_v27 }
 0x610   :  { %v1983_v22 = vadd.f32 %v1982_v49, %v1880_v29  ;;  %v1987_v29 = vmul.f32 %v4613_v27, %v6090_v43  ;;  %v6507_v43 = vld [vmem:[%s7244_s3 + $0x90] ss:$12 sps:$4 sm:$0xff]  }
 0x611   :  { %v2038_v24 = vpop.f32.mrb[48].mxu0  ;;  %v2079_v8 = vpop.f32.mrb[56].mxu1  ;;  %7505 = vst [vmem:[#allocation21_spill] sm:$0xff] %v6507_v43 }
 0x612   :  { %4614 = vtanh.f32 %v1983_v22  ;;  %v2085_v14 = vadd.f32 %v2038_v24, %v7494_v58  ;;  %v2040_v32 = vpop.f32.mrb[49].mxu0  ;;  %v4097_v17 = vpop.f32.mrb[57].mxu1 }
 0x613   :  { %v2092_v20 = vadd.f32 %v2040_v32, %v7495_v28  ;;  %v2042_v25 = vpop.f32.mrb[50].mxu0  ;;  %v2082_v56 = vpop.f32.mrb[58].mxu1 }
 0x614   :  { %v3551_v21 = vmul.f32 -1.442695, %v2085_v14  ;;  %v2043_v6 = vpop.f32.mrb[51].mxu0  ;;  %v4098_v57 = vpop.f32.mrb[59].mxu1  ;;  %v2099_v56 = vadd.f32 %v6095_v40, %v2079_v8  ;;  %v7499_v8 = vld [vmem:[#allocation19_spill] sm:$0xff] }
 0x615   :  { %v3552_v30 = vmul.f32 -1.442695, %v2092_v20 }
 0x616   :  { %4616 = vpow2.f32 %v3551_v21  ;;  %v7497_v21 = vld [vmem:[#allocation30_spill] sm:$0xff] }
 0x617   :  { %4618 = vpow2.f32 %v3552_v30 }
 0x61c   :  { %v4615_v26 = vpop.eup %4614 }
 0x61d   :  { %v1986_v16 = vmul.f32 %v4615_v26, %v1985_v50  ;;  %v7500_v26 = vld [vmem:[#allocation22_spill] sm:$0xff] }
 0x61f   :  { %v6347_v49 = vadd.f32 %v1987_v29, %v1986_v16  ;;  %v7501_v16 = vld [vmem:[#allocation17_spill] sm:$0xff]  ;;  %v7502_v29 = vld [vmem:[#allocation24_spill] sm:$0xff] }
 0x620   :  { %v4617_v22 = vpop.eup %4616 }
 0x621   :  { %7496 = vst [vmem:[#allocation38_spill] sm:$0xff] %v6347_v49  ;;  %v2089_v24 = vadd.f32 1.0, %v4617_v22  ;;  %v4619_v58 = vpop.eup %4618  ;;  %v2189_v22 = vpack.c.bf16 %v6347_v49, %v6347_v49 }
 0x622   :  { %v2096_v25 = vadd.f32 1.0, %v4619_v58  ;;  %v6405_v58 = vld [vmem:[%s7244_s3] ss:$12 sps:$4 sm:$0xff]  }
 0x623   :  { %4620 = vrcp.f32 %v2089_v24  ;;  %v6398_v24 = vld [vmem:[%s7244_s3 + $0x4] ss:$12 sps:$4 sm:$0xff]  }
 0x624   :  { %4622 = vrcp.f32 %v2096_v25  ;;  %v6411_v25 = vld [vmem:[%s7244_s3 + $0x8] ss:$12 sps:$4 sm:$0xff]  }
 0x62d   :  { %v4621_v6 = vpop.eup %4620 }
 0x62e   :  { %v2100_v14 = vmul.f32 %v4621_v6, %v2099_v56  ;;  %v4623_v17 = vpop.eup %4622  ;;  %v6417_v56 = vld [vmem:[%s7244_s3 + $0x1c] ss:$12 sps:$4 sm:$0xff]   ;;  %v6427_v6 = vld [vmem:[%s7244_s3 + $0x18] ss:$12 sps:$4 sm:$0xff]  }
 0x62f   :  { %v2103_v28 = vsub.f32 1.0, %v4623_v17  ;;  %v2105_v27 = vmul.f32 %v4623_v17, %v6100_v31  ;;  %v7498_v31 = vld [vmem:[#allocation18_spill] sm:$0xff] }
 0x630   :  { %v2101_v32 = vadd.f32 %v2100_v14, %v7497_v21  ;;  %v6433_v14 = vld [vmem:[%s7244_s3 + $0x20] ss:$12 sps:$4 sm:$0xff]   ;;  %v6452_v17 = vld [vmem:[%s7244_s3 + $0x38] ss:$12 sps:$4 sm:$0xff]  }
 0x631   :  { %v6439_v21 = vld [vmem:[%s7244_s3 + $0x34] ss:$12 sps:$4 sm:$0xff]  }
 0x632   :  { %4624 = vtanh.f32 %v2101_v32  ;;  %v6446_v32 = vld [vmem:[%s7244_s3 + $0x30] ss:$12 sps:$4 sm:$0xff]  }
 0x63c   :  { %v4625_v20 = vpop.eup %4624 }
 0x63d   :  { %v2104_v57 = vmul.f32 %v4625_v20, %v2103_v28  ;;  %v6458_v28 = vld [vmem:[%s7244_s3 + $0x4c] ss:$12 sps:$4 sm:$0xff]   ;;  %v6465_v20 = vld [vmem:[%s7244_s3 + $0x48] ss:$12 sps:$4 sm:$0xff]  }
 0x63f   :  { %v6352_v30 = vadd.f32 %v2105_v27, %v2104_v57  ;;  %v6472_v57 = vld [vmem:[%s7244_s3 + $0x64] ss:$12 sps:$4 sm:$0xff]   ;;  %v6479_v27 = vld [vmem:[%s7244_s3 + $0x60] ss:$12 sps:$4 sm:$0xff]  }
 0x641   :  { %v6356_v50 = vpack.c.bf16 %v6352_v30, %v6352_v30 }
 0x643   :  { %2141 = vmatmul.mubr.bf16.vlgmr.msra.gmra.mrb[52].mxu0 %v6356_v50  ;;  %4116 = vmatmul.mubr.bf16.vlgmr.msra.gmra.mrb[60].mxu1 %v6356_v50 }
 0x644   :  { %2191 = vmatpush1.bf16.msra.mxu0 %v6111_v42  ;;  %4120 = vmatpush3.bf16.msra.mxu1 %v6117_v45 }
 0x645   :  { %2192 = vmatprep.subr.bf16.mxu0 %v6123_v48  ;;  %4121 = vmatprep.subr.bf16.mxu1 %v7399_v59 }
 0x646   :  { %2222 = vmatprep.mubr.bf16.mxu0 %v7400_v18  ;;  %4135 = vmatprep.mubr.msk.bf16.mxu1 %vm4846_vm1, %v7399_v59 }
 0x648   :  { %2193 = vmatpush1.bf16.msra.mxu0 %v6133_v33  ;;  %4122 = vmatpush3.bf16.msra.mxu1 %v6139_v51 }
 0x649   :  { %2194 = vmatprep.subr.bf16.mxu0 %v6145_v39  ;;  %4123 = vmatprep.subr.bf16.mxu1 %v7399_v59 }
 0x64c   :  { %2195 = vmatpush1.bf16.msra.mxu0 %v6152_v36  ;;  %4124 = vmatpush3.bf16.msra.mxu1 %v6158_v35 }
 0x64d   :  { %2196 = vmatprep.subr.bf16.mxu0 %v6164_v7  ;;  %4125 = vmatprep.subr.bf16.mxu1 %v7399_v59 }
 0x650   :  { %2197 = vmatpush1.bf16.msra.mxu0 %v6171_v37  ;;  %4126 = vmatpush3.bf16.msra.mxu1 %v6177_v38 }
 0x651   :  { %2198 = vmatprep.subr.bf16.mxu0 %v6183_v3  ;;  %4127 = vmatprep.subr.bf16.mxu1 %v7399_v59 }
 0x654   :  { %2199 = vmatpush1.bf16.msra.mxu0 %v6190_v34  ;;  %4128 = vmatpush3.bf16.msra.mxu1 %v6196_v46 }
 0x655   :  { %2200 = vmatprep.subr.bf16.mxu0 %v6202_v47  ;;  %4129 = vmatprep.subr.bf16.mxu1 %v7399_v59 }
 0x658   :  { %2201 = vmatpush1.bf16.msra.mxu0 %v7498_v31  ;;  %4130 = vmatpush3.bf16.msra.mxu1 %v7499_v8 }
 0x659   :  { %2202 = vmatprep.subr.bf16.mxu0 %v7500_v26  ;;  %4131 = vmatprep.subr.bf16.mxu1 %v7399_v59 }
 0x65c   :  { %2203 = vmatpush1.bf16.msra.mxu0 %v7501_v16  ;;  %4132 = vmatpush3.bf16.msra.mxu1 %v7502_v29 }
 0x65d   :  { %2204 = vmatprep.subr.bf16.mxu0 %v6240_v44  ;;  %4133 = vmatprep.subr.bf16.mxu1 %v7399_v59 }
 0x660   :  { %2205 = vmatpush1.bf16.msra.mxu0 %v6247_v41  ;;  %4134 = vmatpush3.bf16.msra.mxu1 %v6253_v15 }
 0x661   :  { %2308 = vmatprep.subr.bf16.mxu0 %v6398_v24  ;;  %4139 = vmatprep.subr.bf16.mxu1 %v7399_v59 }
 0x663   :  { %2223 = vmatmul.mubr.bf16.vlgmr.msra.gmra.mrb[52].mxu0 %v2189_v22  ;;  %4136 = vmatmul.mubr.bf16.vlgmr.msra.gmra.mrb[64].mxu1 %v2189_v22  ;;  %v6493_v22 = vld [vmem:[%s7244_s3 + $0x78] ss:$12 sps:$4 sm:$0xff]  }
 0x664   :  { %2309 = vmatpush1.bf16.msra.mxu0 %v6405_v58  ;;  %4140 = vmatpush3.bf16.msra.mxu1 %v6411_v25  ;;  %7503 = vst [vmem:[#allocation42_spill] sm:$0xff] %v6493_v22 }
 0x665   :  { %2310 = vmatprep.subr.bf16.mxu0 %v6417_v56  ;;  %4141 = vmatprep.subr.bf16.mxu1 %v7399_v59 }
 0x666   :  { %2340 = vmatprep.mubr.bf16.mxu0 %v7400_v18  ;;  %4155 = vmatprep.mubr.msk.bf16.mxu1 %vm4846_vm1, %v7399_v59 }
 0x668   :  { %2311 = vmatpush1.bf16.msra.mxu0 %v6427_v6  ;;  %4142 = vmatpush3.bf16.msra.mxu1 %v6433_v14 }
 0x669   :  { %2312 = vmatprep.subr.bf16.mxu0 %v6439_v21  ;;  %4143 = vmatprep.subr.bf16.mxu1 %v7399_v59 }
 0x66c   :  { %2313 = vmatpush1.bf16.msra.mxu0 %v6446_v32  ;;  %4144 = vmatpush3.bf16.msra.mxu1 %v6452_v17 }
 0x66d   :  { %2314 = vmatprep.subr.bf16.mxu0 %v6458_v28  ;;  %4145 = vmatprep.subr.bf16.mxu1 %v7399_v59 }
 0x670   :  { %2315 = vmatpush1.bf16.msra.mxu0 %v6465_v20  ;;  %4146 = vmatpush3.bf16.msra.mxu1 %v5872_v60  ;;  %v6486_v60 = vld [vmem:[%s7244_s3 + $0x7c] ss:$12 sps:$4 sm:$0xff]  }
 0x671   :  { %2316 = vmatprep.subr.bf16.mxu0 %v6472_v57  ;;  %4147 = vmatprep.subr.bf16.mxu1 %v7399_v59 }
 0x674   :  { %2317 = vmatpush1.bf16.msra.mxu0 %v6479_v27  ;;  %4148 = vmatpush3.bf16.msra.mxu1 %v5881_v12  ;;  %v6500_v12 = vld [vmem:[%s7244_s3 + $0x94] ss:$12 sps:$4 sm:$0xff]  }
 0x675   :  { %2318 = vmatprep.subr.bf16.mxu0 %v6486_v60  ;;  %4149 = vmatprep.subr.bf16.mxu1 %v7399_v59  ;;  %7504 = vst [vmem:[#allocation20_spill] sm:$0xff] %v6500_v12 }
 0x678   :  { %2319 = vmatpush1.bf16.msra.mxu0 %v6493_v22  ;;  %4150 = vmatpush3.bf16.msra.mxu1 %v5890_v61  ;;  %v6514_v61 = vld [vmem:[%s7244_s3 + $0xac] ss:$12 sps:$4 sm:$0xff]  }
 0x679   :  { %2320 = vmatprep.subr.bf16.mxu0 %v6500_v12  ;;  %4151 = vmatprep.subr.bf16.mxu1 %v7399_v59  ;;  %7506 = vst [vmem:[#allocation23_spill] sm:$0xff] %v6514_v61 }
 0x67c   :  { %2321 = vmatpush1.bf16.msra.mxu0 %v6507_v43  ;;  %4152 = vmatpush3.bf16.msra.mxu1 %v5899_v13  ;;  %v7507_v13 = vld [vmem:[#allocation40_spill] sm:$0xff] }
 0x67d   :  { %2322 = vmatprep.subr.bf16.mxu0 %v6514_v61  ;;  %4153 = vmatprep.subr.bf16.mxu1 %v7399_v59 }
 0x680   :  { %2323 = vmatpush1.bf16.msra.mxu0 %v5907_v55  ;;  %4154 = vmatpush3.bf16.msra.mxu1 %v5913_v62  ;;  %v7508_v55 = vld [vmem:[#allocation3_spill] sm:$0xff]  ;;  %v7509_v62 = vld [vmem:[#allocation4_spill] sm:$0xff] }
 0x681   :  { %2412 = vmatprep.subr.bf16.mxu0 %v5919_v53  ;;  %4159 = vmatprep.subr.bf16.mxu1 %v7399_v59  ;;  %v7510_v53 = vld [vmem:[#allocation5_spill] sm:$0xff] }
 0x683   :  { %2341 = vmatmul.mubr.bf16.vlgmr.msra.gmra.mrb[56].mxu0 %v6356_v50  ;;  %4156 = vmatmul.mubr.bf16.vlgmr.msra.gmra.mrb[68].mxu1 %v6356_v50 }
 0x684   :  { %2413 = vmatpush1.bf16.msra.mxu0 %v5928_v54  ;;  %4160 = vmatpush3.bf16.msra.mxu1 %v5934_v2  ;;  %v7511_v54 = vld [vmem:[#allocation6_spill] sm:$0xff]  ;;  %v7512_v2 = vld [vmem:[#allocation7_spill] sm:$0xff] }
 0x685   :  { %2414 = vmatprep.subr.bf16.mxu0 %v5940_v4  ;;  %4161 = vmatprep.subr.bf16.mxu1 %v7399_v59  ;;  %v7513_v4 = vld [vmem:[#allocation8_spill] sm:$0xff] }
 0x686   :  { %2444 = vmatprep.mubr.bf16.mxu0 %v7400_v18  ;;  %4175 = vmatprep.mubr.msk.bf16.mxu1 %vm4846_vm1, %v7399_v59 }
 0x688   :  { %2415 = vmatpush1.bf16.msra.mxu0 %v5950_v5  ;;  %4162 = vmatpush3.bf16.msra.mxu1 %v5956_v10  ;;  %v7514_v5 = vld [vmem:[#allocation9_spill] sm:$0xff]  ;;  %v7515_v10 = vld [vmem:[#allocation10_spill] sm:$0xff] }
 0x689   :  { %2416 = vmatprep.subr.bf16.mxu0 %v5962_v0  ;;  %4163 = vmatprep.subr.bf16.mxu1 %v7399_v59  ;;  %v7516_v0 = vld [vmem:[#allocation11_spill] sm:$0xff] }
 0x68c   :  { %2417 = vmatpush1.bf16.msra.mxu0 %v5969_v52  ;;  %4164 = vmatpush3.bf16.msra.mxu1 %v5975_v1  ;;  %v7517_v52 = vld [vmem:[#allocation12_spill] sm:$0xff]  ;;  %v7518_v1 = vld [vmem:[#allocation13_spill] sm:$0xff] }
 0x68d   :  { %2418 = vmatprep.subr.bf16.mxu0 %v5981_v19  ;;  %4165 = vmatprep.subr.bf16.mxu1 %v7399_v59 }
 0x690   :  { %2419 = vmatpush1.bf16.msra.mxu0 %v5988_v63  ;;  %4166 = vmatpush3.bf16.msra.mxu1 %v5994_v23 }
 0x691   :  { %2420 = vmatprep.subr.bf16.mxu0 %v6000_v11  ;;  %4167 = vmatprep.subr.bf16.mxu1 %v7399_v59 }
 0x694   :  { %2421 = vmatpush1.bf16.msra.mxu0 %v7507_v13  ;;  %4168 = vmatpush3.bf16.msra.mxu1 %v7508_v55  ;;  %v7519_v55 = vld [vmem:[#allocation15_spill] sm:$0xff] }
 0x695   :  { %2422 = vmatprep.subr.bf16.mxu0 %v7509_v62  ;;  %4169 = vmatprep.subr.bf16.mxu1 %v7399_v59 }
 0x698   :  { %2423 = vmatpush1.bf16.msra.mxu0 %v7510_v53  ;;  %4170 = vmatpush3.bf16.msra.mxu1 %v7511_v54 }
 0x699   :  { %2424 = vmatprep.subr.bf16.mxu0 %v7512_v2  ;;  %4171 = vmatprep.subr.bf16.mxu1 %v7399_v59 }
 0x69c   :  { %2425 = vmatpush1.bf16.msra.mxu0 %v7513_v4  ;;  %4172 = vmatpush3.bf16.msra.mxu1 %v7514_v5 }
 0x69d   :  { %2426 = vmatprep.subr.bf16.mxu0 %v7515_v10  ;;  %4173 = vmatprep.subr.bf16.mxu1 %v7399_v59 }
 0x6a0   :  { %2427 = vmatpush1.bf16.msra.mxu0 %v7516_v0  ;;  %4174 = vmatpush3.bf16.msra.mxu1 %v7517_v52  ;;  %v7520_v52 = vld [vmem:[#allocation41_spill] sm:$0xff] }
 0x6a1   :  { %2494 = vmatprep.subr.bf16.mxu0 %v7518_v1  ;;  %4179 = vmatprep.subr.bf16.mxu1 %v7399_v59 }
 0x716   :  { %v2183_v19 = vpop.f32.mrb[60].mxu1 }
 0x717   :  { %v4117_v63 = vpop.f32.mrb[61].mxu1 }
 0x718   :  { %v2186_v23 = vpop.f32.mrb[62].mxu1 }
 0x719   :  { %v4118_v11 = vpop.f32.mrb[63].mxu1  ;;  %v3560_v23 = vld [vmem:[%s7246_s1 + $0x28] sm:$0xff] }
 0x71a   :  { %2601 = vperm.xlu1 %4411, %v3560_v23  }
 0x736   :  { %v2224_v50 = vpop.f32.mrb[52].mxu0  ;;  %v2265_v13 = vpop.f32.mrb[64].mxu1 }
 0x737   :  { %v4367_v62 = vadd.f32 %v2224_v50, %v7519_v55  ;;  %v2226_v53 = vpop.f32.mrb[53].mxu0  ;;  %v4137_v54 = vpop.f32.mrb[65].mxu1 }
 0x738   :  { %v2228_v2 = vpop.f32.mrb[54].mxu0  ;;  %v2268_v4 = vpop.f32.mrb[66].mxu1  ;;  %v4368_v61 = vadd.f32 %v2226_v53, %v7520_v52  ;;  %v7521_v54 = vld [vmem:[#allocation37_spill] sm:$0xff]  ;;  %v7523_v52 = vld [vmem:[#allocation28_spill] sm:$0xff] }
 0x739   :  { %v3553_v5 = vmul.f32 -1.442695, %v4367_v62  ;;  %v2229_v10 = vpop.f32.mrb[55].mxu0  ;;  %v4138_v0 = vpop.f32.mrb[67].mxu1  ;;  %v2285_v2 = vadd.f32 %v7521_v54, %v2265_v13  ;;  %v2184_v4 = vadd.f32 %v2183_v19, %v5575_v9 }
 0x73a   :  { %v3554_v1 = vmul.f32 -1.442695, %v4368_v61 }
 0x73b   :  { %4626 = vpow2.f32 %v3553_v5 }
 0x73c   :  { %4628 = vpow2.f32 %v3554_v1 }
 0x745   :  { %v4627_v43 = vpop.eup %4626 }
 0x746   :  { %v2275_v63 = vadd.f32 1.0, %v4627_v43  ;;  %v4629_v11 = vpop.eup %4628  ;;  %v7522_v43 = vld [vmem:[#allocation27_spill] sm:$0xff] }
 0x747   :  { %v2282_v50 = vadd.f32 1.0, %v4629_v11 }
 0x748   :  { %4630 = vrcp.f32 %v2275_v63 }
 0x749   :  { %4632 = vrcp.f32 %v2282_v50 }
 0x752   :  { %v4631_v62 = vpop.eup %4630 }
 0x753   :  { %v2286_v10 = vmul.f32 %v4631_v62, %v2285_v2  ;;  %v4633_v54 = vpop.eup %4632 }
 0x754   :  { %v2289_v2 = vsub.f32 1.0, %v4633_v54 }
 0x755   :  { %v2287_v53 = vadd.f32 %v2286_v10, %v2184_v4  ;;  %v2291_v4 = vmul.f32 %v4633_v54, %v6347_v49 }
 0x756   :  { %v2342_v61 = vpop.f32.mrb[56].mxu0  ;;  %v2383_v5 = vpop.f32.mrb[68].mxu1 }
 0x757   :  { %4634 = vtanh.f32 %v2287_v53  ;;  %v2389_v0 = vadd.f32 %v2342_v61, %v7522_v43  ;;  %v2344_v1 = vpop.f32.mrb[57].mxu0  ;;  %v4157_v63 = vpop.f32.mrb[69].mxu1 }
 0x758   :  { %v2396_v55 = vadd.f32 %v2344_v1, %v7523_v52  ;;  %v2346_v23 = vpop.f32.mrb[58].mxu0  ;;  %v2386_v12 = vpop.f32.mrb[70].mxu1  ;;  %v7525_v1 = vld [vmem:[#allocation32_spill] sm:$0xff] }
 0x759   :  { %v3556_v11 = vmul.f32 -1.442695, %v2389_v0  ;;  %v2347_v22 = vpop.f32.mrb[59].mxu0  ;;  %v4158_v13 = vpop.f32.mrb[71].mxu1  ;;  %v2403_v12 = vadd.f32 %v6095_v40, %v2383_v5  ;;  %v6779_v5 = vld [vmem:[%s7244_s3 + $0x128] ss:$12 sps:$4 sm:$0xff]  }
 0x75a   :  { %v3557_v19 = vmul.f32 -1.442695, %v2396_v55  ;;  %7530 = vst [vmem:[#allocation26_spill] sm:$0xff] %v6779_v5 }
 0x75b   :  { %4636 = vpow2.f32 %v3556_v11 }
 0x75c   :  { %4638 = vpow2.f32 %v3557_v19 }
 0x761   :  { %v4635_v50 = vpop.eup %4634 }
 0x762   :  { %v2290_v62 = vmul.f32 %v4635_v50, %v2289_v2  ;;  %v6785_v50 = vld [vmem:[%s7244_s3 + $0x13c] ss:$12 sps:$4 sm:$0xff]  }
 0x763   :  { %7531 = vst [vmem:[#allocation30_spill] sm:$0xff] %v6785_v50 }
 0x764   :  { %v6569_v10 = vadd.f32 %v2291_v4, %v2290_v62  ;;  %v6792_v62 = vld [vmem:[%s7244_s3 + $0x138] ss:$12 sps:$4 sm:$0xff]   ;;  %v6798_v4 = vld [vmem:[%s7244_s3 + $0x140] ss:$12 sps:$4 sm:$0xff]  }
 0x765   :  { %v4637_v53 = vpop.eup %4636  ;;  %7532 = vst [vmem:[#allocation18_spill] sm:$0xff] %v6792_v62  ;;  %7533 = vst [vmem:[#allocation19_spill] sm:$0xff] %v6798_v4 }
 0x766   :  { %7524 = vst [vmem:[#allocation25_spill] sm:$0xff] %v6569_v10  ;;  %v2393_v61 = vadd.f32 1.0, %v4637_v53  ;;  %v4639_v52 = vpop.eup %4638  ;;  %v2493_v40 = vpack.c.bf16 %v6569_v10, %v6569_v10  ;;  %v6804_v53 = vld [vmem:[%s7244_s3 + $0x154] ss:$12 sps:$4 sm:$0xff]  }
 0x767   :  { %v2400_v43 = vadd.f32 1.0, %v4639_v52  ;;  %7534 = vst [vmem:[#allocation22_spill] sm:$0xff] %v6804_v53  ;;  %v6817_v52 = vld [vmem:[%s7244_s3 + $0x158] ss:$12 sps:$4 sm:$0xff]  }
 0x768   :  { %4640 = vrcp.f32 %v2393_v61  ;;  %v6811_v61 = vld [vmem:[%s7244_s3 + $0x150] ss:$12 sps:$4 sm:$0xff]   ;;  %7536 = vst [vmem:[#allocation24_spill] sm:$0xff] %v6817_v52 }
 0x769   :  { %4642 = vrcp.f32 %v2400_v43  ;;  %7535 = vst [vmem:[#allocation17_spill] sm:$0xff] %v6811_v61  ;;  %v6823_v43 = vld [vmem:[%s7244_s3 + $0x16c] ss:$12 sps:$4 sm:$0xff]  }
 0x76a   :  { %7537 = vst [vmem:[#allocation40_spill] sm:$0xff] %v6823_v43 }
 0x772   :  { %v4641_v22 = vpop.eup %4640 }
 0x773   :  { %v2404_v0 = vmul.f32 %v4641_v22, %v2403_v12  ;;  %v4643_v63 = vpop.eup %4642  ;;  %v6830_v12 = vld [vmem:[%s7244_s3 + $0x168] ss:$12 sps:$4 sm:$0xff]   ;;  %v6836_v22 = vld [vmem:[%s7244_s3 + $0x170] ss:$12 sps:$4 sm:$0xff]  }
 0x774   :  { %v2407_v23 = vsub.f32 1.0, %v4643_v63  ;;  %v2409_v54 = vmul.f32 %v4643_v63, %v6352_v30  ;;  %v6741_v30 = vld [vmem:[%s7244_s3 + $0xf8] ss:$12 sps:$4 sm:$0xff]   ;;  %7538 = vst [vmem:[#allocation3_spill] sm:$0xff] %v6830_v12  ;;  %7539 = vst [vmem:[#allocation4_spill] sm:$0xff] %v6836_v22 }
 0x775   :  { %v2405_v55 = vadd.f32 %v2404_v0, %v7525_v1  ;;  %v6842_v0 = vld [vmem:[%s7244_s3 + $0x184] ss:$12 sps:$4 sm:$0xff]  }
 0x776   :  { %7540 = vst [vmem:[#allocation5_spill] sm:$0xff] %v6842_v0 }
 0x777   :  { %4644 = vtanh.f32 %v2405_v55 }
 0x781   :  { %v4645_v11 = vpop.eup %4644 }
 0x782   :  { %v2408_v13 = vmul.f32 %v4645_v11, %v2407_v23 }
 0x784   :  { %v6574_v19 = vadd.f32 %v2409_v54, %v2408_v13  ;;  %v7541_v54 = vld [vmem:[#allocation15_spill] sm:$0xff] }
 0x786   :  { %v6578_v2 = vpack.c.bf16 %v6574_v19, %v6574_v19 }
 0x788   :  { %2445 = vmatmul.mubr.bf16.vlgmr.msra.gmra.mrb[60].mxu0 %v6578_v2  ;;  %4176 = vmatmul.mubr.bf16.vlgmr.msra.gmra.mrb[72].mxu1 %v6578_v2 }
 0x789   :  { %2495 = vmatpush1.bf16.msra.mxu0 %v6111_v42  ;;  %4180 = vmatpush3.bf16.msra.mxu1 %v6117_v45  ;;  %v6647_v42 = vld [vmem:[%s7244_s3 + $0x68] ss:$12 sps:$4 sm:$0xff]   ;;  %v7526_v45 = vld [vmem:[#allocation42_spill] sm:$0xff] }
 0x78a   :  { %2496 = vmatprep.subr.bf16.mxu0 %v6123_v48  ;;  %4181 = vmatprep.subr.bf16.mxu1 %v7399_v59  ;;  %v6656_v48 = vld [vmem:[%s7244_s3 + $0x80] ss:$12 sps:$4 sm:$0xff]  }
 0x78b   :  { %2526 = vmatprep.mubr.bf16.mxu0 %v7400_v18  ;;  %4195 = vmatprep.mubr.msk.bf16.mxu1 %vm4846_vm1, %v7399_v59 }
 0x78d   :  { %2497 = vmatpush1.bf16.msra.mxu0 %v6133_v33  ;;  %4182 = vmatpush3.bf16.msra.mxu1 %v6139_v51  ;;  %v7527_v33 = vld [vmem:[#allocation20_spill] sm:$0xff]  ;;  %v7528_v51 = vld [vmem:[#allocation21_spill] sm:$0xff] }
 0x78e   :  { %2498 = vmatprep.subr.bf16.mxu0 %v6145_v39  ;;  %4183 = vmatprep.subr.bf16.mxu1 %v7399_v59  ;;  %v6665_v39 = vld [vmem:[%s7244_s3 + $0x98] ss:$12 sps:$4 sm:$0xff]  }
 0x791   :  { %2499 = vmatpush1.bf16.msra.mxu0 %v6152_v36  ;;  %4184 = vmatpush3.bf16.msra.mxu1 %v6158_v35  ;;  %v7529_v36 = vld [vmem:[#allocation23_spill] sm:$0xff]  ;;  %v6673_v35 = vld [vmem:[%s7244_s3 + $0xa8] ss:$12 sps:$4 sm:$0xff]  }
 0x792   :  { %2500 = vmatprep.subr.bf16.mxu0 %v6164_v7  ;;  %4185 = vmatprep.subr.bf16.mxu1 %v7399_v59  ;;  %v6679_v7 = vld [vmem:[%s7244_s3 + $0xb0] ss:$12 sps:$4 sm:$0xff]  }
 0x795   :  { %2501 = vmatpush1.bf16.msra.mxu0 %v6171_v37  ;;  %4186 = vmatpush3.bf16.msra.mxu1 %v6177_v38  ;;  %v6685_v37 = vld [vmem:[%s7244_s3 + $0xc4] ss:$12 sps:$4 sm:$0xff]   ;;  %v6694_v38 = vld [vmem:[%s7244_s3 + $0xc0] ss:$12 sps:$4 sm:$0xff]  }
 0x796   :  { %2502 = vmatprep.subr.bf16.mxu0 %v6183_v3  ;;  %4187 = vmatprep.subr.bf16.mxu1 %v7399_v59  ;;  %v6700_v3 = vld [vmem:[%s7244_s3 + $0xc8] ss:$12 sps:$4 sm:$0xff]  }
 0x799   :  { %2503 = vmatpush1.bf16.msra.mxu0 %v6190_v34  ;;  %4188 = vmatpush3.bf16.msra.mxu1 %v6196_v46  ;;  %v6706_v34 = vld [vmem:[%s7244_s3 + $0xdc] ss:$12 sps:$4 sm:$0xff]   ;;  %v6716_v46 = vld [vmem:[%s7244_s3 + $0xd8] ss:$12 sps:$4 sm:$0xff]  }
 0x79a   :  { %2504 = vmatprep.subr.bf16.mxu0 %v6202_v47  ;;  %4189 = vmatprep.subr.bf16.mxu1 %v7399_v59  ;;  %v6722_v47 = vld [vmem:[%s7244_s3 + $0xe0] ss:$12 sps:$4 sm:$0xff]  }
 0x79d   :  { %2505 = vmatpush1.bf16.msra.mxu0 %v7498_v31  ;;  %4190 = vmatpush3.bf16.msra.mxu1 %v7499_v8  ;;  %v6747_v31 = vld [vmem:[%s7244_s3 + $0x10c] ss:$12 sps:$4 sm:$0xff]   ;;  %v6754_v8 = vld [vmem:[%s7244_s3 + $0x108] ss:$12 sps:$4 sm:$0xff]  }
 0x79e   :  { %2506 = vmatprep.subr.bf16.mxu0 %v7500_v26  ;;  %4191 = vmatprep.subr.bf16.mxu1 %v7399_v59  ;;  %v6760_v26 = vld [vmem:[%s7244_s3 + $0x110] ss:$12 sps:$4 sm:$0xff]  }
 0x7a1   :  { %2507 = vmatpush1.bf16.msra.mxu0 %v7501_v16  ;;  %4192 = vmatpush3.bf16.msra.mxu1 %v7502_v29  ;;  %v6766_v16 = vld [vmem:[%s7244_s3 + $0x124] ss:$12 sps:$4 sm:$0xff]   ;;  %v6773_v29 = vld [vmem:[%s7244_s3 + $0x120] ss:$12 sps:$4 sm:$0xff]  }
 0x7a2   :  { %2508 = vmatprep.subr.bf16.mxu0 %v6240_v44  ;;  %4193 = vmatprep.subr.bf16.mxu1 %v7399_v59  ;;  %v6735_v44 = vld [vmem:[%s7244_s3 + $0xf0] ss:$12 sps:$4 sm:$0xff]  }
 0x7a5   :  { %2509 = vmatpush1.bf16.msra.mxu0 %v6247_v41  ;;  %4194 = vmatpush3.bf16.msra.mxu1 %v6253_v15  ;;  %v6638_v41 = vld [vmem:[%s7244_s3 + $0x50] ss:$12 sps:$4 sm:$0xff]   ;;  %v6728_v15 = vld [vmem:[%s7244_s3 + $0xf4] ss:$12 sps:$4 sm:$0xff]  }
 0x7a6   :  { %2612 = vmatprep.subr.bf16.mxu0 %v6398_v24  ;;  %4199 = vmatprep.subr.bf16.mxu1 %v7399_v59 }
 0x7a8   :  { %2527 = vmatmul.mubr.bf16.vlgmr.msra.gmra.mrb[60].mxu0 %v2493_v40  ;;  %4196 = vmatmul.mubr.bf16.vlgmr.msra.gmra.mrb[76].mxu1 %v2493_v40 }
 0x7a9   :  { %2613 = vmatpush1.bf16.msra.mxu0 %v6405_v58  ;;  %4200 = vmatpush3.bf16.msra.mxu1 %v6411_v25 }
 0x7aa   :  { %2614 = vmatprep.subr.bf16.mxu0 %v6417_v56  ;;  %4201 = vmatprep.subr.bf16.mxu1 %v7399_v59 }
 0x7ab   :  { %2644 = vmatprep.mubr.bf16.mxu0 %v7400_v18  ;;  %4215 = vmatprep.mubr.msk.bf16.mxu1 %vm4846_vm1, %v7399_v59 }
 0x7ad   :  { %2615 = vmatpush1.bf16.msra.mxu0 %v6427_v6  ;;  %4202 = vmatpush3.bf16.msra.mxu1 %v6433_v14 }
 0x7ae   :  { %2616 = vmatprep.subr.bf16.mxu0 %v6439_v21  ;;  %4203 = vmatprep.subr.bf16.mxu1 %v7399_v59 }
 0x7b1   :  { %2617 = vmatpush1.bf16.msra.mxu0 %v6446_v32  ;;  %4204 = vmatpush3.bf16.msra.mxu1 %v6452_v17 }
 0x7b2   :  { %2618 = vmatprep.subr.bf16.mxu0 %v6458_v28  ;;  %4205 = vmatprep.subr.bf16.mxu1 %v7399_v59 }
 0x7b5   :  { %2619 = vmatpush1.bf16.msra.mxu0 %v6465_v20  ;;  %4206 = vmatpush3.bf16.msra.mxu1 %v6638_v41 }
 0x7b6   :  { %2620 = vmatprep.subr.bf16.mxu0 %v6472_v57  ;;  %4207 = vmatprep.subr.bf16.mxu1 %v7399_v59 }
 0x7b9   :  { %2621 = vmatpush1.bf16.msra.mxu0 %v6479_v27  ;;  %4208 = vmatpush3.bf16.msra.mxu1 %v6647_v42 }
 0x7ba   :  { %2622 = vmatprep.subr.bf16.mxu0 %v6486_v60  ;;  %4209 = vmatprep.subr.bf16.mxu1 %v7399_v59 }
 0x7bd   :  { %2623 = vmatpush1.bf16.msra.mxu0 %v7526_v45  ;;  %4210 = vmatpush3.bf16.msra.mxu1 %v6656_v48 }
 0x7be   :  { %2624 = vmatprep.subr.bf16.mxu0 %v7527_v33  ;;  %4211 = vmatprep.subr.bf16.mxu1 %v7399_v59 }
 0x7c1   :  { %2625 = vmatpush1.bf16.msra.mxu0 %v7528_v51  ;;  %4212 = vmatpush3.bf16.msra.mxu1 %v6665_v39 }
 0x7c2   :  { %2626 = vmatprep.subr.bf16.mxu0 %v7529_v36  ;;  %4213 = vmatprep.subr.bf16.mxu1 %v7399_v59 }
 0x7c5   :  { %2627 = vmatpush1.bf16.msra.mxu0 %v6673_v35  ;;  %4214 = vmatpush3.bf16.msra.mxu1 %v6679_v7 }
 0x7c6   :  { %2716 = vmatprep.subr.bf16.mxu0 %v6685_v37  ;;  %4219 = vmatprep.subr.bf16.mxu1 %v7399_v59 }
 0x7c8   :  { %2645 = vmatmul.mubr.bf16.vlgmr.msra.gmra.mrb[64].mxu0 %v6578_v2  ;;  %4216 = vmatmul.mubr.bf16.vlgmr.msra.gmra.mrb[80].mxu1 %v6578_v2 }
 0x7c9   :  { %2717 = vmatpush1.bf16.msra.mxu0 %v6694_v38  ;;  %4220 = vmatpush3.bf16.msra.mxu1 %v6700_v3 }
 0x7ca   :  { %2718 = vmatprep.subr.bf16.mxu0 %v6706_v34  ;;  %4221 = vmatprep.subr.bf16.mxu1 %v7399_v59 }
 0x7cb   :  { %2748 = vmatprep.mubr.bf16.mxu0 %v7400_v18  ;;  %4235 = vmatprep.mubr.msk.bf16.mxu1 %vm4846_vm1, %v7399_v59 }
 0x7cd   :  { %2719 = vmatpush1.bf16.msra.mxu0 %v6716_v46  ;;  %4222 = vmatpush3.bf16.msra.mxu1 %v6722_v47 }
 0x7ce   :  { %2720 = vmatprep.subr.bf16.mxu0 %v6728_v15  ;;  %4223 = vmatprep.subr.bf16.mxu1 %v7399_v59 }
 0x7d1   :  { %2721 = vmatpush1.bf16.msra.mxu0 %v6735_v44  ;;  %4224 = vmatpush3.bf16.msra.mxu1 %v6741_v30 }
 0x7d2   :  { %2722 = vmatprep.subr.bf16.mxu0 %v6747_v31  ;;  %4225 = vmatprep.subr.bf16.mxu1 %v7399_v59 }
 0x7d5   :  { %2723 = vmatpush1.bf16.msra.mxu0 %v6754_v8  ;;  %4226 = vmatpush3.bf16.msra.mxu1 %v6760_v26 }
 0x7d6   :  { %2724 = vmatprep.subr.bf16.mxu0 %v6766_v16  ;;  %4227 = vmatprep.subr.bf16.mxu1 %v7399_v59 }
 0x7d9   :  { %2725 = vmatpush1.bf16.msra.mxu0 %v6773_v29  ;;  %4228 = vmatpush3.bf16.msra.mxu1 %v6779_v5 }
 0x7da   :  { %2726 = vmatprep.subr.bf16.mxu0 %v6785_v50  ;;  %4229 = vmatprep.subr.bf16.mxu1 %v7399_v59 }
 0x7dd   :  { %2727 = vmatpush1.bf16.msra.mxu0 %v6792_v62  ;;  %4230 = vmatpush3.bf16.msra.mxu1 %v6798_v4 }
 0x7de   :  { %2728 = vmatprep.subr.bf16.mxu0 %v6804_v53  ;;  %4231 = vmatprep.subr.bf16.mxu1 %v7399_v59  ;;  %v7542_v53 = vld [vmem:[#allocation41_spill] sm:$0xff] }
 0x7e1   :  { %2729 = vmatpush1.bf16.msra.mxu0 %v6811_v61  ;;  %4232 = vmatpush3.bf16.msra.mxu1 %v6817_v52 }
 0x7e2   :  { %2730 = vmatprep.subr.bf16.mxu0 %v6823_v43  ;;  %4233 = vmatprep.subr.bf16.mxu1 %v7399_v59 }
 0x7e5   :  { %2731 = vmatpush1.bf16.msra.mxu0 %v6830_v12  ;;  %4234 = vmatpush3.bf16.msra.mxu1 %v6836_v22 }
 0x7e6   :  { %2798 = vmatprep.subr.bf16.mxu0 %v6842_v0  ;;  %4239 = vmatprep.subr.bf16.mxu1 %v7399_v59 }
 0x85b   :  { %v2487_v1 = vpop.f32.mrb[72].mxu1 }
 0x85c   :  { %v4177_v55 = vpop.f32.mrb[73].mxu1 }
 0x85d   :  { %v2490_v63 = vpop.f32.mrb[74].mxu1 }
 0x85e   :  { %v4178_v23 = vpop.f32.mrb[75].mxu1  ;;  %v3565_v63 = vld [vmem:[%s7246_s1 + $0x30] sm:$0xff] }
 0x85f   :  { %2905 = vperm.xlu0 %4410, %v3565_v63  }
 0x87b   :  { %v2528_v11 = vpop.f32.mrb[60].mxu0  ;;  %v2569_v13 = vpop.f32.mrb[76].mxu1 }
 0x87c   :  { %v4369_v2 = vadd.f32 %v2528_v11, %v7541_v54  ;;  %v2530_v40 = vpop.f32.mrb[61].mxu0  ;;  %v4197_v49 = vpop.f32.mrb[77].mxu1 }
 0x87d   :  { %v2532_v22 = vpop.f32.mrb[62].mxu0  ;;  %v2572_v12 = vpop.f32.mrb[78].mxu1  ;;  %v4370_v4 = vadd.f32 %v2530_v40, %v7542_v53  ;;  %v7545_v53 = vld [vmem:[#allocation34_spill] sm:$0xff] }
 0x87e   :  { %v3558_v43 = vmul.f32 -1.442695, %v4369_v2  ;;  %v2533_v52 = vpop.f32.mrb[63].mxu0  ;;  %v4198_v61 = vpop.f32.mrb[79].mxu1  ;;  %v7543_v22 = vld [vmem:[#allocation37_spill] sm:$0xff] }
 0x87f   :  { %v3559_v0 = vmul.f32 -1.442695, %v4370_v4  ;;  %v2589_v12 = vadd.f32 %v7543_v22, %v2569_v13  ;;  %v2488_v61 = vadd.f32 %v2487_v1, %v5575_v9 }
 0x880   :  { %4646 = vpow2.f32 %v3558_v43 }
 0x881   :  { %4648 = vpow2.f32 %v3559_v0 }
 0x88a   :  { %v4647_v62 = vpop.eup %4646 }
 0x88b   :  { %v2579_v55 = vadd.f32 1.0, %v4647_v62  ;;  %v4649_v23 = vpop.eup %4648  ;;  %v7544_v62 = vld [vmem:[#allocation33_spill] sm:$0xff] }
 0x88c   :  { %v2586_v49 = vadd.f32 1.0, %v4649_v23 }
 0x88d   :  { %4650 = vrcp.f32 %v2579_v55 }
 0x88e   :  { %4652 = vrcp.f32 %v2586_v49 }
 0x897   :  { %v4651_v11 = vpop.eup %4650 }
 0x898   :  { %v2590_v52 = vmul.f32 %v4651_v11, %v2589_v12  ;;  %v4653_v22 = vpop.eup %4652 }
 0x899   :  { %v2593_v12 = vsub.f32 1.0, %v4653_v22 }
 0x89a   :  { %v2591_v43 = vadd.f32 %v2590_v52, %v2488_v61  ;;  %v2595_v61 = vmul.f32 %v4653_v22, %v6569_v10  ;;  %v6994_v10 = vld [vmem:[%s7244_s3 + $0x210] ss:$12 sps:$4 sm:$0xff]  }
 0x89b   :  { %v2646_v4 = vpop.f32.mrb[64].mxu0  ;;  %v2687_v0 = vpop.f32.mrb[80].mxu1  ;;  %7550 = vst [vmem:[#allocation9_spill] sm:$0xff] %v6994_v10 }
 0x89c   :  { %4654 = vtanh.f32 %v2591_v43  ;;  %v2693_v2 = vadd.f32 %v2646_v4, %v7544_v62  ;;  %v2648_v40 = vpop.f32.mrb[65].mxu0  ;;  %v4217_v55 = vpop.f32.mrb[81].mxu1 }
 0x89d   :  { %v2700_v54 = vadd.f32 %v2648_v40, %v7545_v53  ;;  %v2650_v63 = vpop.f32.mrb[66].mxu0  ;;  %v2690_v50 = vpop.f32.mrb[82].mxu1  ;;  %v7546_v40 = vld [vmem:[#allocation29_spill] sm:$0xff] }
 0x89e   :  { %v3561_v23 = vmul.f32 -1.442695, %v2693_v2  ;;  %v2651_v5 = vpop.f32.mrb[67].mxu0  ;;  %v4218_v13 = vpop.f32.mrb[83].mxu1 }
 0x89f   :  { %v3562_v1 = vmul.f32 -1.442695, %v2700_v54  ;;  %v6861_v5 = vld [vmem:[%s7245_s5 + $0x2] ss:$0 sm:$0xff] }
 0x8a0   :  { %4656 = vpow2.f32 %v3561_v23  ;;  %v2707_v50 = vadd.f32 %v6861_v5, %v2687_v0  ;;  %v6877_v0 = vld [vmem:[%s7244_s3 + $0x180] ss:$12 sps:$4 sm:$0xff]  }
 0x8a1   :  { %4658 = vpow2.f32 %v3562_v1 }
 0x8a6   :  { %v4655_v49 = vpop.eup %4654 }
 0x8a7   :  { %v2594_v11 = vmul.f32 %v4655_v49, %v2593_v12 }
 0x8a9   :  { %v6856_v52 = vadd.f32 %v2595_v61, %v2594_v11  ;;  %v6889_v11 = vld [vmem:[%s7244_s3 + $0x19c] ss:$12 sps:$4 sm:$0xff]   ;;  %v6899_v61 = vld [vmem:[%s7244_s3 + $0x198] ss:$12 sps:$4 sm:$0xff]  }
 0x8aa   :  { %v4657_v43 = vpop.eup %4656 }
 0x8ab   :  { %v2697_v4 = vadd.f32 1.0, %v4657_v43  ;;  %v4659_v53 = vpop.eup %4658  ;;  %v6905_v43 = vld [vmem:[%s7244_s3 + $0x1a0] ss:$12 sps:$4 sm:$0xff]  }
 0x8ac   :  { %v2704_v62 = vadd.f32 1.0, %v4659_v53  ;;  %v6918_v53 = vld [vmem:[%s7244_s3 + $0x1b0] ss:$12 sps:$4 sm:$0xff]  }
 0x8ad   :  { %4660 = vrcp.f32 %v2697_v4  ;;  %v6911_v4 = vld [vmem:[%s7244_s3 + $0x1b4] ss:$12 sps:$4 sm:$0xff]  }
 0x8ae   :  { %4662 = vrcp.f32 %v2704_v62  ;;  %v6924_v62 = vld [vmem:[%s7244_s3 + $0x1b8] ss:$12 sps:$4 sm:$0xff]  }
 0x8b7   :  { %v4661_v54 = vpop.eup %4660 }
 0x8b8   :  { %v2708_v2 = vmul.f32 %v4661_v54, %v2707_v50  ;;  %v4663_v63 = vpop.eup %4662  ;;  %v6930_v50 = vld [vmem:[%s7244_s3 + $0x1cc] ss:$12 sps:$4 sm:$0xff]   ;;  %v6937_v54 = vld [vmem:[%s7244_s3 + $0x1c8] ss:$12 sps:$4 sm:$0xff]  }
 0x8b9   :  { %v2711_v23 = vsub.f32 1.0, %v4663_v63  ;;  %v2713_v1 = vmul.f32 %v4663_v63, %v6574_v19  ;;  %v6883_v19 = vld [vmem:[%s7244_s3 + $0x188] ss:$12 sps:$4 sm:$0xff]  }
 0x8ba   :  { %v2709_v55 = vadd.f32 %v2708_v2, %v7546_v40  ;;  %v6943_v2 = vld [vmem:[%s7244_s3 + $0x1d0] ss:$12 sps:$4 sm:$0xff]   ;;  %v6962_v63 = vld [vmem:[%s7244_s3 + $0x1e8] ss:$12 sps:$4 sm:$0xff]  }
 0x8bb   :  { %v6949_v40 = vld [vmem:[%s7244_s3 + $0x1e4] ss:$12 sps:$4 sm:$0xff]  }
 0x8bc   :  { %4664 = vtanh.f32 %v2709_v55  ;;  %v6956_v55 = vld [vmem:[%s7244_s3 + $0x1e0] ss:$12 sps:$4 sm:$0xff]  }
 0x8c6   :  { %v4665_v13 = vpop.eup %4664 }
 0x8c7   :  { %v2712_v22 = vmul.f32 %v4665_v13, %v2711_v23  ;;  %v6968_v23 = vld [vmem:[%s7244_s3 + $0x1fc] ss:$12 sps:$4 sm:$0xff]   ;;  %v6975_v13 = vld [vmem:[%s7244_s3 + $0x1f8] ss:$12 sps:$4 sm:$0xff]  }
 0x8c8   :  { %7547 = vst [vmem:[#allocation6_spill] sm:$0xff] %v6975_v13 }
 0x8c9   :  { %v6866_v12 = vadd.f32 %v2713_v1, %v2712_v22  ;;  %v6981_v22 = vld [vmem:[%s7244_s3 + $0x200] ss:$12 sps:$4 sm:$0xff]  }
 0x8ca   :  { %7548 = vst [vmem:[#allocation7_spill] sm:$0xff] %v6981_v22  ;;  %v6987_v1 = vld [vmem:[%s7244_s3 + $0x214] ss:$12 sps:$4 sm:$0xff]  }
 0x8cb   :  { %v6870_v49 = vpack.c.bf16 %v6866_v12, %v6866_v12  ;;  %7549 = vst [vmem:[#allocation8_spill] sm:$0xff] %v6987_v1 }
 0x8cd   :  { %2749 = vmatmul.mubr.bf16.vlgmr.msra.gmra.mrb[68].mxu0 %v6870_v49  ;;  %4236 = vmatmul.mubr.bf16.vlgmr.msra.gmra.mrb[84].mxu1 %v6870_v49 }
 0x8ce   :  { %2799 = vmatpush1.bf16.msra.mxu0 %v6877_v0  ;;  %4240 = vmatpush3.bf16.msra.mxu1 %v6883_v19 }
 0x8cf   :  { %2800 = vmatprep.subr.bf16.mxu0 %v6889_v11  ;;  %4241 = vmatprep.subr.bf16.mxu1 %v7399_v59 }
 0x8d0   :  { %2830 = vmatprep.mubr.bf16.mxu0 %v7400_v18  ;;  %4255 = vmatprep.mubr.msk.bf16.mxu1 %vm4846_vm1, %v7399_v59 }
 0x8d2   :  { %2801 = vmatpush1.bf16.msra.mxu0 %v6899_v61  ;;  %4242 = vmatpush3.bf16.msra.mxu1 %v6905_v43 }
 0x8d3   :  { %2802 = vmatprep.subr.bf16.mxu0 %v6911_v4  ;;  %4243 = vmatprep.subr.bf16.mxu1 %v7399_v59 }
 0x8d6   :  { %2803 = vmatpush1.bf16.msra.mxu0 %v6918_v53  ;;  %4244 = vmatpush3.bf16.msra.mxu1 %v6924_v62 }
 0x8d7   :  { %2804 = vmatprep.subr.bf16.mxu0 %v6930_v50  ;;  %4245 = vmatprep.subr.bf16.mxu1 %v7399_v59 }
 0x8da   :  { %2805 = vmatpush1.bf16.msra.mxu0 %v6937_v54  ;;  %4246 = vmatpush3.bf16.msra.mxu1 %v6943_v2 }
 0x8db   :  { %2806 = vmatprep.subr.bf16.mxu0 %v6949_v40  ;;  %4247 = vmatprep.subr.bf16.mxu1 %v7399_v59 }
 0x8de   :  { %2807 = vmatpush1.bf16.msra.mxu0 %v6956_v55  ;;  %4248 = vmatpush3.bf16.msra.mxu1 %v6962_v63 }
 0x8df   :  { %2808 = vmatprep.subr.bf16.mxu0 %v6968_v23  ;;  %4249 = vmatprep.subr.bf16.mxu1 %v7399_v59 }
 0x8e2   :  { %2809 = vmatpush1.bf16.msra.mxu0 %v6975_v13  ;;  %4250 = vmatpush3.bf16.msra.mxu1 %v6981_v22  ;;  %v7000_v22 = vld [vmem:[%s7244_s3 + $0x218] ss:$12 sps:$4 sm:$0xff]   ;;  %v2797_v13 = vpack.c.bf16 %v6856_v52, %v6856_v52 }
 0x8e3   :  { %2810 = vmatprep.subr.bf16.mxu0 %v6987_v1  ;;  %4251 = vmatprep.subr.bf16.mxu1 %v7399_v59  ;;  %7551 = vst [vmem:[#allocation10_spill] sm:$0xff] %v7000_v22  ;;  %v7006_v1 = vld [vmem:[%s7244_s3 + $0x22c] ss:$12 sps:$4 sm:$0xff]  }
 0x8e6   :  { %2811 = vmatpush1.bf16.msra.mxu0 %v6994_v10  ;;  %4252 = vmatpush3.bf16.msra.mxu1 %v7000_v22  ;;  %v7013_v10 = vld [vmem:[%s7244_s3 + $0x228] ss:$12 sps:$4 sm:$0xff]   ;;  %v7019_v22 = vld [vmem:[%s7244_s3 + $0x230] ss:$12 sps:$4 sm:$0xff]  }
 0x8e7   :  { %2812 = vmatprep.subr.bf16.mxu0 %v7006_v1  ;;  %4253 = vmatprep.subr.bf16.mxu1 %v7399_v59 }
 0x8ea   :  { %2813 = vmatpush1.bf16.msra.mxu0 %v7013_v10  ;;  %4254 = vmatpush3.bf16.msra.mxu1 %v7019_v22 }
 0x8eb   :  { %2916 = vmatprep.subr.bf16.mxu0 %v6398_v24  ;;  %4259 = vmatprep.subr.bf16.mxu1 %v7399_v59  ;;  %v7552_v24 = vld [vmem:[#allocation26_spill] sm:$0xff] }
 0x8ed   :  { %2831 = vmatmul.mubr.bf16.vlgmr.msra.gmra.mrb[68].mxu0 %v2797_v13  ;;  %4256 = vmatmul.mubr.bf16.vlgmr.msra.gmra.mrb[88].mxu1 %v2797_v13 }
 0x8ee   :  { %2917 = vmatpush1.bf16.msra.mxu0 %v6405_v58  ;;  %4260 = vmatpush3.bf16.msra.mxu1 %v6411_v25  ;;  %v7553_v58 = vld [vmem:[#allocation30_spill] sm:$0xff] }
 0x8ef   :  { %2918 = vmatprep.subr.bf16.mxu0 %v6417_v56  ;;  %4261 = vmatprep.subr.bf16.mxu1 %v7399_v59  ;;  %v7554_v25 = vld [vmem:[#allocation18_spill] sm:$0xff]  ;;  %v7555_v56 = vld [vmem:[#allocation19_spill] sm:$0xff] }
 0x8f0   :  { %2948 = vmatprep.mubr.bf16.mxu0 %v7400_v18  ;;  %4275 = vmatprep.mubr.msk.bf16.mxu1 %vm4846_vm1, %v7399_v59 }
 0x8f2   :  { %2919 = vmatpush1.bf16.msra.mxu0 %v6427_v6  ;;  %4262 = vmatpush3.bf16.msra.mxu1 %v6433_v14  ;;  %v7556_v6 = vld [vmem:[#allocation22_spill] sm:$0xff]  ;;  %v7557_v14 = vld [vmem:[#allocation17_spill] sm:$0xff] }
 0x8f3   :  { %2920 = vmatprep.subr.bf16.mxu0 %v6439_v21  ;;  %4263 = vmatprep.subr.bf16.mxu1 %v7399_v59  ;;  %v7558_v21 = vld [vmem:[#allocation24_spill] sm:$0xff] }
 0x8f6   :  { %2921 = vmatpush1.bf16.msra.mxu0 %v6446_v32  ;;  %4264 = vmatpush3.bf16.msra.mxu1 %v6452_v17  ;;  %v7559_v32 = vld [vmem:[#allocation40_spill] sm:$0xff]  ;;  %v7560_v17 = vld [vmem:[#allocation3_spill] sm:$0xff] }
 0x8f7   :  { %2922 = vmatprep.subr.bf16.mxu0 %v6458_v28  ;;  %4265 = vmatprep.subr.bf16.mxu1 %v7399_v59  ;;  %v7561_v28 = vld [vmem:[#allocation4_spill] sm:$0xff] }
 0x8fa   :  { %2923 = vmatpush1.bf16.msra.mxu0 %v6465_v20  ;;  %4266 = vmatpush3.bf16.msra.mxu1 %v6638_v41  ;;  %v7562_v20 = vld [vmem:[#allocation5_spill] sm:$0xff] }
 0x8fb   :  { %2924 = vmatprep.subr.bf16.mxu0 %v6472_v57  ;;  %4267 = vmatprep.subr.bf16.mxu1 %v7399_v59 }
 0x8fe   :  { %2925 = vmatpush1.bf16.msra.mxu0 %v6479_v27  ;;  %4268 = vmatpush3.bf16.msra.mxu1 %v6647_v42  ;;  %v3570_v42 = vld [vmem:[%s7246_s1 + $0x38] sm:$0xff] }
 0x8ff   :  { %2926 = vmatprep.subr.bf16.mxu0 %v6486_v60  ;;  %4269 = vmatprep.subr.bf16.mxu1 %v7399_v59 }
 0x900   :  { %3209 = vperm.xlu1 %4411, %v3570_v42  }
 0x902   :  { %2927 = vmatpush1.bf16.msra.mxu0 %v7526_v45  ;;  %4270 = vmatpush3.bf16.msra.mxu1 %v6656_v48 }
 0x903   :  { %2928 = vmatprep.subr.bf16.mxu0 %v7527_v33  ;;  %4271 = vmatprep.subr.bf16.mxu1 %v7399_v59  ;;  %v7563_v33 = vld [vmem:[#allocation15_spill] sm:$0xff] }
 0x906   :  { %2929 = vmatpush1.bf16.msra.mxu0 %v7528_v51  ;;  %4272 = vmatpush3.bf16.msra.mxu1 %v6665_v39 }
 0x907   :  { %2930 = vmatprep.subr.bf16.mxu0 %v7529_v36  ;;  %4273 = vmatprep.subr.bf16.mxu1 %v7399_v59 }
 0x90a   :  { %2931 = vmatpush1.bf16.msra.mxu0 %v6673_v35  ;;  %4274 = vmatpush3.bf16.msra.mxu1 %v6679_v7 }
 0x90b   :  { %3020 = vmatprep.subr.bf16.mxu0 %v6685_v37  ;;  %4279 = vmatprep.subr.bf16.mxu1 %v7399_v59 }
 0x90d   :  { %2949 = vmatmul.mubr.bf16.vlgmr.msra.gmra.mrb[72].mxu0 %v6870_v49  ;;  %4276 = vmatmul.mubr.bf16.vlgmr.msra.gmra.mrb[92].mxu1 %v6870_v49 }
 0x90e   :  { %3021 = vmatpush1.bf16.msra.mxu0 %v6694_v38  ;;  %4280 = vmatpush3.bf16.msra.mxu1 %v6700_v3 }
 0x90f   :  { %3022 = vmatprep.subr.bf16.mxu0 %v6706_v34  ;;  %4281 = vmatprep.subr.bf16.mxu1 %v7399_v59  ;;  %v7564_v34 = vld [vmem:[#allocation41_spill] sm:$0xff] }
 0x910   :  { %3052 = vmatprep.mubr.bf16.mxu0 %v7400_v18  ;;  %4295 = vmatprep.mubr.msk.bf16.mxu1 %vm4846_vm1, %v7399_v59 }
 0x912   :  { %3023 = vmatpush1.bf16.msra.mxu0 %v6716_v46  ;;  %4282 = vmatpush3.bf16.msra.mxu1 %v6722_v47 }
 0x913   :  { %3024 = vmatprep.subr.bf16.mxu0 %v6728_v15  ;;  %4283 = vmatprep.subr.bf16.mxu1 %v7399_v59 }
 0x916   :  { %3025 = vmatpush1.bf16.msra.mxu0 %v6735_v44  ;;  %4284 = vmatpush3.bf16.msra.mxu1 %v6741_v30 }
 0x917   :  { %3026 = vmatprep.subr.bf16.mxu0 %v6747_v31  ;;  %4285 = vmatprep.subr.bf16.mxu1 %v7399_v59 }
 0x91a   :  { %3027 = vmatpush1.bf16.msra.mxu0 %v6754_v8  ;;  %4286 = vmatpush3.bf16.msra.mxu1 %v6760_v26  ;;  %v7106_v8 = vld [vmem:[%s7245_s5 + $0x3] ss:$0 sm:$0xff] }
 0x91b   :  { %3028 = vmatprep.subr.bf16.mxu0 %v6766_v16  ;;  %4287 = vmatprep.subr.bf16.mxu1 %v7399_v59 }
 0x91e   :  { %3029 = vmatpush1.bf16.msra.mxu0 %v6773_v29  ;;  %4288 = vmatpush3.bf16.msra.mxu1 %v7552_v24 }
 0x91f   :  { %3030 = vmatprep.subr.bf16.mxu0 %v7553_v58  ;;  %4289 = vmatprep.subr.bf16.mxu1 %v7399_v59 }
 0x922   :  { %3031 = vmatpush1.bf16.msra.mxu0 %v7554_v25  ;;  %4290 = vmatpush3.bf16.msra.mxu1 %v7555_v56  ;;  %v7565_v25 = vld [vmem:[#allocation35_spill] sm:$0xff] }
 0x923   :  { %3032 = vmatprep.subr.bf16.mxu0 %v7556_v6  ;;  %4291 = vmatprep.subr.bf16.mxu1 %v7399_v59 }
 0x926   :  { %3033 = vmatpush1.bf16.msra.mxu0 %v7557_v14  ;;  %4292 = vmatpush3.bf16.msra.mxu1 %v7558_v21  ;;  %v7566_v21 = vld [vmem:[#allocation36_spill] sm:$0xff] }
 0x927   :  { %3034 = vmatprep.subr.bf16.mxu0 %v7559_v32  ;;  %4293 = vmatprep.subr.bf16.mxu1 %v7399_v59 }
 0x92a   :  { %3035 = vmatpush1.bf16.msra.mxu0 %v7560_v17  ;;  %4294 = vmatpush3.bf16.msra.mxu1 %v7561_v28 }
 0x92b   :  { %3102 = vmatprep.subr.bf16.mxu0 %v7562_v20  ;;  %4299 = vmatprep.subr.bf16.mxu1 %v7399_v59 }
 0x9a0   :  { %v2791_v57 = vpop.f32.mrb[84].mxu1 }
 0x9a1   :  { %v4237_v27 = vpop.f32.mrb[85].mxu1  ;;  %v2792_v29 = vadd.f32 %v2791_v57, %v5575_v9 }
 0x9a2   :  { %v2794_v60 = vpop.f32.mrb[86].mxu1 }
 0x9a3   :  { %v4238_v41 = vpop.f32.mrb[87].mxu1 }
 0x9c0   :  { %v2832_v45 = vpop.f32.mrb[68].mxu0  ;;  %v2873_v48 = vpop.f32.mrb[88].mxu1 }
 0x9c1   :  { %v4371_v51 = vadd.f32 %v2832_v45, %v7563_v33  ;;  %v2834_v39 = vpop.f32.mrb[69].mxu0  ;;  %v4257_v36 = vpop.f32.mrb[89].mxu1  ;;  %v2893_v26 = vadd.f32 %v7106_v8, %v2873_v48 }
 0x9c2   :  { %v2836_v35 = vpop.f32.mrb[70].mxu0  ;;  %v2876_v7 = vpop.f32.mrb[90].mxu1  ;;  %v4372_v46 = vadd.f32 %v2834_v39, %v7564_v34 }
 0x9c3   :  { %v3563_v37 = vmul.f32 -1.442695, %v4371_v51  ;;  %v2837_v38 = vpop.f32.mrb[71].mxu0  ;;  %v4258_v3 = vpop.f32.mrb[91].mxu1 }
 0x9c4   :  { %v3564_v47 = vmul.f32 -1.442695, %v4372_v46 }
 0x9c5   :  { %4666 = vpow2.f32 %v3563_v37 }
 0x9c6   :  { %4668 = vpow2.f32 %v3564_v47  ;;  %v7567_v47 = vld [vmem:[#allocation31_spill] sm:$0xff] }
 0x9cf   :  { %v4667_v15 = vpop.eup %4666 }
 0x9d0   :  { %v2883_v44 = vadd.f32 1.0, %v4667_v15  ;;  %v4669_v30 = vpop.eup %4668 }
 0x9d1   :  { %v2890_v31 = vadd.f32 1.0, %v4669_v30 }
 0x9d2   :  { %4670 = vrcp.f32 %v2883_v44 }
 0x9d3   :  { %4672 = vrcp.f32 %v2890_v31 }
 0x9dc   :  { %v4671_v16 = vpop.eup %4670 }
 0x9dd   :  { %v2894_v49 = vmul.f32 %v4671_v16, %v2893_v26  ;;  %v4673_v41 = vpop.eup %4672 }
 0x9de   :  { %v2897_v42 = vsub.f32 1.0, %v4673_v41  ;;  %v2899_v51 = vmul.f32 %v4673_v41, %v6856_v52 }
 0x9df   :  { %v2895_v13 = vadd.f32 %v2894_v49, %v2792_v29 }
 0x9e0   :  { %v2950_v24 = vpop.f32.mrb[72].mxu0  ;;  %v2991_v58 = vpop.f32.mrb[92].mxu1 }
 0x9e1   :  { %4674 = vtanh.f32 %v2895_v13  ;;  %v2997_v56 = vadd.f32 %v2950_v24, %v7565_v25  ;;  %v2952_v6 = vpop.f32.mrb[73].mxu0  ;;  %v4277_v14 = vpop.f32.mrb[93].mxu1  ;;  %v3011_v38 = vadd.f32 %v6861_v5, %v2991_v58  ;;  %v7569_v5 = vld [vmem:[#allocation7_spill] sm:$0xff] }
 0x9e2   :  { %v3004_v32 = vadd.f32 %v2952_v6, %v7566_v21  ;;  %v2954_v17 = vpop.f32.mrb[74].mxu0  ;;  %v2994_v28 = vpop.f32.mrb[94].mxu1 }
 0x9e3   :  { %v3566_v20 = vmul.f32 -1.442695, %v2997_v56  ;;  %v2955_v27 = vpop.f32.mrb[75].mxu0  ;;  %v4278_v60 = vpop.f32.mrb[95].mxu1 }
 0x9e4   :  { %v3567_v57 = vmul.f32 -1.442695, %v3004_v32 }
 0x9e5   :  { %4676 = vpow2.f32 %v3566_v20 }
 0x9e6   :  { %4678 = vpow2.f32 %v3567_v57 }
 0x9eb   :  { %v4675_v45 = vpop.eup %4674 }
 0x9ec   :  { %v2898_v48 = vmul.f32 %v4675_v45, %v2897_v42 }
 0x9ee   :  { %v7113_v39 = vadd.f32 %v2899_v51, %v2898_v48  ;;  %v1082_v51 = vpop.permute.xlu0 %1081 }
 0x9ef   :  { %v4677_v36 = vpop.eup %4676 }
 0x9f0   :  { %v3001_v35 = vadd.f32 1.0, %v4677_v36  ;;  %v4679_v7 = vpop.eup %4678 }
 0x9f1   :  { %v3008_v37 = vadd.f32 1.0, %v4679_v7 }
 0x9f2   :  { %4680 = vrcp.f32 %v3001_v35 }
 0x9f3   :  { %4682 = vrcp.f32 %v3008_v37  ;;  %v1386_v37 = vpop.permute.xlu0 %1385 }
 0x9fc   :  { %v4681_v3 = vpop.eup %4680 }
 0x9fd   :  { %v3012_v46 = vmul.f32 %v4681_v3, %v3011_v38  ;;  %v4683_v44 = vpop.eup %4682  ;;  %v1690_v38 = vpop.permute.xlu1 %1689 }
 0x9fe   :  { %v3015_v30 = vsub.f32 1.0, %v4683_v44  ;;  %v3017_v16 = vmul.f32 %v4683_v44, %v6866_v12  ;;  %v7570_v12 = vld [vmem:[#allocation8_spill] sm:$0xff] }
 0x9ff   :  { %v3013_v15 = vadd.f32 %v3012_v46, %v7567_v47 }
 0xa01   :  { %4684 = vtanh.f32 %v3013_v15  ;;  %v1994_v47 = vpop.permute.xlu1 %1993  ;;  %v7574_v15 = vld [vmem:[#allocation16_spill] sm:$0xff] }
 0xa02   :  { %v1084_v44 = vmul.f32 %v1082_v51, %v7574_v15 }
 0xa0b   :  { %v4685_v31 = vpop.eup %4684 }
 0xa0c   :  { %v3016_v26 = vmul.f32 %v4685_v31, %v3015_v30  ;;  %v7575_v30 = vld [vmem:[#allocation14_spill] sm:$0xff] }
 0xa0d   :  { %v1692_v31 = vmul.f32 %v1690_v38, %v7575_v30 }
 0xa0e   :  { %v3018_v29 = vadd.f32 %v3017_v16, %v3016_v26  ;;  %v2298_v26 = vpop.permute.xlu0 %2297 }
 0xa10   :  { %v3019_v49 = vpack.c.bf16 %v3018_v29, %v3018_v29  ;;  %v7576_v29 = vld [vmem:[#allocation38_spill] sm:$0xff] }
 0xa12   :  { %3053 = vmatmul.mubr.bf16.vlgmr.msra.gmra.mrb[76].mxu0 %v3019_v49  ;;  %4296 = vmatmul.mubr.bf16.vlgmr.msra.gmra.mrb[96].mxu1 %v3019_v49 }
 0xa13   :  { %3103 = vmatpush1.bf16.msra.mxu0 %v6877_v0  ;;  %4300 = vmatpush3.bf16.msra.mxu1 %v6883_v19  ;;  %v7571_v0 = vld [vmem:[#allocation9_spill] sm:$0xff]  ;;  %v7572_v19 = vld [vmem:[#allocation10_spill] sm:$0xff] }
 0xa14   :  { %3104 = vmatprep.subr.bf16.mxu0 %v6889_v11  ;;  %4301 = vmatprep.subr.bf16.mxu1 %v7399_v59  ;;  %v3101_v11 = vpack.c.bf16 %v7113_v39, %v7113_v39 }
 0xa15   :  { %3134 = vmatprep.mubr.bf16.mxu0 %v7400_v18  ;;  %4315 = vmatprep.mubr.msk.bf16.mxu1 %vm4846_vm1, %v7399_v59  ;;  %v7568_v18 = vld [vmem:[#allocation6_spill] sm:$0xff] }
 0xa17   :  { %3105 = vmatpush1.bf16.msra.mxu0 %v6899_v61  ;;  %4302 = vmatpush3.bf16.msra.mxu1 %v6905_v43  ;;  %v4521_v61 = vld [vmem:[%s7247_s4 + $0x8] sm:$0xff]   ;;  %v4522_v43 = vld [vmem:[%s7247_s4 + $0x10] sm:$0xff]  }
 0xa18   :  { %3106 = vmatprep.subr.bf16.mxu0 %v6911_v4  ;;  %4303 = vmatprep.subr.bf16.mxu1 %v7399_v59  ;;  %v4523_v4 = vld [vmem:[%s7247_s4 + $0x18] sm:$0xff]  }
 0xa1b   :  { %3107 = vmatpush1.bf16.msra.mxu0 %v6918_v53  ;;  %4304 = vmatpush3.bf16.msra.mxu1 %v6924_v62  ;;  %v4524_v53 = vld [vmem:[%s7247_s4 + $0x20] sm:$0xff]   ;;  %v4525_v62 = vld [vmem:[%s7247_s4 + $0x28] sm:$0xff]  }
 0xa1c   :  { %3108 = vmatprep.subr.bf16.mxu0 %v6930_v50  ;;  %4305 = vmatprep.subr.bf16.mxu1 %v7399_v59  ;;  %v4526_v50 = vld [vmem:[%s7247_s4 + $0x30] sm:$0xff]  }
 0xa1f   :  { %3109 = vmatpush1.bf16.msra.mxu0 %v6937_v54  ;;  %4306 = vmatpush3.bf16.msra.mxu1 %v6943_v2  ;;  %v4527_v54 = vld [vmem:[%s7247_s4 + $0x38] sm:$0xff]   ;;  %v4528_v2 = vld [vmem:[%s7247_s4 + $0x40] sm:$0xff]  }
 0xa20   :  { %3110 = vmatprep.subr.bf16.mxu0 %v6949_v40  ;;  %4307 = vmatprep.subr.bf16.mxu1 %v7399_v59  ;;  %v4529_v40 = vld [vmem:[%s7247_s4 + $0x48] sm:$0xff]  }
 0xa23   :  { %3111 = vmatpush1.bf16.msra.mxu0 %v6956_v55  ;;  %4308 = vmatpush3.bf16.msra.mxu1 %v6962_v63  ;;  %v4530_v55 = vld [vmem:[%s7247_s4 + $0x50] sm:$0xff]   ;;  %v4531_v63 = vld [vmem:[%s7247_s4 + $0x58] sm:$0xff]  }
 0xa24   :  { %3112 = vmatprep.subr.bf16.mxu0 %v6968_v23  ;;  %4309 = vmatprep.subr.bf16.mxu1 %v7399_v59  ;;  %v4532_v23 = vld [vmem:[%s7247_s4 + $0x60] sm:$0xff]  }
 0xa27   :  { %3113 = vmatpush1.bf16.msra.mxu0 %v7568_v18  ;;  %4310 = vmatpush3.bf16.msra.mxu1 %v7569_v5  ;;  %v2602_v18 = vpop.permute.xlu1 %2601  ;;  %v7577_v5 = vld [vmem:[#allocation25_spill] sm:$0xff] }
 0xa28   :  { %3114 = vmatprep.subr.bf16.mxu0 %v7570_v12  ;;  %4311 = vmatprep.subr.bf16.mxu1 %v7399_v59  ;;  %v2300_v12 = vmul.f32 %v2298_v26, %v7577_v5 }
 0xa2b   :  { %3115 = vmatpush1.bf16.msra.mxu0 %v7571_v0  ;;  %4312 = vmatpush3.bf16.msra.mxu1 %v7572_v19  ;;  %v2906_v0 = vpop.permute.xlu0 %2905 }
 0xa2c   :  { %3116 = vmatprep.subr.bf16.mxu0 %v7006_v1  ;;  %4313 = vmatprep.subr.bf16.mxu1 %v7399_v59 }
 0xa2f   :  { %3117 = vmatpush1.bf16.msra.mxu0 %v7013_v10  ;;  %4314 = vmatpush3.bf16.msra.mxu1 %v7019_v22  ;;  %v4520_v10 = vld [vmem:[%s7247_s4] sm:$0xff]   ;;  %v4533_v22 = vld [vmem:[%s7247_s4 + $0x68] sm:$0xff]  }
 0xa30   :  { %4319 = vmatprep.subr.bf16.mxu0 %v7399_v59  ;;  %4339 = vmatprep.subr.bf16.mxu1 %v7399_v59 }
 0xa32   :  { %3135 = vmatmul.mubr.bf16.vlgmr.msra.gmra.mrb[76].mxu0 %v3101_v11  ;;  %4316 = vmatmul.mubr.bf16.vlgmr.msra.gmra.mrb[100].mxu1 %v3101_v11  ;;  %v2604_v11 = vmul.f32 %v2602_v18, %v6856_v52  ;;  %v4534_v52 = vld [vmem:[%s7247_s4 + $0x70] sm:$0xff]  }
 0xa33   :  { %4335 = vmatprep.mubr.msk.bf16.mxu0 %vm4846_vm1, %v7399_v59  ;;  %4355 = vmatprep.mubr.msk.bf16.mxu1 %vm4846_vm1, %v7399_v59 }
 0xa34   :  { %4320 = vmatpush3.bf16.msra.mxu0 %v4520_v10  ;;  %4340 = vmatpush3.bf16.msra.mxu1 %v4528_v2  ;;  %v3210_v2 = vpop.permute.xlu1 %3209 }
 0xa35   :  { %4321 = vmatprep.subr.bf16.mxu0 %v7399_v59  ;;  %4341 = vmatprep.subr.bf16.mxu1 %v7399_v59 }
 0xa38   :  { %4322 = vmatpush3.bf16.msra.mxu0 %v4521_v61  ;;  %4342 = vmatpush3.bf16.msra.mxu1 %v4529_v40 }
 0xa39   :  { %4323 = vmatprep.subr.bf16.mxu0 %v7399_v59  ;;  %4343 = vmatprep.subr.bf16.mxu1 %v7399_v59 }
 0xa3c   :  { %4324 = vmatpush3.bf16.msra.mxu0 %v4522_v43  ;;  %4344 = vmatpush3.bf16.msra.mxu1 %v4530_v55 }
 0xa3d   :  { %4325 = vmatprep.subr.bf16.mxu0 %v7399_v59  ;;  %4345 = vmatprep.subr.bf16.mxu1 %v7399_v59 }
 0xa40   :  { %4326 = vmatpush3.bf16.msra.mxu0 %v4523_v4  ;;  %4346 = vmatpush3.bf16.msra.mxu1 %v4531_v63  ;;  %v2908_v4 = vmul.f32 %v2906_v0, %v7113_v39 }
 0xa41   :  { %4327 = vmatprep.subr.bf16.mxu0 %v7399_v59  ;;  %4347 = vmatprep.subr.bf16.mxu1 %v7399_v59 }
 0xa44   :  { %4328 = vmatpush3.bf16.msra.mxu0 %v4524_v53  ;;  %4348 = vmatpush3.bf16.msra.mxu1 %v4532_v23 }
 0xa45   :  { %4329 = vmatprep.subr.bf16.mxu0 %v7399_v59  ;;  %4349 = vmatprep.subr.bf16.mxu1 %v7399_v59 }
 0xa48   :  { %4330 = vmatpush3.bf16.msra.mxu0 %v4525_v62  ;;  %4350 = vmatpush3.bf16.msra.mxu1 %v4533_v22  ;;  %v4535_v22 = vld [vmem:[%s7247_s4 + $0x78] sm:$0xff]  }
 0xa49   :  { %4331 = vmatprep.subr.bf16.mxu0 %v7399_v59  ;;  %4351 = vmatprep.subr.bf16.mxu1 %v7399_v59 }
 0xa4c   :  { %4332 = vmatpush3.bf16.msra.mxu0 %v4526_v50  ;;  %4352 = vmatpush3.bf16.msra.mxu1 %v4534_v52 }
 0xa4d   :  { %4333 = vmatprep.subr.bf16.mxu0 %v7399_v59  ;;  %4353 = vmatprep.subr.bf16.mxu1 %v7399_v59  ;;  %v3340_v59 = vld [vmem:[%s7245_s5 + $0x5] ss:$0 sm:$0xff] }
 0xa50   :  { %4334 = vmatpush3.bf16.msra.mxu0 %v4527_v54  ;;  %4354 = vmatpush3.bf16.msra.mxu1 %v4535_v22 }
 0xae5   :  { %v3095_v1 = vpop.f32.mrb[96].mxu1 }
 0xae6   :  { %v4297_v13 = vpop.f32.mrb[97].mxu1  ;;  %v3096_v35 = vadd.f32 %v3095_v1, %v5575_v9 }
 0xae7   :  { %v3098_v24 = vpop.f32.mrb[98].mxu1 }
 0xae8   :  { %v4298_v58 = vpop.f32.mrb[99].mxu1 }
 0xb05   :  { %v3136_v25 = vpop.f32.mrb[76].mxu0  ;;  %v3177_v56 = vpop.f32.mrb[100].mxu1 }
 0xb06   :  { %v4373_v6 = vadd.f32 %v3136_v25, %v7563_v33  ;;  %v3138_v14 = vpop.f32.mrb[77].mxu0  ;;  %v4317_v21 = vpop.f32.mrb[101].mxu1  ;;  %v3197_v33 = vadd.f32 %v7106_v8, %v3177_v56  ;;  %v1996_v8 = vmul.f32 %v1994_v47, %v7576_v29 }
 0xb07   :  { %v3140_v32 = vpop.f32.mrb[78].mxu0  ;;  %v3180_v17 = vpop.f32.mrb[102].mxu1  ;;  %v4374_v60 = vadd.f32 %v3138_v14, %v7564_v34  ;;  %v7573_v34 = vld [vmem:[#allocation39_spill] sm:$0xff] }
 0xb08   :  { %v3568_v28 = vmul.f32 -1.442695, %v4373_v6  ;;  %v3141_v20 = vpop.f32.mrb[79].mxu0  ;;  %v4318_v27 = vpop.f32.mrb[103].mxu1  ;;  %v1388_v46 = vmul.f32 %v1386_v37, %v7573_v34 }
 0xb09   :  { %v3569_v41 = vmul.f32 -1.442695, %v4374_v60 }
 0xb0a   :  { %4686 = vpow2.f32 %v3568_v28  ;;  %v1389_v16 = vadd.f32 %v1388_v46, %v1084_v44 }
 0xb0b   :  { %4688 = vpow2.f32 %v3569_v41 }
 0xb0c   :  { %v1693_v9 = vadd.f32 %v1692_v31, %v1389_v16 }
 0xb0e   :  { %v1997_v19 = vadd.f32 %v1996_v8, %v1693_v9 }
 0xb10   :  { %v2301_v43 = vadd.f32 %v2300_v12, %v1997_v19 }
 0xb12   :  { %v2605_v50 = vadd.f32 %v2604_v11, %v2301_v43 }
 0xb14   :  { %v4687_v57 = vpop.eup %4686  ;;  %v2909_v40 = vadd.f32 %v2908_v4, %v2605_v50 }
 0xb15   :  { %v3187_v42 = vadd.f32 1.0, %v4687_v57  ;;  %v4689_v45 = vpop.eup %4688 }
 0xb16   :  { %v3194_v48 = vadd.f32 1.0, %v4689_v45 }
 0xb17   :  { %4690 = vrcp.f32 %v3187_v42 }
 0xb18   :  { %4692 = vrcp.f32 %v3194_v48 }
 0xb21   :  { %v4691_v36 = vpop.eup %4690 }
 0xb22   :  { %v3198_v7 = vmul.f32 %v4691_v36, %v3197_v33  ;;  %v4693_v49 = vpop.eup %4692 }
 0xb23   :  { %v3201_v10 = vsub.f32 1.0, %v4693_v49  ;;  %v3203_v62 = vmul.f32 %v4693_v49, %v7113_v39  ;;  %v3231_v39 = vld [vmem:[%s7245_s5 + $0x4] ss:$0 sm:$0xff] }
 0xb24   :  { %v3199_v3 = vadd.f32 %v3198_v7, %v3096_v35 }
 0xb26   :  { %4694 = vtanh.f32 %v3199_v3 }
 0xb30   :  { %v4695_v61 = vpop.eup %4694 }
 0xb31   :  { %v3202_v53 = vmul.f32 %v4695_v61, %v3201_v10 }
 0xb33   :  { %v3204_v54 = vadd.f32 %v3203_v62, %v3202_v53 }
 0xb35   :  { %v3212_v55 = vmul.f32 %v3210_v2, %v3204_v54 }
 0xb37   :  { %v3213_v63 = vadd.f32 %v3212_v55, %v2909_v40 }
 0xb39   :  { %v3214_v23 = vpack.c.bf16 %v3213_v63, %v3213_v63 }
 0xb3b   :  { %4336 = vmatmul.mubr.bf16.vlgmr.msra.gmra.mrb[80].mxu0 %v3214_v23 }
 0xc0e   :  { %v3314_v1 = vpop.f32.mrb[80].mxu0 }
 0xc0f   :  { %v3315_v13 = vadd.f32 %v3314_v1, %v3231_v39  ;;  %v4337_v24 = vpop.f32.mrb[81].mxu0 }
 0xc10   :  { %v3317_v58 = vpop.f32.mrb[82].mxu0 }
 0xc11   :  { %vm3320_vm2 = vcmp.ge.f32.partialorder %v3315_v13, 0.0  ;;  %v3321_v25 = vmul.f32 0.01, %v3315_v13  ;;  %v4338_v56 = vpop.f32.mrb[83].mxu0 }
 0xc13   :  { %v3322_v6 = vsel %vm3320_vm2, %v3315_v13, %v3321_v25 }
 0xc14   :  { %v3323_v14 = vpack.c.bf16 %v3322_v6, %v3322_v6 }
 0xc16   :  { %4356 = vmatmul.mubr.bf16.vlgmr.msra.gmra.mrb[104].mxu1 %v3323_v14 }
 0xce9   :  { %v3423_v21 = vpop.f32.mrb[104].mxu1 }
 0xcea   :  { %v3424_v32 = vadd.f32 %v3423_v21, %v3340_v59  ;;  %v4357_v17 = vpop.f32.mrb[105].mxu1 }
 0xceb   :  { %v3426_v28 = vpop.f32.mrb[106].mxu1 }
 0xcec   :  { %3429 = vst [vmem:[%s7248_s6] sm:$0xff] %v3424_v32  ;;  %v4358_v20 = vpop.f32.mrb[107].mxu1 }

</bundles_post_ra>
